<compile_context>
chip_gen: v6e
topology: v6e:2x2x1
jax: 0.10.0
libtpu: 0.0.40
codegen_flags: <defaults>
</compile_context>

<pallas_src>
import functools

import jax
import jax.numpy as jnp
from jax.experimental import pallas as pl
from jax.experimental.pallas import tpu as pltpu

LANE = 128                     # pad every channel dim to this for lane-dense stores
_BN_EPS = 1e-5
_VMEM = pl.BlockSpec(memory_space=pltpu.MemorySpace.VMEM)   # tiny whole-array calls only


# ----------------------------- helpers ------------------------------

def _round_up(n, m):
    return ((n + m - 1) // m) * m


def _pad_axis(a, axis, target):
    pad = target - a.shape[axis]
    if pad <= 0:
        return a
    widths = [(0, 0)] * a.ndim
    widths[axis] = (0, pad)
    return jnp.pad(a, widths)


def _fold_bn(bn):
    gamma, beta, mean, var = bn
    scale = gamma / jnp.sqrt(var + _BN_EPS)
    bias = beta - mean * scale
    return scale, bias


def _pick_tm(M, K):
    # Keep the double-buffered bf16 activation tile under ~4 MiB so the whole
    # pipeline (x, w, out, residual, x2 buffering) stays well inside even
    # v7x's 64 MiB physical VMEM.
    tm = 512
    while tm > 128 and 2 * tm * K * 2 > 4 * 2 ** 20:
        tm //= 2
    return M if M <= tm else tm


def _matmul_vmem_limit(tm, K, N, has_res):
    need = 2 * (tm * K * 2 + K * N * 2 + tm * N * 4
                + (tm * N * 2 if has_res else 0) + 2 * N * 4)
    # explicit budget: at least the 32 MiB scoped default, never above 96 MiB
    return int(min(96 * 2 ** 20, max(32 * 2 ** 20, 2 * need)))


# ----------------------------- Pallas kernels ------------------------------

def _matmul_bn_kernel(x_ref, w_ref, scale_ref, bias_ref, o_ref, *, relu):
    # bf16 (tm, K) @ bf16 (K, N) on the MXU with f32 accumulation,
    # fused folded-BN scale/bias (+ ReLU) epilogue.
    acc = jnp.dot(x_ref[...], w_ref[...], preferred_element_type=jnp.float32)
    acc = acc * scale_ref[...] + bias_ref[...]
    if relu:
        acc = jnp.maximum(acc, 0.0)
    o_ref[...] = acc.astype(o_ref.dtype)


def _matmul_bn_add_relu_kernel(x_ref, w_ref, scale_ref, bias_ref, res_ref, o_ref):
    # Same as above but with the residual add + ReLU fused into the epilogue.
    acc = jnp.dot(x_ref[...], w_ref[...], preferred_element_type=jnp.float32)
    acc = acc * scale_ref[...] + bias_ref[...] + res_ref[...].astype(jnp.float32)
    o_ref[...] = jnp.maximum(acc, 0.0).astype(o_ref.dtype)


def _maxpool_kernel(w_ref, o_ref):
    # windows: (k*k, tm, C) -> max over leading window axis -> (tm, C)
    m = w_ref[0]
    for i in range(1, w_ref.shape[0]):
        m = jnp.maximum(m, w_ref[i])
    o_ref[...] = m


def _gap_fc_kernel(x_ref, w_ref, b_ref, o_ref):
    # x: (B, H*W, C) -> mean over spatial axis -> (B, C) -> @ (C, N) + b
    pooled = jnp.mean(x_ref[...].astype(jnp.float32), axis=1)
    o_ref[...] = jnp.dot(pooled, w_ref[...],
                         preferred_element_type=jnp.float32) + b_ref[...]


# ----------------------------- Pallas wrappers ------------------------------

def fused_matmul(x, w, scale, bias, *, relu=False, residual=None,
                 out_dtype=jnp.bfloat16):
    """Gridded (M-tiled) matmul with fused BN scale/bias (+ReLU/+residual)."""
    M, K = x.shape
    N = w.shape[1]
    x = x.astype(jnp.bfloat16)
    w = w.astype(jnp.bfloat16)
    scale = scale.reshape(1, N).astype(jnp.float32)
    bias = bias.reshape(1, N).astype(jnp.float32)

    tm = _pick_tm(M, K)
    grid = (pl.cdiv(M, tm),)

    in_specs = [
        pl.BlockSpec((tm, K), lambda i: (i, 0)),
        pl.BlockSpec((K, N), lambda i: (0, 0)),
        pl.BlockSpec((1, N), lambda i: (0, 0)),
        pl.BlockSpec((1, N), lambda i: (0, 0)),
    ]
    args = [x, w, scale, bias]
    if residual is not None:
        in_specs.append(pl.BlockSpec((tm, N), lambda i: (i, 0)))
        args.append(residual.astype(jnp.bfloat16))
        kern = _matmul_bn_add_relu_kernel
    else:
        kern = functools.partial(_matmul_bn_kernel, relu=relu)

    return pl.pallas_call(
        kern,
        grid=grid,
        in_specs=in_specs,
        out_specs=pl.BlockSpec((tm, N), lambda i: (i, 0)),
        out_shape=jax.ShapeDtypeStruct((M, N), out_dtype),
        compiler_params=pltpu.CompilerParams(
            dimension_semantics=("parallel",),
            vmem_limit_bytes=_matmul_vmem_limit(tm, K, N, residual is not None)),
    )(*args)


def maxpool(x_nhwc, k=3, stride=2, padding=1):
    B, H, W, C = x_nhwc.shape
    xp = jnp.pad(x_nhwc, ((0, 0), (padding, padding), (padding, padding), (0, 0)),
                 constant_values=-jnp.inf)
    Ho = (H + 2 * padding - k) // stride + 1
    Wo = (W + 2 * padding - k) // stride + 1
    M = B * Ho * Wo
    # Window axis leading so channels stay the (lane-dense) minor dim.
    wins = [xp[:, i:i + stride * Ho:stride, j:j + stride * Wo:stride, :].reshape(M, C)
            for i in range(k) for j in range(k)]
    windows = jnp.stack(wins, axis=0)                         # (k*k, M, C)

    tm = M if M <= 512 else 512
    out = pl.pallas_call(
        _maxpool_kernel,
        grid=(pl.cdiv(M, tm),),
        in_specs=[pl.BlockSpec((k * k, tm, C), lambda i: (0, i, 0))],
        out_specs=pl.BlockSpec((tm, C), lambda i: (i, 0)),
        out_shape=jax.ShapeDtypeStruct((M, C), x_nhwc.dtype),
        compiler_params=pltpu.CompilerParams(dimension_semantics=("parallel",)),
    )(windows)
    return out.reshape(B, Ho, Wo, C)


def gap_fc(x_bsc, w, b):
    # Fused global-average-pool + final FC.  Shapes here are tiny (B x S x 128),
    # so a single whole-array-in-VMEM call is appropriate.
    B, S, C = x_bsc.shape
    N = w.shape[1]
    return pl.pallas_call(
        _gap_fc_kernel,
        out_shape=jax.ShapeDtypeStruct((B, N), jnp.float32),
        in_specs=[_VMEM, _VMEM, _VMEM],
        out_specs=_VMEM,
    )(x_bsc, w.astype(jnp.float32), b.reshape(1, N).astype(jnp.float32))


# ----------------------------- plain-JAX glue -------------------------------

def _im2col(x, kh, kw, stride, padding):
    # x: (B, H, W, C) NHWC -> (B*Ho*Wo, kh*kw*C), plus (Ho, Wo)
    B, H, W, C = x.shape
    xp = jnp.pad(x, ((0, 0), (padding, padding), (padding, padding), (0, 0)))
    Ho = (H + 2 * padding - kh) // stride + 1
    Wo = (W + 2 * padding - kw) // stride + 1
    patches = []
    for i in range(kh):
        for j in range(kw):
            patches.append(xp[:, i:i + stride * Ho:stride, j:j + stride * Wo:stride, :])
    p = jnp.stack(patches, axis=3)          # (B, Ho, Wo, kh*kw, C)
    return p.reshape(B * Ho * Wo, kh * kw * C), Ho, Wo


def conv_bn(x_nhwc, w_oihw, bn, stride, padding, relu=True, residual=None):
    """Conv + folded-BN (+ReLU / +fused residual add).  Cout padded to 128."""
    cout, cin, kh, kw = w_oihw.shape
    B, H, W, c_act = x_nhwc.shape           # c_act may already be lane-padded
    cout_p = _round_up(cout, LANE)

    scale, bias = _fold_bn(bn)
    scale = _pad_axis(scale, 0, cout_p)      # padded channels -> scale 0
    bias = _pad_axis(bias, 0, cout_p)        # padded channels -> bias 0

    w = jnp.transpose(w_oihw, (2, 3, 1, 0))  # (kh, kw, cin, cout)
    w = _pad_axis(w, 2, c_act)               # zero weights for padded in-channels
    w = _pad_axis(w, 3, cout_p)              # zero weights for padded out-channels
    w2d = w.reshape(kh * kw * c_act, cout_p)

    if kh == 1 and kw == 1 and stride == 1 and padding == 0:
        patches, Ho, Wo = x_nhwc.reshape(B * H * W, c_act), H, W
    else:
        patches, Ho, Wo = _im2col(x_nhwc.astype(jnp.bfloat16), kh, kw, stride, padding)

    res2d = None if residual is None else residual.reshape(B * Ho * Wo, cout_p)
    out = fused_matmul(patches, w2d, scale, bias, relu=relu, residual=res2d)
    return out.reshape(B, Ho, Wo, cout_p)


# ----------------------------- encoder model --------------------------------

def _bn_init(c):
    # PyTorch BatchNorm2d defaults: gamma=1, beta=0, running_mean=0, running_var=1
    return (jnp.ones((c,), jnp.float32), jnp.zeros((c,), jnp.float32),
            jnp.zeros((c,), jnp.float32), jnp.ones((c,), jnp.float32))


def init_params(key, input_channels=1, latent_dim=32, stem_w=8, mid_w=8, out_w=32):
    keys = jax.random.split(key, 8)

    def conv_w(k, cout, cin, kh, kw):
        fan_in = cin * kh * kw
        return jax.random.normal(k, (cout, cin, kh, kw), jnp.float32) * (2.0 / fan_in) ** 0.5

    return {
        "stem_w": conv_w(keys[0], stem_w, input_channels, 7, 7),
        "stem_bn": _bn_init(stem_w),
        "block1": {
            "c1_w": conv_w(keys[1], mid_w, stem_w, 1, 1), "c1_bn": _bn_init(mid_w),
            "c2_w": conv_w(keys[2], mid_w, mid_w, 3, 3), "c2_bn": _bn_init(mid_w),
            "c3_w": conv_w(keys[3], out_w, mid_w, 1, 1), "c3_bn": _bn_init(out_w),
            "down_w": conv_w(keys[4], out_w, stem_w, 1, 1), "down_bn": _bn_init(out_w),
        },
        "fc_w": jax.random.normal(keys[5], (out_w, latent_dim), jnp.float32) * (1.0 / out_w) ** 0.5,
        "fc_b": jnp.zeros((latent_dim,), jnp.float32),
    }


def _bottleneck(x, p):
    identity = conv_bn(x, p["down_w"], p["down_bn"], 1, 0, relu=False)
    out = conv_bn(x, p["c1_w"], p["c1_bn"], 1, 0, relu=True)
    out = conv_bn(out, p["c2_w"], p["c2_bn"], 1, 1, relu=True)
    # residual add + ReLU fused into the c3 matmul epilogue
    out = conv_bn(out, p["c3_w"], p["c3_bn"], 1, 0, relu=False, residual=identity)
    return out


def semantic_encoder_forward(x_nchw, params):
    # x: [B, C, H, W] (PyTorch NCHW) -> latent [B, latent_dim]
    x = jnp.transpose(x_nchw, (0, 2, 3, 1)).astype(jnp.float32)   # -> NHWC
    x = conv_bn(x, params["stem_w"], params["stem_bn"], stride=2, padding=3, relu=True)
    x = maxpool(x, k=3, stride=2, padding=1)
    x = _bottleneck(x, params["block1"])

    B, H, W, C = x.shape
    latent_dim = params["fc_w"].shape[1]
    latent_p = _round_up(latent_dim, LANE)
    fc_w = _pad_axis(_pad_axis(params["fc_w"], 0, C), 1, latent_p)   # (C, latent_p)
    fc_b = _pad_axis(params["fc_b"], 0, latent_p)
    z = gap_fc(x.reshape(B, H * W, C), fc_w, fc_b)                   # (B, latent_p)
    return z[:, :latent_dim]                                         # (B, latent_dim)


# ----------------------------------- main ------------------------------------

if __name__ == "__main__":
    B, C_in, H, W = 2, 1, 32, 32
    latent_dim = 32

    key = jax.random.PRNGKey(0)
    x = jax.random.normal(key, (B, C_in, H, W), jnp.float32)
    params = init_params(jax.random.PRNGKey(1),
                         input_channels=C_in, latent_dim=latent_dim)

    fwd = jax.jit(semantic_encoder_forward)
    z = fwd(x, params)
    jax.block_until_ready(z)

    assert z.shape == (B, latent_dim), z.shape
    assert bool(jnp.all(jnp.isfinite(z)))
    print("KERNEL_OK")
</pallas_src>

<mosaic_0001>
module attributes {stable_mosaic.version = 11 : i64} {
  func.func @_matmul_bn_kernel(%arg0: i32, %arg1: memref<512x49xbf16, #tpu.memory_space<vmem>>, %arg2: memref<49x128xbf16, #tpu.memory_space<vmem>>, %arg3: memref<1x128xf32, #tpu.memory_space<vmem>>, %arg4: memref<1x128xf32, #tpu.memory_space<vmem>>, %arg5: memref<512x128xbf16, #tpu.memory_space<vmem>>) attributes {dimension_semantics = [#tpu.dimension_semantics<parallel>], iteration_bounds = array<i64: 1>, scalar_prefetch = 0 : i64, scratch_operands = 0 : i64, tpu.core_type = #tpu.core_type<tc>, window_params = [{transform_indices = @transform_0, window_bounds = array<i64: 512, 49>}, {pipeline_mode = #tpu.pipeline_mode<synchronous>, transform_indices = @transform_1, window_bounds = array<i64: 49, 128>}, {pipeline_mode = #tpu.pipeline_mode<synchronous>, transform_indices = @transform_2, window_bounds = array<i64: 1, 128>}, {pipeline_mode = #tpu.pipeline_mode<synchronous>, transform_indices = @transform_3, window_bounds = array<i64: 1, 128>}, {transform_indices = @transform_4, window_bounds = array<i64: 512, 128>}]} {
    %c0 = arith.constant 0 : index
    %c0_0 = arith.constant 0 : index
    %0 = vector.load %arg1[%c0, %c0_0] : memref<512x49xbf16, #tpu.memory_space<vmem>>, vector<512x49xbf16>
    %c0_1 = arith.constant 0 : index
    %c0_2 = arith.constant 0 : index
    %1 = vector.load %arg2[%c0_1, %c0_2] : memref<49x128xbf16, #tpu.memory_space<vmem>>, vector<49x128xbf16>
    %cst = arith.constant dense<0.000000e+00> : vector<512x128xf32>
    %2 = tpu.matmul %0, %1, %cst {dimension_numbers = #tpu.dot_dimension_numbers<[1], [0], [0], [1], [0, 0, 1, 1], [], []>} : vector<512x49xbf16>, vector<49x128xbf16>, vector<512x128xf32> -> vector<512x128xf32>
    %c0_3 = arith.constant 0 : index
    %c0_4 = arith.constant 0 : index
    %3 = vector.load %arg3[%c0_3, %c0_4] : memref<1x128xf32, #tpu.memory_space<vmem>>, vector<1x128xf32>
    %4 = vector.broadcast %3 : vector<1x128xf32> to vector<512x128xf32>
    %5 = arith.mulf %2, %4 : vector<512x128xf32>
    %c0_5 = arith.constant 0 : index
    %c0_6 = arith.constant 0 : index
    %6 = vector.load %arg4[%c0_5, %c0_6] : memref<1x128xf32, #tpu.memory_space<vmem>>, vector<1x128xf32>
    %7 = vector.broadcast %6 : vector<1x128xf32> to vector<512x128xf32>
    %8 = arith.addf %5, %7 : vector<512x128xf32>
    %cst_7 = arith.constant 0.000000e+00 : f32
    %9 = vector.broadcast %cst_7 : f32 to vector<512x128xf32>
    %10 = arith.maximumf %8, %9 : vector<512x128xf32>
    %11 = arith.truncf %10 : vector<512x128xf32> to vector<512x128xbf16>
    %c0_8 = arith.constant 0 : index
    %c0_9 = arith.constant 0 : index
    %12 = vector.load %arg5[%c0_8, %c0_9] : memref<512x128xbf16, #tpu.memory_space<vmem>>, vector<512x128xbf16>
    tpu.vector_store %arg5[%c0_8, %c0_9], %11 {strides = array<i32>} : memref<512x128xbf16, #tpu.memory_space<vmem>>, vector<512x128xbf16>,
    return
  }
  func.func @transform_0(%arg0: i32) -> (i32, i32) {
    %c0_i32 = arith.constant 0 : i32
    %c0_i32_0 = arith.constant 0 : i32
    return %arg0, %c0_i32 : i32, i32
  }
  func.func @transform_1(%arg0: i32) -> (i32, i32) {
    %c0_i32 = arith.constant 0 : i32
    %c0_i32_0 = arith.constant 0 : i32
    %c0_i32_1 = arith.constant 0 : i32
    return %c0_i32, %c0_i32_0 : i32, i32
  }
  func.func @transform_2(%arg0: i32) -> (i32, i32) {
    %c0_i32 = arith.constant 0 : i32
    %c0_i32_0 = arith.constant 0 : i32
    %c0_i32_1 = arith.constant 0 : i32
    return %c0_i32, %c0_i32_0 : i32, i32
  }
  func.func @transform_3(%arg0: i32) -> (i32, i32) {
    %c0_i32 = arith.constant 0 : i32
    %c0_i32_0 = arith.constant 0 : i32
    %c0_i32_1 = arith.constant 0 : i32
    return %c0_i32, %c0_i32_0 : i32, i32
  }
  func.func @transform_4(%arg0: i32) -> (i32, i32) {
    %c0_i32 = arith.constant 0 : i32
    %c0_i32_0 = arith.constant 0 : i32
    return %arg0, %c0_i32 : i32, i32
  }
}

module attributes {stable_mosaic.version = 11 : i64} {
  func.func @_matmul_bn_kernel(%arg0: i32, %arg1: memref<128x128xbf16, #tpu.memory_space<vmem>>, %arg2: memref<128x128xbf16, #tpu.memory_space<vmem>>, %arg3: memref<1x128xf32, #tpu.memory_space<vmem>>, %arg4: memref<1x128xf32, #tpu.memory_space<vmem>>, %arg5: memref<128x128xbf16, #tpu.memory_space<vmem>>) attributes {dimension_semantics = [#tpu.dimension_semantics<parallel>], iteration_bounds = array<i64: 1>, scalar_prefetch = 0 : i64, scratch_operands = 0 : i64, tpu.core_type = #tpu.core_type<tc>, window_params = [{transform_indices = @transform_0, window_bounds = array<i64: 128, 128>}, {pipeline_mode = #tpu.pipeline_mode<synchronous>, transform_indices = @transform_1, window_bounds = array<i64: 128, 128>}, {pipeline_mode = #tpu.pipeline_mode<synchronous>, transform_indices = @transform_2, window_bounds = array<i64: 1, 128>}, {pipeline_mode = #tpu.pipeline_mode<synchronous>, transform_indices = @transform_3, window_bounds = array<i64: 1, 128>}, {transform_indices = @transform_4, window_bounds = array<i64: 128, 128>}]} {
    %c0 = arith.constant 0 : index
    %c0_0 = arith.constant 0 : index
    %0 = vector.load %arg1[%c0, %c0_0] : memref<128x128xbf16, #tpu.memory_space<vmem>>, vector<128x128xbf16>
    %c0_1 = arith.constant 0 : index
    %c0_2 = arith.constant 0 : index
    %1 = vector.load %arg2[%c0_1, %c0_2] : memref<128x128xbf16, #tpu.memory_space<vmem>>, vector<128x128xbf16>
    %cst = arith.constant dense<0.000000e+00> : vector<128x128xf32>
    %2 = tpu.matmul %0, %1, %cst {dimension_numbers = #tpu.dot_dimension_numbers<[1], [0], [0], [1], [0, 0, 1, 1], [], []>} : vector<128x128xbf16>, vector<128x128xbf16>, vector<128x128xf32> -> vector<128x128xf32>
    %c0_3 = arith.constant 0 : index
    %c0_4 = arith.constant 0 : index
    %3 = vector.load %arg3[%c0_3, %c0_4] : memref<1x128xf32, #tpu.memory_space<vmem>>, vector<1x128xf32>
    %4 = vector.broadcast %3 : vector<1x128xf32> to vector<128x128xf32>
    %5 = arith.mulf %2, %4 : vector<128x128xf32>
    %c0_5 = arith.constant 0 : index
    %c0_6 = arith.constant 0 : index
    %6 = vector.load %arg4[%c0_5, %c0_6] : memref<1x128xf32, #tpu.memory_space<vmem>>, vector<1x128xf32>
    %7 = vector.broadcast %6 : vector<1x128xf32> to vector<128x128xf32>
    %8 = arith.addf %5, %7 : vector<128x128xf32>
    %cst_7 = arith.constant 0.000000e+00 : f32
    %9 = vector.broadcast %cst_7 : f32 to vector<128x128xf32>
    %10 = arith.maximumf %8, %9 : vector<128x128xf32>
    %11 = arith.truncf %10 : vector<128x128xf32> to vector<128x128xbf16>
    %c0_8 = arith.constant 0 : index
    %c0_9 = arith.constant 0 : index
    %12 = vector.load %arg5[%c0_8, %c0_9] : memref<128x128xbf16, #tpu.memory_space<vmem>>, vector<128x128xbf16>
    tpu.vector_store %arg5[%c0_8, %c0_9], %11 {strides = array<i32>} : memref<128x128xbf16, #tpu.memory_space<vmem>>, vector<128x128xbf16>,
    return
  }
  func.func @transform_0(%arg0: i32) -> (i32, i32) {
    %c0_i32 = arith.constant 0 : i32
    %c0_i32_0 = arith.constant 0 : i32
    return %arg0, %c0_i32 : i32, i32
  }
  func.func @transform_1(%arg0: i32) -> (i32, i32) {
    %c0_i32 = arith.constant 0 : i32
    %c0_i32_0 = arith.constant 0 : i32
    %c0_i32_1 = arith.constant 0 : i32
    return %c0_i32, %c0_i32_0 : i32, i32
  }
  func.func @transform_2(%arg0: i32) -> (i32, i32) {
    %c0_i32 = arith.constant 0 : i32
    %c0_i32_0 = arith.constant 0 : i32
    %c0_i32_1 = arith.constant 0 : i32
    return %c0_i32, %c0_i32_0 : i32, i32
  }
  func.func @transform_3(%arg0: i32) -> (i32, i32) {
    %c0_i32 = arith.constant 0 : i32
    %c0_i32_0 = arith.constant 0 : i32
    %c0_i32_1 = arith.constant 0 : i32
    return %c0_i32, %c0_i32_0 : i32, i32
  }
  func.func @transform_4(%arg0: i32) -> (i32, i32) {
    %c0_i32 = arith.constant 0 : i32
    %c0_i32_0 = arith.constant 0 : i32
    return %arg0, %c0_i32 : i32, i32
  }
}

module attributes {stable_mosaic.version = 11 : i64} {
  func.func @_maxpool_kernel(%arg0: i32, %arg1: memref<9x128x128xbf16, #tpu.memory_space<vmem>>, %arg2: memref<128x128xbf16, #tpu.memory_space<vmem>>) attributes {dimension_semantics = [#tpu.dimension_semantics<parallel>], iteration_bounds = array<i64: 1>, scalar_prefetch = 0 : i64, scratch_operands = 0 : i64, tpu.core_type = #tpu.core_type<tc>, window_params = [{transform_indices = @transform_0, window_bounds = array<i64: 9, 128, 128>}, {transform_indices = @transform_1, window_bounds = array<i64: 128, 128>}]} {
    %c0 = arith.constant 0 : index
    %c0_0 = arith.constant 0 : index
    %c0_1 = arith.constant 0 : index
    %0 = vector.load %arg1[%c0, %c0_0, %c0_1] : memref<9x128x128xbf16, #tpu.memory_space<vmem>>, vector<1x128x128xbf16>
    %1 = vector.shape_cast %0 : vector<1x128x128xbf16> to vector<128x128xbf16>
    %c1 = arith.constant 1 : index
    %c0_2 = arith.constant 0 : index
    %c0_3 = arith.constant 0 : index
    %2 = vector.load %arg1[%c1, %c0_2, %c0_3] : memref<9x128x128xbf16, #tpu.memory_space<vmem>>, vector<1x128x128xbf16>
    %3 = vector.shape_cast %2 : vector<1x128x128xbf16> to vector<128x128xbf16>
    %4 = arith.maximumf %1, %3 : vector<128x128xbf16>
    %c2 = arith.constant 2 : index
    %c0_4 = arith.constant 0 : index
    %c0_5 = arith.constant 0 : index
    %5 = vector.load %arg1[%c2, %c0_4, %c0_5] : memref<9x128x128xbf16, #tpu.memory_space<vmem>>, vector<1x128x128xbf16>
    %6 = vector.shape_cast %5 : vector<1x128x128xbf16> to vector<128x128xbf16>
    %7 = arith.maximumf %4, %6 : vector<128x128xbf16>
    %c3 = arith.constant 3 : index
    %c0_6 = arith.constant 0 : index
    %c0_7 = arith.constant 0 : index
    %8 = vector.load %arg1[%c3, %c0_6, %c0_7] : memref<9x128x128xbf16, #tpu.memory_space<vmem>>, vector<1x128x128xbf16>
    %9 = vector.shape_cast %8 : vector<1x128x128xbf16> to vector<128x128xbf16>
    %10 = arith.maximumf %7, %9 : vector<128x128xbf16>
    %c4 = arith.constant 4 : index
    %c0_8 = arith.constant 0 : index
    %c0_9 = arith.constant 0 : index
    %11 = vector.load %arg1[%c4, %c0_8, %c0_9] : memref<9x128x128xbf16, #tpu.memory_space<vmem>>, vector<1x128x128xbf16>
    %12 = vector.shape_cast %11 : vector<1x128x128xbf16> to vector<128x128xbf16>
    %13 = arith.maximumf %10, %12 : vector<128x128xbf16>
    %c5 = arith.constant 5 : index
    %c0_10 = arith.constant 0 : index
    %c0_11 = arith.constant 0 : index
    %14 = vector.load %arg1[%c5, %c0_10, %c0_11] : memref<9x128x128xbf16, #tpu.memory_space<vmem>>, vector<1x128x128xbf16>
    %15 = vector.shape_cast %14 : vector<1x128x128xbf16> to vector<128x128xbf16>
    %16 = arith.maximumf %13, %15 : vector<128x128xbf16>
    %c6 = arith.constant 6 : index
    %c0_12 = arith.constant 0 : index
    %c0_13 = arith.constant 0 : index
    %17 = vector.load %arg1[%c6, %c0_12, %c0_13] : memref<9x128x128xbf16, #tpu.memory_space<vmem>>, vector<1x128x128xbf16>
    %18 = vector.shape_cast %17 : vector<1x128x128xbf16> to vector<128x128xbf16>
    %19 = arith.maximumf %16, %18 : vector<128x128xbf16>
    %c7 = arith.constant 7 : index
    %c0_14 = arith.constant 0 : index
    %c0_15 = arith.constant 0 : index
    %20 = vector.load %arg1[%c7, %c0_14, %c0_15] : memref<9x128x128xbf16, #tpu.memory_space<vmem>>, vector<1x128x128xbf16>
    %21 = vector.shape_cast %20 : vector<1x128x128xbf16> to vector<128x128xbf16>
    %22 = arith.maximumf %19, %21 : vector<128x128xbf16>
    %c8 = arith.constant 8 : index
    %c0_16 = arith.constant 0 : index
    %c0_17 = arith.constant 0 : index
    %23 = vector.load %arg1[%c8, %c0_16, %c0_17] : memref<9x128x128xbf16, #tpu.memory_space<vmem>>, vector<1x128x128xbf16>
    %24 = vector.shape_cast %23 : vector<1x128x128xbf16> to vector<128x128xbf16>
    %25 = arith.maximumf %22, %24 : vector<128x128xbf16>
    %c0_18 = arith.constant 0 : index
    %c0_19 = arith.constant 0 : index
    %26 = vector.load %arg2[%c0_18, %c0_19] : memref<128x128xbf16, #tpu.memory_space<vmem>>, vector<128x128xbf16>
    tpu.vector_store %arg2[%c0_18, %c0_19], %25 {strides = array<i32>} : memref<128x128xbf16, #tpu.memory_space<vmem>>, vector<128x128xbf16>,
    return
  }
  func.func @transform_0(%arg0: i32) -> (i32, i32, i32) {
    %c0_i32 = arith.constant 0 : i32
    %c0_i32_0 = arith.constant 0 : i32
    %c0_i32_1 = arith.constant 0 : i32
    return %c0_i32, %arg0, %c0_i32_0 : i32, i32, i32
  }
  func.func @transform_1(%arg0: i32) -> (i32, i32) {
    %c0_i32 = arith.constant 0 : i32
    %c0_i32_0 = arith.constant 0 : i32
    return %arg0, %c0_i32 : i32, i32
  }
}

module attributes {stable_mosaic.version = 11 : i64} {
  func.func @_matmul_bn_kernel(%arg0: i32, %arg1: memref<128x1152xbf16, #tpu.memory_space<vmem>>, %arg2: memref<1152x128xbf16, #tpu.memory_space<vmem>>, %arg3: memref<1x128xf32, #tpu.memory_space<vmem>>, %arg4: memref<1x128xf32, #tpu.memory_space<vmem>>, %arg5: memref<128x128xbf16, #tpu.memory_space<vmem>>) attributes {dimension_semantics = [#tpu.dimension_semantics<parallel>], iteration_bounds = array<i64: 1>, scalar_prefetch = 0 : i64, scratch_operands = 0 : i64, tpu.core_type = #tpu.core_type<tc>, window_params = [{transform_indices = @transform_0, window_bounds = array<i64: 128, 1152>}, {pipeline_mode = #tpu.pipeline_mode<synchronous>, transform_indices = @transform_1, window_bounds = array<i64: 1152, 128>}, {pipeline_mode = #tpu.pipeline_mode<synchronous>, transform_indices = @transform_2, window_bounds = array<i64: 1, 128>}, {pipeline_mode = #tpu.pipeline_mode<synchronous>, transform_indices = @transform_3, window_bounds = array<i64: 1, 128>}, {transform_indices = @transform_4, window_bounds = array<i64: 128, 128>}]} {
    %c0 = arith.constant 0 : index
    %c0_0 = arith.constant 0 : index
    %0 = vector.load %arg1[%c0, %c0_0] : memref<128x1152xbf16, #tpu.memory_space<vmem>>, vector<128x1152xbf16>
    %c0_1 = arith.constant 0 : index
    %c0_2 = arith.constant 0 : index
    %1 = vector.load %arg2[%c0_1, %c0_2] : memref<1152x128xbf16, #tpu.memory_space<vmem>>, vector<1152x128xbf16>
    %cst = arith.constant dense<0.000000e+00> : vector<128x128xf32>
    %2 = tpu.matmul %0, %1, %cst {dimension_numbers = #tpu.dot_dimension_numbers<[1], [0], [0], [1], [0, 0, 1, 1], [], []>} : vector<128x1152xbf16>, vector<1152x128xbf16>, vector<128x128xf32> -> vector<128x128xf32>
    %c0_3 = arith.constant 0 : index
    %c0_4 = arith.constant 0 : index
    %3 = vector.load %arg3[%c0_3, %c0_4] : memref<1x128xf32, #tpu.memory_space<vmem>>, vector<1x128xf32>
    %4 = vector.broadcast %3 : vector<1x128xf32> to vector<128x128xf32>
    %5 = arith.mulf %2, %4 : vector<128x128xf32>
    %c0_5 = arith.constant 0 : index
    %c0_6 = arith.constant 0 : index
    %6 = vector.load %arg4[%c0_5, %c0_6] : memref<1x128xf32, #tpu.memory_space<vmem>>, vector<1x128xf32>
    %7 = vector.broadcast %6 : vector<1x128xf32> to vector<128x128xf32>
    %8 = arith.addf %5, %7 : vector<128x128xf32>
    %cst_7 = arith.constant 0.000000e+00 : f32
    %9 = vector.broadcast %cst_7 : f32 to vector<128x128xf32>
    %10 = arith.maximumf %8, %9 : vector<128x128xf32>
    %11 = arith.truncf %10 : vector<128x128xf32> to vector<128x128xbf16>
    %c0_8 = arith.constant 0 : index
    %c0_9 = arith.constant 0 : index
    %12 = vector.load %arg5[%c0_8, %c0_9] : memref<128x128xbf16, #tpu.memory_space<vmem>>, vector<128x128xbf16>
    tpu.vector_store %arg5[%c0_8, %c0_9], %11 {strides = array<i32>} : memref<128x128xbf16, #tpu.memory_space<vmem>>, vector<128x128xbf16>,
    return
  }
  func.func @transform_0(%arg0: i32) -> (i32, i32) {
    %c0_i32 = arith.constant 0 : i32
    %c0_i32_0 = arith.constant 0 : i32
    return %arg0, %c0_i32 : i32, i32
  }
  func.func @transform_1(%arg0: i32) -> (i32, i32) {
    %c0_i32 = arith.constant 0 : i32
    %c0_i32_0 = arith.constant 0 : i32
    %c0_i32_1 = arith.constant 0 : i32
    return %c0_i32, %c0_i32_0 : i32, i32
  }
  func.func @transform_2(%arg0: i32) -> (i32, i32) {
    %c0_i32 = arith.constant 0 : i32
    %c0_i32_0 = arith.constant 0 : i32
    %c0_i32_1 = arith.constant 0 : i32
    return %c0_i32, %c0_i32_0 : i32, i32
  }
  func.func @transform_3(%arg0: i32) -> (i32, i32) {
    %c0_i32 = arith.constant 0 : i32
    %c0_i32_0 = arith.constant 0 : i32
    %c0_i32_1 = arith.constant 0 : i32
    return %c0_i32, %c0_i32_0 : i32, i32
  }
  func.func @transform_4(%arg0: i32) -> (i32, i32) {
    %c0_i32 = arith.constant 0 : i32
    %c0_i32_0 = arith.constant 0 : i32
    return %arg0, %c0_i32 : i32, i32
  }
}

module attributes {stable_mosaic.version = 11 : i64} {
  func.func @_matmul_bn_kernel(%arg0: i32, %arg1: memref<128x128xbf16, #tpu.memory_space<vmem>>, %arg2: memref<128x128xbf16, #tpu.memory_space<vmem>>, %arg3: memref<1x128xf32, #tpu.memory_space<vmem>>, %arg4: memref<1x128xf32, #tpu.memory_space<vmem>>, %arg5: memref<128x128xbf16, #tpu.memory_space<vmem>>) attributes {dimension_semantics = [#tpu.dimension_semantics<parallel>], iteration_bounds = array<i64: 1>, scalar_prefetch = 0 : i64, scratch_operands = 0 : i64, tpu.core_type = #tpu.core_type<tc>, window_params = [{transform_indices = @transform_0, window_bounds = array<i64: 128, 128>}, {pipeline_mode = #tpu.pipeline_mode<synchronous>, transform_indices = @transform_1, window_bounds = array<i64: 128, 128>}, {pipeline_mode = #tpu.pipeline_mode<synchronous>, transform_indices = @transform_2, window_bounds = array<i64: 1, 128>}, {pipeline_mode = #tpu.pipeline_mode<synchronous>, transform_indices = @transform_3, window_bounds = array<i64: 1, 128>}, {transform_indices = @transform_4, window_bounds = array<i64: 128, 128>}]} {
    %c0 = arith.constant 0 : index
    %c0_0 = arith.constant 0 : index
    %0 = vector.load %arg1[%c0, %c0_0] : memref<128x128xbf16, #tpu.memory_space<vmem>>, vector<128x128xbf16>
    %c0_1 = arith.constant 0 : index
    %c0_2 = arith.constant 0 : index
    %1 = vector.load %arg2[%c0_1, %c0_2] : memref<128x128xbf16, #tpu.memory_space<vmem>>, vector<128x128xbf16>
    %cst = arith.constant dense<0.000000e+00> : vector<128x128xf32>
    %2 = tpu.matmul %0, %1, %cst {dimension_numbers = #tpu.dot_dimension_numbers<[1], [0], [0], [1], [0, 0, 1, 1], [], []>} : vector<128x128xbf16>, vector<128x128xbf16>, vector<128x128xf32> -> vector<128x128xf32>
    %c0_3 = arith.constant 0 : index
    %c0_4 = arith.constant 0 : index
    %3 = vector.load %arg3[%c0_3, %c0_4] : memref<1x128xf32, #tpu.memory_space<vmem>>, vector<1x128xf32>
    %4 = vector.broadcast %3 : vector<1x128xf32> to vector<128x128xf32>
    %5 = arith.mulf %2, %4 : vector<128x128xf32>
    %c0_5 = arith.constant 0 : index
    %c0_6 = arith.constant 0 : index
    %6 = vector.load %arg4[%c0_5, %c0_6] : memref<1x128xf32, #tpu.memory_space<vmem>>, vector<1x128xf32>
    %7 = vector.broadcast %6 : vector<1x128xf32> to vector<128x128xf32>
    %8 = arith.addf %5, %7 : vector<128x128xf32>
    %9 = arith.truncf %8 : vector<128x128xf32> to vector<128x128xbf16>
    %c0_7 = arith.constant 0 : index
    %c0_8 = arith.constant 0 : index
    %10 = vector.load %arg5[%c0_7, %c0_8] : memref<128x128xbf16, #tpu.memory_space<vmem>>, vector<128x128xbf16>
    tpu.vector_store %arg5[%c0_7, %c0_8], %9 {strides = array<i32>} : memref<128x128xbf16, #tpu.memory_space<vmem>>, vector<128x128xbf16>,
    return
  }
  func.func @transform_0(%arg0: i32) -> (i32, i32) {
    %c0_i32 = arith.constant 0 : i32
    %c0_i32_0 = arith.constant 0 : i32
    return %arg0, %c0_i32 : i32, i32
  }
  func.func @transform_1(%arg0: i32) -> (i32, i32) {
    %c0_i32 = arith.constant 0 : i32
    %c0_i32_0 = arith.constant 0 : i32
    %c0_i32_1 = arith.constant 0 : i32
    return %c0_i32, %c0_i32_0 : i32, i32
  }
  func.func @transform_2(%arg0: i32) -> (i32, i32) {
    %c0_i32 = arith.constant 0 : i32
    %c0_i32_0 = arith.constant 0 : i32
    %c0_i32_1 = arith.constant 0 : i32
    return %c0_i32, %c0_i32_0 : i32, i32
  }
  func.func @transform_3(%arg0: i32) -> (i32, i32) {
    %c0_i32 = arith.constant 0 : i32
    %c0_i32_0 = arith.constant 0 : i32
    %c0_i32_1 = arith.constant 0 : i32
    return %c0_i32, %c0_i32_0 : i32, i32
  }
  func.func @transform_4(%arg0: i32) -> (i32, i32) {
    %c0_i32 = arith.constant 0 : i32
    %c0_i32_0 = arith.constant 0 : i32
    return %arg0, %c0_i32 : i32, i32
  }
}

module attributes {stable_mosaic.version = 11 : i64} {
  func.func @_gap_fc_kernel(%arg0: memref<2x64x128xbf16, #tpu.memory_space<vmem>>, %arg1: memref<128x128xf32, #tpu.memory_space<vmem>>, %arg2: memref<1x128xf32, #tpu.memory_space<vmem>>, %arg3: memref<2x128xf32, #tpu.memory_space<vmem>>) attributes {dimension_semantics = [], scalar_prefetch = 0 : i64, scratch_operands = 0 : i64, tpu.core_type = #tpu.core_type<tc>} {
    %c0 = arith.constant 0 : index
    %c0_0 = arith.constant 0 : index
    %c0_1 = arith.constant 0 : index
    %0 = vector.load %arg0[%c0, %c0_0, %c0_1] : memref<2x64x128xbf16, #tpu.memory_space<vmem>>, vector<2x64x128xbf16>
    %1 = arith.extf %0 : vector<2x64x128xbf16> to vector<2x64x128xf32>
    %cst = arith.constant dense<0.000000e+00> : vector<2x128xf32>
    %2 = vector.multi_reduction <add>, %1, %cst [1] : vector<2x64x128xf32> to vector<2x128xf32>
    %cst_2 = arith.constant 6.400000e+01 : f32
    %3 = vector.broadcast %cst_2 : f32 to vector<2x128xf32>
    %4 = arith.divf %2, %3 : vector<2x128xf32>
    %c0_3 = arith.constant 0 : index
    %c0_4 = arith.constant 0 : index
    %5 = vector.load %arg1[%c0_3, %c0_4] : memref<128x128xf32, #tpu.memory_space<vmem>>, vector<128x128xf32>
    %cst_5 = arith.constant dense<0.000000e+00> : vector<2x128xf32>
    %6 = tpu.matmul %4, %5, %cst_5 {dimension_numbers = #tpu.dot_dimension_numbers<[1], [0], [0], [1], [0, 0, 1, 1], [], []>} : vector<2x128xf32>, vector<128x128xf32>, vector<2x128xf32> -> vector<2x128xf32>
    %c0_6 = arith.constant 0 : index
    %c0_7 = arith.constant 0 : index
    %7 = vector.load %arg2[%c0_6, %c0_7] : memref<1x128xf32, #tpu.memory_space<vmem>>, vector<1x128xf32>
    %8 = vector.broadcast %7 : vector<1x128xf32> to vector<2x128xf32>
    %9 = arith.addf %6, %8 : vector<2x128xf32>
    %c0_8 = arith.constant 0 : index
    %c0_9 = arith.constant 0 : index
    %10 = vector.load %arg3[%c0_8, %c0_9] : memref<2x128xf32, #tpu.memory_space<vmem>>, vector<2x128xf32>
    tpu.vector_store %arg3[%c0_8, %c0_9], %9 {strides = array<i32>} : memref<2x128xf32, #tpu.memory_space<vmem>>, vector<2x128xf32>,
    return
  }
}

module attributes {stable_mosaic.version = 11 : i64} {
  func.func @_matmul_bn_add_relu_kernel(%arg0: i32, %arg1: memref<128x128xbf16, #tpu.memory_space<vmem>>, %arg2: memref<128x128xbf16, #tpu.memory_space<vmem>>, %arg3: memref<1x128xf32, #tpu.memory_space<vmem>>, %arg4: memref<1x128xf32, #tpu.memory_space<vmem>>, %arg5: memref<128x128xbf16, #tpu.memory_space<vmem>>, %arg6: memref<128x128xbf16, #tpu.memory_space<vmem>>) attributes {dimension_semantics = [#tpu.dimension_semantics<parallel>], iteration_bounds = array<i64: 1>, scalar_prefetch = 0 : i64, scratch_operands = 0 : i64, tpu.core_type = #tpu.core_type<tc>, window_params = [{transform_indices = @transform_0, window_bounds = array<i64: 128, 128>}, {pipeline_mode = #tpu.pipeline_mode<synchronous>, transform_indices = @transform_1, window_bounds = array<i64: 128, 128>}, {pipeline_mode = #tpu.pipeline_mode<synchronous>, transform_indices = @transform_2, window_bounds = array<i64: 1, 128>}, {pipeline_mode = #tpu.pipeline_mode<synchronous>, transform_indices = @transform_3, window_bounds = array<i64: 1, 128>}, {transform_indices = @transform_4, window_bounds = array<i64: 128, 128>}, {transform_indices = @transform_5, window_bounds = array<i64: 128, 128>}]} {
    %c0 = arith.constant 0 : index
    %c0_0 = arith.constant 0 : index
    %0 = vector.load %arg1[%c0, %c0_0] : memref<128x128xbf16, #tpu.memory_space<vmem>>, vector<128x128xbf16>
    %c0_1 = arith.constant 0 : index
    %c0_2 = arith.constant 0 : index
    %1 = vector.load %arg2[%c0_1, %c0_2] : memref<128x128xbf16, #tpu.memory_space<vmem>>, vector<128x128xbf16>
    %cst = arith.constant dense<0.000000e+00> : vector<128x128xf32>
    %2 = tpu.matmul %0, %1, %cst {dimension_numbers = #tpu.dot_dimension_numbers<[1], [0], [0], [1], [0, 0, 1, 1], [], []>} : vector<128x128xbf16>, vector<128x128xbf16>, vector<128x128xf32> -> vector<128x128xf32>
    %c0_3 = arith.constant 0 : index
    %c0_4 = arith.constant 0 : index
    %3 = vector.load %arg3[%c0_3, %c0_4] : memref<1x128xf32, #tpu.memory_space<vmem>>, vector<1x128xf32>
    %4 = vector.broadcast %3 : vector<1x128xf32> to vector<128x128xf32>
    %5 = arith.mulf %2, %4 : vector<128x128xf32>
    %c0_5 = arith.constant 0 : index
    %c0_6 = arith.constant 0 : index
    %6 = vector.load %arg4[%c0_5, %c0_6] : memref<1x128xf32, #tpu.memory_space<vmem>>, vector<1x128xf32>
    %7 = vector.broadcast %6 : vector<1x128xf32> to vector<128x128xf32>
    %8 = arith.addf %5, %7 : vector<128x128xf32>
    %c0_7 = arith.constant 0 : index
    %c0_8 = arith.constant 0 : index
    %9 = vector.load %arg5[%c0_7, %c0_8] : memref<128x128xbf16, #tpu.memory_space<vmem>>, vector<128x128xbf16>
    %10 = arith.extf %9 : vector<128x128xbf16> to vector<128x128xf32>
    %11 = arith.addf %8, %10 : vector<128x128xf32>
    %cst_9 = arith.constant 0.000000e+00 : f32
    %12 = vector.broadcast %cst_9 : f32 to vector<128x128xf32>
    %13 = arith.maximumf %11, %12 : vector<128x128xf32>
    %14 = arith.truncf %13 : vector<128x128xf32> to vector<128x128xbf16>
    %c0_10 = arith.constant 0 : index
    %c0_11 = arith.constant 0 : index
    %15 = vector.load %arg6[%c0_10, %c0_11] : memref<128x128xbf16, #tpu.memory_space<vmem>>, vector<128x128xbf16>
    tpu.vector_store %arg6[%c0_10, %c0_11], %14 {strides = array<i32>} : memref<128x128xbf16, #tpu.memory_space<vmem>>, vector<128x128xbf16>,
    return
  }
  func.func @transform_0(%arg0: i32) -> (i32, i32) {
    %c0_i32 = arith.constant 0 : i32
    %c0_i32_0 = arith.constant 0 : i32
    return %arg0, %c0_i32 : i32, i32
  }
  func.func @transform_1(%arg0: i32) -> (i32, i32) {
    %c0_i32 = arith.constant 0 : i32
    %c0_i32_0 = arith.constant 0 : i32
    %c0_i32_1 = arith.constant 0 : i32
    return %c0_i32, %c0_i32_0 : i32, i32
  }
  func.func @transform_2(%arg0: i32) -> (i32, i32) {
    %c0_i32 = arith.constant 0 : i32
    %c0_i32_0 = arith.constant 0 : i32
    %c0_i32_1 = arith.constant 0 : i32
    return %c0_i32, %c0_i32_0 : i32, i32
  }
  func.func @transform_3(%arg0: i32) -> (i32, i32) {
    %c0_i32 = arith.constant 0 : i32
    %c0_i32_0 = arith.constant 0 : i32
    %c0_i32_1 = arith.constant 0 : i32
    return %c0_i32, %c0_i32_0 : i32, i32
  }
  func.func @transform_4(%arg0: i32) -> (i32, i32) {
    %c0_i32 = arith.constant 0 : i32
    %c0_i32_0 = arith.constant 0 : i32
    return %arg0, %c0_i32 : i32, i32
  }
  func.func @transform_5(%arg0: i32) -> (i32, i32) {
    %c0_i32 = arith.constant 0 : i32
    %c0_i32_0 = arith.constant 0 : i32
    return %arg0, %c0_i32 : i32, i32
  }
}

</mosaic_0001>

<bundles_post_ra>
// kernel: semantic_encoder_forward.7
= control target key start
LH: loop header
LB: loop body
LE: loop exit
PB: predicated region body
PF: predicated region fallthrough
CT: control target
= control target key end

     0   :  { %vm367_vm0 = vcmask 1040384   ;;  %v1734_v1 = vmov 0   ;;  %vm270_vm1 = vcmask 400384   ;;  %s2134_s1 = inlined_call_operand.vmem [shape: bf16[49,128], index: 1, kind: input, shape index: {}]   ;;  %s2135_s0 = inlined_call_operand.vmem [shape: bf16[512,49], index: 0, kind: input, shape index: {}]   ;;  %s2136_s2 = inlined_call_operand.vmem [shape: f32[1,128], index: 2, kind: input, shape index: {}]   ;;  %s2137_s3 = inlined_call_operand.vmem [shape: f32[1,128], index: 3, kind: input, shape index: {}]   ;;  %s2138_s4 = inlined_call_operand.vmem [shape: bf16[512,128], index: 4, kind: output, shape index: {}]  }
   0x1   :  { %v1698_v0 = vld [vmem:[%s2134_s1 + $0x18] ss:$0 sps:$4 sm:$0x11]   ;;  %v369_v2 = vsel %vm367_vm0, 65535, %v1734_v1  ;;  %v1699_v4 = vld [vmem:[%s2134_s1 + $0x10] sm:$0xff]   ;;  %v1702_v5 = vld [vmem:[%s2135_s0] sm:$0xff]  }
   0x2   :  { %v371_v3 = vand.u32 %v1698_v0, %v369_v2  ;;  %v1703_v6 = vld [vmem:[%s2135_s0 + $0x80] sm:$0xff]   ;;  %v1700_v7 = vld [vmem:[%s2134_s1 + $0x8] sm:$0xff]   ;;  %1625 = vmatprep.mubr.msk.bf16.mxu0 %vm270_vm1, %v1702_v5  ;;  %v1706_v11 = vld [vmem:[%s2135_s0 + $0x10] sm:$0xff]  }
   0x3   :  { %1657 = vmatprep.mubr.msk.bf16.mxu1 %vm270_vm1, %v1703_v6  ;;  %v1701_v8 = vld [vmem:[%s2134_s1] sm:$0xff]   ;;  %v1704_v9 = vld [vmem:[%s2135_s0 + $0x8] sm:$0xff]   ;;  %v1707_v12 = vld [vmem:[%s2135_s0 + $0x90] sm:$0xff]  }
   0x4   :  { %1617 = vmatprep.subr.bf16.mxu0 %v371_v3  ;;  %1689 = vmatprep.subr.bf16.mxu1 %v371_v3  ;;  %v1705_v10 = vld [vmem:[%s2135_s0 + $0x88] sm:$0xff]   ;;  %v1708_v13 = vld [vmem:[%s2135_s0 + $0x18] sm:$0xff]   ;;  %v1710_v15 = vld [vmem:[%s2135_s0 + $0x20] sm:$0xff]  }
   0x5   :  { %1618 = vmatpush3.bf16.msra.mxu0 %v371_v3  ;;  %1693 = vmatpush3.bf16.msra.mxu1 %v371_v3  ;;  %v1709_v14 = vld [vmem:[%s2135_s0 + $0x98] sm:$0xff]   ;;  %v1711_v16 = vld [vmem:[%s2135_s0 + $0xa0] sm:$0xff]   ;;  %v1712_v17 = vld [vmem:[%s2135_s0 + $0x28] sm:$0xff]  }
   0x6   :  { %1619 = vmatprep.subr.bf16.mxu0 %v1699_v4  ;;  %1690 = vmatprep.subr.bf16.mxu1 %v1699_v4  ;;  %v1713_v18 = vld [vmem:[%s2135_s0 + $0xa8] sm:$0xff]   ;;  %v1714_v19 = vld [vmem:[%s2135_s0 + $0x30] sm:$0xff]   ;;  %v1716_v21 = vld [vmem:[%s2135_s0 + $0x38] sm:$0xff]  }
   0x7   :  { %v1715_v20 = vld [vmem:[%s2135_s0 + $0xb0] sm:$0xff]   ;;  %v1717_v22 = vld [vmem:[%s2135_s0 + $0xb8] sm:$0xff]   ;;  %v1718_v23 = vld [vmem:[%s2135_s0 + $0x40] sm:$0xff]  }
   0x8   :  { %v1719_v24 = vld [vmem:[%s2135_s0 + $0xc0] sm:$0xff]   ;;  %v1720_v25 = vld [vmem:[%s2135_s0 + $0x48] sm:$0xff]   ;;  %v1722_v27 = vld [vmem:[%s2135_s0 + $0x50] sm:$0xff]  }
   0x9   :  { %1620 = vmatpush3.bf16.msra.mxu0 %v1699_v4  ;;  %1694 = vmatpush3.bf16.msra.mxu1 %v1699_v4  ;;  %v1721_v26 = vld [vmem:[%s2135_s0 + $0xc8] sm:$0xff]   ;;  %v1723_v28 = vld [vmem:[%s2135_s0 + $0xd0] sm:$0xff]   ;;  %v1724_v29 = vld [vmem:[%s2135_s0 + $0x58] sm:$0xff]  }
   0xa   :  { %1621 = vmatprep.subr.bf16.mxu0 %v1700_v7  ;;  %1691 = vmatprep.subr.bf16.mxu1 %v1700_v7  ;;  %v1725_v30 = vld [vmem:[%s2135_s0 + $0xd8] sm:$0xff]   ;;  %v1726_v31 = vld [vmem:[%s2135_s0 + $0x60] sm:$0xff]   ;;  %v1728_v33 = vld [vmem:[%s2135_s0 + $0x68] sm:$0xff]  }
   0xb   :  { %v1727_v32 = vld [vmem:[%s2135_s0 + $0xe0] sm:$0xff]   ;;  %v1729_v34 = vld [vmem:[%s2135_s0 + $0xe8] sm:$0xff]   ;;  %v1730_v35 = vld [vmem:[%s2135_s0 + $0x70] sm:$0xff]  }
   0xc   :  { %v1731_v36 = vld [vmem:[%s2135_s0 + $0xf0] sm:$0xff]   ;;  %v1732_v37 = vld [vmem:[%s2135_s0 + $0x78] sm:$0xff]   ;;  %v1903_v39 = vld [vmem:[%s2136_s2] ss:$0 sm:$0xff] }
   0xd   :  { %1622 = vmatpush3.bf16.msra.mxu0 %v1700_v7  ;;  %1695 = vmatpush3.bf16.msra.mxu1 %v1700_v7  ;;  %v1733_v38 = vld [vmem:[%s2135_s0 + $0xf8] sm:$0xff]   ;;  %v1910_v44 = vld [vmem:[%s2137_s3] ss:$0 sm:$0xff] }
   0xe   :  { %1623 = vmatprep.subr.bf16.mxu0 %v1701_v8  ;;  %1692 = vmatprep.subr.bf16.mxu1 %v1701_v8 }
  0x11   :  { %1624 = vmatpush3.bf16.msra.mxu0 %v1701_v8  ;;  %1696 = vmatpush3.bf16.msra.mxu1 %v1701_v8 }
  0x14   :  { %1626 = vmatmul.mubr.msk.bf16.vlgmr.msra.gmra.mxu0 %vm270_vm1, %v1704_v9  ;;  %1658 = vmatmul.mubr.msk.bf16.vlgmr.msra.gmra.mxu1 %vm270_vm1, %v1705_v10 }
  0x15   :  { %1629 = vmatprep.mubr.msk.bf16.mxu0 %vm270_vm1, %v1706_v11  ;;  %1661 = vmatprep.mubr.msk.bf16.mxu1 %vm270_vm1, %v1707_v12 }
  0x1c   :  { %1630 = vmatmul.mubr.msk.bf16.gmra.mxu0 %vm270_vm1, %v1708_v13  ;;  %1662 = vmatmul.mubr.msk.bf16.gmra.mxu1 %vm270_vm1, %v1709_v14 }
  0x1d   :  { %1633 = vmatprep.mubr.msk.bf16.mxu0 %vm270_vm1, %v1710_v15  ;;  %1665 = vmatprep.mubr.msk.bf16.mxu1 %vm270_vm1, %v1711_v16 }
  0x24   :  { %1634 = vmatmul.mubr.msk.bf16.gmra.mxu0 %vm270_vm1, %v1712_v17  ;;  %1666 = vmatmul.mubr.msk.bf16.gmra.mxu1 %vm270_vm1, %v1713_v18 }
  0x25   :  { %1637 = vmatprep.mubr.msk.bf16.mxu0 %vm270_vm1, %v1714_v19  ;;  %1669 = vmatprep.mubr.msk.bf16.mxu1 %vm270_vm1, %v1715_v20 }
  0x2c   :  { %1638 = vmatmul.mubr.msk.bf16.gmra.mxu0 %vm270_vm1, %v1716_v21  ;;  %1670 = vmatmul.mubr.msk.bf16.gmra.mxu1 %vm270_vm1, %v1717_v22 }
  0x2d   :  { %1641 = vmatprep.mubr.msk.bf16.mxu0 %vm270_vm1, %v1718_v23  ;;  %1673 = vmatprep.mubr.msk.bf16.mxu1 %vm270_vm1, %v1719_v24 }
  0x34   :  { %1642 = vmatmul.mubr.msk.bf16.gmra.mxu0 %vm270_vm1, %v1720_v25  ;;  %1674 = vmatmul.mubr.msk.bf16.gmra.mxu1 %vm270_vm1, %v1721_v26 }
  0x35   :  { %1645 = vmatprep.mubr.msk.bf16.mxu0 %vm270_vm1, %v1722_v27  ;;  %1677 = vmatprep.mubr.msk.bf16.mxu1 %vm270_vm1, %v1723_v28 }
  0x3c   :  { %1646 = vmatmul.mubr.msk.bf16.gmra.mxu0 %vm270_vm1, %v1724_v29  ;;  %1678 = vmatmul.mubr.msk.bf16.gmra.mxu1 %vm270_vm1, %v1725_v30 }
  0x3d   :  { %1649 = vmatprep.mubr.msk.bf16.mxu0 %vm270_vm1, %v1726_v31  ;;  %1681 = vmatprep.mubr.msk.bf16.mxu1 %vm270_vm1, %v1727_v32 }
  0x44   :  { %1650 = vmatmul.mubr.msk.bf16.gmra.mxu0 %vm270_vm1, %v1728_v33  ;;  %1682 = vmatmul.mubr.msk.bf16.gmra.mxu1 %vm270_vm1, %v1729_v34 }
  0x45   :  { %1653 = vmatprep.mubr.msk.bf16.mxu0 %vm270_vm1, %v1730_v35  ;;  %1685 = vmatprep.mubr.msk.bf16.mxu1 %vm270_vm1, %v1731_v36 }
  0x4c   :  { %1654 = vmatmul.mubr.msk.bf16.gmra.mxu0 %vm270_vm1, %v1732_v37  ;;  %1686 = vmatmul.mubr.msk.bf16.gmra.mxu1 %vm270_vm1, %v1733_v38 }
  0xd4   :  { %v1627_v40 = vpop.f32.mrf.mxu0  ;;  %v1659_v41 = vpop.f32.mrf.mxu1 }
  0xd5   :  { %v671_v42 = vmul.f32 %v1627_v40, %v1903_v39  ;;  %v703_v43 = vmul.f32 %v1659_v41, %v1903_v39 }
  0xd6   :  { %v407_v45 = vpop.f32.mrf.mxu0  ;;  %v535_v46 = vpop.f32.mrf.mxu1 }
  0xd7   :  { %v669_v47 = vmul.f32 %v1903_v39, %v407_v45  ;;  %v701_v48 = vmul.f32 %v1903_v39, %v535_v46  ;;  %v742_v51 = vadd.f32 %v1910_v44, %v671_v42  ;;  %v774_v52 = vadd.f32 %v1910_v44, %v703_v43 }
  0xd8   :  { %v1628_v49 = vpop.f32.mrf.mxu0  ;;  %v1660_v50 = vpop.f32.mrf.mxu1 }
  0xd9   :  { %v672_v53 = vmul.f32 %v1628_v49, %v1903_v39  ;;  %v704_v54 = vmul.f32 %v1660_v50, %v1903_v39  ;;  %v740_v57 = vadd.f32 %v1910_v44, %v669_v47  ;;  %v772_v58 = vadd.f32 %v1910_v44, %v701_v48 }
  0xda   :  { %v410_v55 = vpop.f32.mrf.mxu0  ;;  %v538_v56 = vpop.f32.mrf.mxu1  ;;  %v806_v1 = vmax.f32 %v742_v51, 0.0  ;;  %v838_v2 = vmax.f32 %v774_v52, 0.0 }
  0xdb   :  { %v670_v59 = vmul.f32 %v1903_v39, %v410_v55  ;;  %v702_v60 = vmul.f32 %v1903_v39, %v538_v56  ;;  %v743_v61 = vadd.f32 %v1910_v44, %v672_v53  ;;  %v775_v62 = vadd.f32 %v1910_v44, %v704_v54 }
  0xdc   :  { %v1631_v63 = vpop.f32.mrf.mxu0  ;;  %v1663_v0 = vpop.f32.mrf.mxu1  ;;  %v804_v11 = vmax.f32 %v740_v57, 0.0  ;;  %v836_v12 = vmax.f32 %v772_v58, 0.0 }
  0xdd   :  { %v741_v3 = vadd.f32 %v1910_v44, %v670_v59  ;;  %v773_v4 = vadd.f32 %v1910_v44, %v702_v60  ;;  %v807_v5 = vmax.f32 %v743_v61, 0.0  ;;  %v839_v6 = vmax.f32 %v775_v62, 0.0 }
  0xde   :  { %v675_v7 = vmul.f32 %v1631_v63, %v1903_v39  ;;  %v707_v8 = vmul.f32 %v1663_v0, %v1903_v39  ;;  %v423_v9 = vpop.f32.mrf.mxu0  ;;  %v551_v10 = vpop.f32.mrf.mxu1 }
  0xdf   :  { %v805_v13 = vmax.f32 %v741_v3, 0.0  ;;  %v837_v14 = vmax.f32 %v773_v4, 0.0  ;;  %v1398_v15 = vpack.c.bf16 %v807_v5, %v806_v1  ;;  %v1478_v16 = vpack.c.bf16 %v839_v6, %v838_v2 }
  0xe0   :  { %v673_v17 = vmul.f32 %v1903_v39, %v423_v9  ;;  %v705_v18 = vmul.f32 %v1903_v39, %v551_v10  ;;  %v1632_v19 = vpop.f32.mrf.mxu0  ;;  %v1664_v20 = vpop.f32.mrf.mxu1  ;;  %v746_v23 = vadd.f32 %v1910_v44, %v675_v7  ;;  %v778_v24 = vadd.f32 %v1910_v44, %v707_v8 }
  0xe1   :  { %v1393_v21 = vpack.c.bf16 %v805_v13, %v804_v11  ;;  %v1473_v22 = vpack.c.bf16 %v837_v14, %v836_v12  ;;  %1550 = vst [vmem:[%s2138_s4 + $0x8] sm:$0xff] %v1398_v15   ;;  %1566 = vst [vmem:[%s2138_s4 + $0x88] sm:$0xff] %v1478_v16   ;;  %v676_v25 = vmul.f32 %v1632_v19, %v1903_v39 }
  0xe2   :  { %v708_v26 = vmul.f32 %v1664_v20, %v1903_v39  ;;  %v426_v27 = vpop.f32.mrf.mxu0  ;;  %v554_v28 = vpop.f32.mrf.mxu1  ;;  %v744_v29 = vadd.f32 %v1910_v44, %v673_v17  ;;  %v776_v30 = vadd.f32 %v1910_v44, %v705_v18  ;;  %v810_v42 = vmax.f32 %v746_v23, 0.0 }
  0xe3   :  { %1394 = vst [vmem:[%s2138_s4] sm:$0xff] %v1393_v21   ;;  %1565 = vst [vmem:[%s2138_s4 + $0x80] sm:$0xff] %v1473_v22   ;;  %v674_v31 = vmul.f32 %v1903_v39, %v426_v27  ;;  %v706_v32 = vmul.f32 %v1903_v39, %v554_v28  ;;  %v747_v33 = vadd.f32 %v1910_v44, %v676_v25  ;;  %v842_v43 = vmax.f32 %v778_v24, 0.0 }
  0xe4   :  { %v779_v34 = vadd.f32 %v1910_v44, %v708_v26  ;;  %v1635_v35 = vpop.f32.mrf.mxu0  ;;  %v1667_v36 = vpop.f32.mrf.mxu1  ;;  %v808_v49 = vmax.f32 %v744_v29, 0.0  ;;  %v840_v50 = vmax.f32 %v776_v30, 0.0 }
  0xe5   :  { %v745_v37 = vadd.f32 %v1910_v44, %v674_v31  ;;  %v777_v38 = vadd.f32 %v1910_v44, %v706_v32  ;;  %v679_v40 = vmul.f32 %v1635_v35, %v1903_v39  ;;  %v711_v41 = vmul.f32 %v1667_v36, %v1903_v39 }
  0xe6   :  { %v811_v45 = vmax.f32 %v747_v33, 0.0  ;;  %v843_v46 = vmax.f32 %v779_v34, 0.0  ;;  %v439_v47 = vpop.f32.mrf.mxu0  ;;  %v567_v48 = vpop.f32.mrf.mxu1 }
  0xe7   :  { %v809_v51 = vmax.f32 %v745_v37, 0.0  ;;  %v841_v52 = vmax.f32 %v777_v38, 0.0  ;;  %v677_v55 = vmul.f32 %v1903_v39, %v439_v47  ;;  %v709_v56 = vmul.f32 %v1903_v39, %v567_v48 }
  0xe8   :  { %v1408_v53 = vpack.c.bf16 %v811_v45, %v810_v42  ;;  %v1488_v54 = vpack.c.bf16 %v843_v46, %v842_v43  ;;  %v1636_v57 = vpop.f32.mrf.mxu0  ;;  %v1668_v58 = vpop.f32.mrf.mxu1  ;;  %v750_v61 = vadd.f32 %v1910_v44, %v679_v40  ;;  %v782_v62 = vadd.f32 %v1910_v44, %v711_v41 }
  0xe9   :  { %v1403_v59 = vpack.c.bf16 %v809_v51, %v808_v49  ;;  %v1483_v60 = vpack.c.bf16 %v841_v52, %v840_v50  ;;  %v680_v63 = vmul.f32 %v1636_v57, %v1903_v39  ;;  %v712_v0 = vmul.f32 %v1668_v58, %v1903_v39 }
  0xea   :  { %1552 = vst [vmem:[%s2138_s4 + $0x18] sm:$0xff] %v1408_v53   ;;  %1568 = vst [vmem:[%s2138_s4 + $0x98] sm:$0xff] %v1488_v54   ;;  %v442_v1 = vpop.f32.mrf.mxu0  ;;  %v570_v2 = vpop.f32.mrf.mxu1  ;;  %v748_v3 = vadd.f32 %v1910_v44, %v677_v55  ;;  %v780_v4 = vadd.f32 %v1910_v44, %v709_v56  ;;  %v814_v11 = vmax.f32 %v750_v61, 0.0  ;;  %v846_v12 = vmax.f32 %v782_v62, 0.0 }
  0xeb   :  { %1551 = vst [vmem:[%s2138_s4 + $0x10] sm:$0xff] %v1403_v59   ;;  %1567 = vst [vmem:[%s2138_s4 + $0x90] sm:$0xff] %v1483_v60   ;;  %v678_v5 = vmul.f32 %v1903_v39, %v442_v1  ;;  %v710_v6 = vmul.f32 %v1903_v39, %v570_v2  ;;  %v751_v7 = vadd.f32 %v1910_v44, %v680_v63 }
  0xec   :  { %v783_v8 = vadd.f32 %v1910_v44, %v712_v0  ;;  %v1639_v9 = vpop.f32.mrf.mxu0  ;;  %v1671_v10 = vpop.f32.mrf.mxu1  ;;  %v812_v21 = vmax.f32 %v748_v3, 0.0  ;;  %v844_v22 = vmax.f32 %v780_v4, 0.0 }
  0xed   :  { %v749_v13 = vadd.f32 %v1910_v44, %v678_v5  ;;  %v781_v14 = vadd.f32 %v1910_v44, %v710_v6  ;;  %v815_v15 = vmax.f32 %v751_v7, 0.0  ;;  %v683_v17 = vmul.f32 %v1639_v9, %v1903_v39 }
  0xee   :  { %v847_v16 = vmax.f32 %v783_v8, 0.0  ;;  %v715_v18 = vmul.f32 %v1671_v10, %v1903_v39  ;;  %v455_v19 = vpop.f32.mrf.mxu0  ;;  %v583_v20 = vpop.f32.mrf.mxu1 }
  0xef   :  { %v813_v23 = vmax.f32 %v749_v13, 0.0  ;;  %v845_v24 = vmax.f32 %v781_v14, 0.0  ;;  %v1418_v25 = vpack.c.bf16 %v815_v15, %v814_v11  ;;  %v681_v27 = vmul.f32 %v1903_v39, %v455_v19 }
  0xf0   :  { %v1498_v26 = vpack.c.bf16 %v847_v16, %v846_v12  ;;  %v713_v28 = vmul.f32 %v1903_v39, %v583_v20  ;;  %v1640_v29 = vpop.f32.mrf.mxu0  ;;  %v1672_v30 = vpop.f32.mrf.mxu1  ;;  %v754_v33 = vadd.f32 %v1910_v44, %v683_v17  ;;  %v786_v34 = vadd.f32 %v1910_v44, %v715_v18 }
  0xf1   :  { %v1413_v31 = vpack.c.bf16 %v813_v23, %v812_v21  ;;  %v1493_v32 = vpack.c.bf16 %v845_v24, %v844_v22  ;;  %1554 = vst [vmem:[%s2138_s4 + $0x28] sm:$0xff] %v1418_v25   ;;  %v684_v35 = vmul.f32 %v1640_v29, %v1903_v39  ;;  %v716_v36 = vmul.f32 %v1672_v30, %v1903_v39 }
  0xf2   :  { %1570 = vst [vmem:[%s2138_s4 + $0xa8] sm:$0xff] %v1498_v26   ;;  %v458_v37 = vpop.f32.mrf.mxu0  ;;  %v586_v38 = vpop.f32.mrf.mxu1  ;;  %v752_v40 = vadd.f32 %v1910_v44, %v681_v27  ;;  %v784_v41 = vadd.f32 %v1910_v44, %v713_v28  ;;  %v818_v53 = vmax.f32 %v754_v33, 0.0  ;;  %v850_v54 = vmax.f32 %v786_v34, 0.0 }
  0xf3   :  { %1553 = vst [vmem:[%s2138_s4 + $0x20] sm:$0xff] %v1413_v31   ;;  %1569 = vst [vmem:[%s2138_s4 + $0xa0] sm:$0xff] %v1493_v32   ;;  %v682_v42 = vmul.f32 %v1903_v39, %v458_v37  ;;  %v714_v43 = vmul.f32 %v1903_v39, %v586_v38  ;;  %v755_v45 = vadd.f32 %v1910_v44, %v684_v35 }
  0xf4   :  { %v787_v46 = vadd.f32 %v1910_v44, %v716_v36  ;;  %v1643_v47 = vpop.f32.mrf.mxu0  ;;  %v1675_v48 = vpop.f32.mrf.mxu1  ;;  %v816_v59 = vmax.f32 %v752_v40, 0.0  ;;  %v848_v60 = vmax.f32 %v784_v41, 0.0 }
  0xf5   :  { %v753_v49 = vadd.f32 %v1910_v44, %v682_v42  ;;  %v785_v50 = vadd.f32 %v1910_v44, %v714_v43  ;;  %v687_v51 = vmul.f32 %v1643_v47, %v1903_v39  ;;  %v719_v52 = vmul.f32 %v1675_v48, %v1903_v39 }
  0xf6   :  { %v819_v55 = vmax.f32 %v755_v45, 0.0  ;;  %v851_v56 = vmax.f32 %v787_v46, 0.0  ;;  %v471_v57 = vpop.f32.mrf.mxu0  ;;  %v599_v58 = vpop.f32.mrf.mxu1 }
  0xf7   :  { %v817_v61 = vmax.f32 %v753_v49, 0.0  ;;  %v849_v62 = vmax.f32 %v785_v50, 0.0  ;;  %v685_v1 = vmul.f32 %v1903_v39, %v471_v57  ;;  %v717_v2 = vmul.f32 %v1903_v39, %v599_v58 }
  0xf8   :  { %v1428_v63 = vpack.c.bf16 %v819_v55, %v818_v53  ;;  %v1508_v0 = vpack.c.bf16 %v851_v56, %v850_v54  ;;  %v1644_v3 = vpop.f32.mrf.mxu0  ;;  %v1676_v4 = vpop.f32.mrf.mxu1  ;;  %v758_v7 = vadd.f32 %v1910_v44, %v687_v51  ;;  %v790_v8 = vadd.f32 %v1910_v44, %v719_v52 }
  0xf9   :  { %v1423_v5 = vpack.c.bf16 %v817_v61, %v816_v59  ;;  %v1503_v6 = vpack.c.bf16 %v849_v62, %v848_v60  ;;  %v688_v9 = vmul.f32 %v1644_v3, %v1903_v39  ;;  %v720_v10 = vmul.f32 %v1676_v4, %v1903_v39 }
  0xfa   :  { %1556 = vst [vmem:[%s2138_s4 + $0x38] sm:$0xff] %v1428_v63   ;;  %1572 = vst [vmem:[%s2138_s4 + $0xb8] sm:$0xff] %v1508_v0   ;;  %v474_v11 = vpop.f32.mrf.mxu0  ;;  %v602_v12 = vpop.f32.mrf.mxu1  ;;  %v756_v13 = vadd.f32 %v1910_v44, %v685_v1  ;;  %v788_v14 = vadd.f32 %v1910_v44, %v717_v2  ;;  %v822_v21 = vmax.f32 %v758_v7, 0.0  ;;  %v854_v22 = vmax.f32 %v790_v8, 0.0 }
  0xfb   :  { %1555 = vst [vmem:[%s2138_s4 + $0x30] sm:$0xff] %v1423_v5   ;;  %1571 = vst [vmem:[%s2138_s4 + $0xb0] sm:$0xff] %v1503_v6   ;;  %v686_v15 = vmul.f32 %v1903_v39, %v474_v11  ;;  %v718_v16 = vmul.f32 %v1903_v39, %v602_v12  ;;  %v759_v17 = vadd.f32 %v1910_v44, %v688_v9 }
  0xfc   :  { %v791_v18 = vadd.f32 %v1910_v44, %v720_v10  ;;  %v1647_v19 = vpop.f32.mrf.mxu0  ;;  %v1679_v20 = vpop.f32.mrf.mxu1  ;;  %v820_v31 = vmax.f32 %v756_v13, 0.0  ;;  %v852_v32 = vmax.f32 %v788_v14, 0.0 }
  0xfd   :  { %v757_v23 = vadd.f32 %v1910_v44, %v686_v15  ;;  %v789_v24 = vadd.f32 %v1910_v44, %v718_v16  ;;  %v823_v25 = vmax.f32 %v759_v17, 0.0  ;;  %v691_v27 = vmul.f32 %v1647_v19, %v1903_v39 }
  0xfe   :  { %v855_v26 = vmax.f32 %v791_v18, 0.0  ;;  %v723_v28 = vmul.f32 %v1679_v20, %v1903_v39  ;;  %v487_v29 = vpop.f32.mrf.mxu0  ;;  %v615_v30 = vpop.f32.mrf.mxu1 }
  0xff   :  { %v821_v33 = vmax.f32 %v757_v23, 0.0  ;;  %v853_v34 = vmax.f32 %v789_v24, 0.0  ;;  %v1438_v35 = vpack.c.bf16 %v823_v25, %v822_v21  ;;  %v689_v37 = vmul.f32 %v1903_v39, %v487_v29 }
 0x100   :  { %v1518_v36 = vpack.c.bf16 %v855_v26, %v854_v22  ;;  %v721_v38 = vmul.f32 %v1903_v39, %v615_v30  ;;  %v1648_v40 = vpop.f32.mrf.mxu0  ;;  %v1680_v41 = vpop.f32.mrf.mxu1  ;;  %v762_v45 = vadd.f32 %v1910_v44, %v691_v27  ;;  %v794_v46 = vadd.f32 %v1910_v44, %v723_v28 }
 0x101   :  { %v1433_v42 = vpack.c.bf16 %v821_v33, %v820_v31  ;;  %v1513_v43 = vpack.c.bf16 %v853_v34, %v852_v32  ;;  %1558 = vst [vmem:[%s2138_s4 + $0x48] sm:$0xff] %v1438_v35   ;;  %v692_v47 = vmul.f32 %v1648_v40, %v1903_v39  ;;  %v724_v48 = vmul.f32 %v1680_v41, %v1903_v39 }
 0x102   :  { %1574 = vst [vmem:[%s2138_s4 + $0xc8] sm:$0xff] %v1518_v36   ;;  %v490_v49 = vpop.f32.mrf.mxu0  ;;  %v618_v50 = vpop.f32.mrf.mxu1  ;;  %v760_v51 = vadd.f32 %v1910_v44, %v689_v37  ;;  %v792_v52 = vadd.f32 %v1910_v44, %v721_v38  ;;  %v826_v63 = vmax.f32 %v762_v45, 0.0  ;;  %v858_v0 = vmax.f32 %v794_v46, 0.0 }
 0x103   :  { %1557 = vst [vmem:[%s2138_s4 + $0x40] sm:$0xff] %v1433_v42   ;;  %1573 = vst [vmem:[%s2138_s4 + $0xc0] sm:$0xff] %v1513_v43   ;;  %v690_v53 = vmul.f32 %v1903_v39, %v490_v49  ;;  %v722_v54 = vmul.f32 %v1903_v39, %v618_v50  ;;  %v763_v55 = vadd.f32 %v1910_v44, %v692_v47 }
 0x104   :  { %v795_v56 = vadd.f32 %v1910_v44, %v724_v48  ;;  %v1651_v57 = vpop.f32.mrf.mxu0  ;;  %v1683_v58 = vpop.f32.mrf.mxu1  ;;  %v824_v5 = vmax.f32 %v760_v51, 0.0  ;;  %v856_v6 = vmax.f32 %v792_v52, 0.0 }
 0x105   :  { %v761_v59 = vadd.f32 %v1910_v44, %v690_v53  ;;  %v793_v60 = vadd.f32 %v1910_v44, %v722_v54  ;;  %v695_v61 = vmul.f32 %v1651_v57, %v1903_v39  ;;  %v727_v62 = vmul.f32 %v1683_v58, %v1903_v39 }
 0x106   :  { %v827_v1 = vmax.f32 %v763_v55, 0.0  ;;  %v859_v2 = vmax.f32 %v795_v56, 0.0  ;;  %v503_v3 = vpop.f32.mrf.mxu0  ;;  %v631_v4 = vpop.f32.mrf.mxu1 }
 0x107   :  { %v825_v7 = vmax.f32 %v761_v59, 0.0  ;;  %v857_v8 = vmax.f32 %v793_v60, 0.0  ;;  %v693_v11 = vmul.f32 %v1903_v39, %v503_v3  ;;  %v725_v12 = vmul.f32 %v1903_v39, %v631_v4 }
 0x108   :  { %v1448_v9 = vpack.c.bf16 %v827_v1, %v826_v63  ;;  %v1528_v10 = vpack.c.bf16 %v859_v2, %v858_v0  ;;  %v1652_v13 = vpop.f32.mrf.mxu0  ;;  %v1684_v14 = vpop.f32.mrf.mxu1  ;;  %v766_v17 = vadd.f32 %v1910_v44, %v695_v61  ;;  %v798_v18 = vadd.f32 %v1910_v44, %v727_v62 }
 0x109   :  { %v1443_v15 = vpack.c.bf16 %v825_v7, %v824_v5  ;;  %v1523_v16 = vpack.c.bf16 %v857_v8, %v856_v6  ;;  %v696_v19 = vmul.f32 %v1652_v13, %v1903_v39  ;;  %v728_v20 = vmul.f32 %v1684_v14, %v1903_v39 }
 0x10a   :  { %1560 = vst [vmem:[%s2138_s4 + $0x58] sm:$0xff] %v1448_v9   ;;  %1576 = vst [vmem:[%s2138_s4 + $0xd8] sm:$0xff] %v1528_v10   ;;  %v506_v21 = vpop.f32.mrf.mxu0  ;;  %v634_v22 = vpop.f32.mrf.mxu1  ;;  %v764_v23 = vadd.f32 %v1910_v44, %v693_v11  ;;  %v796_v24 = vadd.f32 %v1910_v44, %v725_v12  ;;  %v830_v31 = vmax.f32 %v766_v17, 0.0  ;;  %v862_v32 = vmax.f32 %v798_v18, 0.0 }
 0x10b   :  { %1559 = vst [vmem:[%s2138_s4 + $0x50] sm:$0xff] %v1443_v15   ;;  %1575 = vst [vmem:[%s2138_s4 + $0xd0] sm:$0xff] %v1523_v16   ;;  %v694_v25 = vmul.f32 %v1903_v39, %v506_v21  ;;  %v726_v26 = vmul.f32 %v1903_v39, %v634_v22  ;;  %v767_v27 = vadd.f32 %v1910_v44, %v696_v19 }
 0x10c   :  { %v799_v28 = vadd.f32 %v1910_v44, %v728_v20  ;;  %v1655_v29 = vpop.f32.mrf.mxu0  ;;  %v1687_v30 = vpop.f32.mrf.mxu1  ;;  %v828_v42 = vmax.f32 %v764_v23, 0.0  ;;  %v860_v43 = vmax.f32 %v796_v24, 0.0 }
 0x10d   :  { %v765_v33 = vadd.f32 %v1910_v44, %v694_v25  ;;  %v797_v34 = vadd.f32 %v1910_v44, %v726_v26  ;;  %v831_v35 = vmax.f32 %v767_v27, 0.0  ;;  %v699_v37 = vmul.f32 %v1655_v29, %v1903_v39 }
 0x10e   :  { %v863_v36 = vmax.f32 %v799_v28, 0.0  ;;  %v731_v38 = vmul.f32 %v1687_v30, %v1903_v39  ;;  %v519_v40 = vpop.f32.mrf.mxu0  ;;  %v647_v41 = vpop.f32.mrf.mxu1 }
 0x10f   :  { %v829_v45 = vmax.f32 %v765_v33, 0.0  ;;  %v861_v46 = vmax.f32 %v797_v34, 0.0  ;;  %v1458_v47 = vpack.c.bf16 %v831_v35, %v830_v31  ;;  %v697_v49 = vmul.f32 %v1903_v39, %v519_v40 }
 0x110   :  { %v1538_v48 = vpack.c.bf16 %v863_v36, %v862_v32  ;;  %v729_v50 = vmul.f32 %v1903_v39, %v647_v41  ;;  %v1656_v51 = vpop.f32.mrf.mxu0  ;;  %v1688_v52 = vpop.f32.mrf.mxu1  ;;  %v770_v55 = vadd.f32 %v1910_v44, %v699_v37  ;;  %v802_v56 = vadd.f32 %v1910_v44, %v731_v38 }
 0x111   :  { %v1453_v53 = vpack.c.bf16 %v829_v45, %v828_v42  ;;  %v1533_v54 = vpack.c.bf16 %v861_v46, %v860_v43  ;;  %1562 = vst [vmem:[%s2138_s4 + $0x68] sm:$0xff] %v1458_v47   ;;  %v700_v57 = vmul.f32 %v1656_v51, %v1903_v39  ;;  %v732_v58 = vmul.f32 %v1688_v52, %v1903_v39 }
 0x112   :  { %1578 = vst [vmem:[%s2138_s4 + $0xe8] sm:$0xff] %v1538_v48   ;;  %v522_v59 = vpop.f32.mrf.mxu0  ;;  %v650_v60 = vpop.f32.mrf.mxu1  ;;  %v768_v61 = vadd.f32 %v1910_v44, %v697_v49  ;;  %v800_v62 = vadd.f32 %v1910_v44, %v729_v50  ;;  %v834_v5 = vmax.f32 %v770_v55, 0.0  ;;  %v866_v6 = vmax.f32 %v802_v56, 0.0 }
 0x113   :  { %1561 = vst [vmem:[%s2138_s4 + $0x60] sm:$0xff] %v1453_v53   ;;  %1577 = vst [vmem:[%s2138_s4 + $0xe0] sm:$0xff] %v1533_v54   ;;  %v698_v63 = vmul.f32 %v1903_v39, %v522_v59  ;;  %v730_v0 = vmul.f32 %v1903_v39, %v650_v60  ;;  %v771_v1 = vadd.f32 %v1910_v44, %v700_v57 }
 0x114   :  { %v803_v2 = vadd.f32 %v1910_v44, %v732_v58  ;;  %v832_v9 = vmax.f32 %v768_v61, 0.0  ;;  %v864_v10 = vmax.f32 %v800_v62, 0.0 }
 0x115   :  { %v769_v3 = vadd.f32 %v1910_v44, %v698_v63  ;;  %v801_v4 = vadd.f32 %v1910_v44, %v730_v0  ;;  %v835_v7 = vmax.f32 %v771_v1, 0.0 }
 0x116   :  { %v867_v8 = vmax.f32 %v803_v2, 0.0 }
 0x117   :  { %v833_v11 = vmax.f32 %v769_v3, 0.0  ;;  %v865_v12 = vmax.f32 %v801_v4, 0.0  ;;  %v1468_v13 = vpack.c.bf16 %v835_v7, %v834_v5 }
 0x118   :  { %v1548_v14 = vpack.c.bf16 %v867_v8, %v866_v6 }
 0x119   :  { %v1463_v15 = vpack.c.bf16 %v833_v11, %v832_v9  ;;  %v1543_v39 = vpack.c.bf16 %v865_v12, %v864_v10  ;;  %1564 = vst [vmem:[%s2138_s4 + $0x78] sm:$0xff] %v1468_v13  }
 0x11a   :  { %1580 = vst [vmem:[%s2138_s4 + $0xf8] sm:$0xff] %v1548_v14  }
 0x11b   :  { %1563 = vst [vmem:[%s2138_s4 + $0x70] sm:$0xff] %v1463_v15   ;;  %1579 = vst [vmem:[%s2138_s4 + $0xf0] sm:$0xff] %v1543_v39  }

// kernel: semantic_encoder_forward.10
= control target key start
LH: loop header
LB: loop body
LE: loop exit
PB: predicated region body
PF: predicated region fallthrough
CT: control target
= control target key end

     0   :  { %s687_s1 = inlined_call_operand.vmem [shape: bf16[128,128], index: 1, kind: input, shape index: {}]   ;;  %s688_s0 = inlined_call_operand.vmem [shape: bf16[128,128], index: 0, kind: input, shape index: {}]   ;;  %s689_s2 = inlined_call_operand.vmem [shape: f32[1,128], index: 2, kind: input, shape index: {}]   ;;  %s690_s3 = inlined_call_operand.vmem [shape: f32[1,128], index: 3, kind: input, shape index: {}]   ;;  %s691_s4 = inlined_call_operand.vmem [shape: bf16[128,128], index: 4, kind: output, shape index: {}]  }
   0x1   :  { %v550_v0 = vld [vmem:[%s687_s1 + $0x38] sm:$0xff]   ;;  %v551_v1 = vld [vmem:[%s687_s1 + $0x30] sm:$0xff]   ;;  %v552_v2 = vld [vmem:[%s687_s1 + $0x28] sm:$0xff]  }
   0x2   :  { %502 = vmatprep.subr.bf16.mxu0 %v550_v0  ;;  %534 = vmatprep.subr.bf16.mxu1 %v550_v0  ;;  %v553_v3 = vld [vmem:[%s687_s1 + $0x20] sm:$0xff]   ;;  %v554_v6 = vld [vmem:[%s687_s1 + $0x18] sm:$0xff]   ;;  %v555_v7 = vld [vmem:[%s687_s1 + $0x10] sm:$0xff]  }
   0x3   :  { %503 = vmatpush3.bf16.msra.mxu0 %v550_v0  ;;  %542 = vmatpush3.bf16.msra.mxu1 %v550_v0  ;;  %v558_v4 = vld [vmem:[%s688_s0] sm:$0xff]   ;;  %v556_v8 = vld [vmem:[%s687_s1 + $0x8] sm:$0xff]   ;;  %v562_v12 = vld [vmem:[%s688_s0 + $0x10] sm:$0xff]  }
   0x4   :  { %504 = vmatprep.subr.bf16.mxu0 %v551_v1  ;;  %535 = vmatprep.subr.bf16.mxu1 %v551_v1  ;;  %v559_v5 = vld [vmem:[%s688_s0 + $0x20] sm:$0xff]   ;;  %v560_v10 = vld [vmem:[%s688_s0 + $0x8] sm:$0xff]   ;;  %v563_v13 = vld [vmem:[%s688_s0 + $0x30] sm:$0xff]  }
   0x5   :  { %518 = vmatprep.mubr.bf16.mxu0 %v558_v4  ;;  %526 = vmatprep.mubr.bf16.mxu1 %v559_v5  ;;  %v557_v9 = vld [vmem:[%s687_s1] sm:$0xff]   ;;  %v561_v11 = vld [vmem:[%s688_s0 + $0x28] sm:$0xff]   ;;  %v564_v14 = vld [vmem:[%s688_s0 + $0x18] sm:$0xff]  }
   0x6   :  { %v565_v15 = vld [vmem:[%s688_s0 + $0x38] sm:$0xff]   ;;  %v642_v16 = vld [vmem:[%s689_s2] ss:$0 sm:$0xff] }
   0x7   :  { %505 = vmatpush3.bf16.msra.mxu0 %v551_v1  ;;  %543 = vmatpush3.bf16.msra.mxu1 %v551_v1  ;;  %v406_v21 = vld [vmem:[%s690_s3] ss:$0 sm:$0xff] }
   0x8   :  { %506 = vmatprep.subr.bf16.mxu0 %v552_v2  ;;  %536 = vmatprep.subr.bf16.mxu1 %v552_v2 }
   0xb   :  { %507 = vmatpush3.bf16.msra.mxu0 %v552_v2  ;;  %544 = vmatpush3.bf16.msra.mxu1 %v552_v2 }
   0xc   :  { %508 = vmatprep.subr.bf16.mxu0 %v553_v3  ;;  %537 = vmatprep.subr.bf16.mxu1 %v553_v3 }
   0xf   :  { %509 = vmatpush3.bf16.msra.mxu0 %v553_v3  ;;  %545 = vmatpush3.bf16.msra.mxu1 %v553_v3 }
  0x10   :  { %510 = vmatprep.subr.bf16.mxu0 %v554_v6  ;;  %538 = vmatprep.subr.bf16.mxu1 %v554_v6 }
  0x13   :  { %511 = vmatpush3.bf16.msra.mxu0 %v554_v6  ;;  %546 = vmatpush3.bf16.msra.mxu1 %v554_v6 }
  0x14   :  { %512 = vmatprep.subr.bf16.mxu0 %v555_v7  ;;  %539 = vmatprep.subr.bf16.mxu1 %v555_v7 }
  0x17   :  { %513 = vmatpush3.bf16.msra.mxu0 %v555_v7  ;;  %547 = vmatpush3.bf16.msra.mxu1 %v555_v7 }
  0x18   :  { %514 = vmatprep.subr.bf16.mxu0 %v556_v8  ;;  %540 = vmatprep.subr.bf16.mxu1 %v556_v8 }
  0x1b   :  { %515 = vmatpush3.bf16.msra.mxu0 %v556_v8  ;;  %548 = vmatpush3.bf16.msra.mxu1 %v556_v8 }
  0x1c   :  { %516 = vmatprep.subr.bf16.mxu0 %v557_v9  ;;  %541 = vmatprep.subr.bf16.mxu1 %v557_v9 }
  0x1f   :  { %517 = vmatpush3.bf16.msra.mxu0 %v557_v9  ;;  %549 = vmatpush3.bf16.msra.mxu1 %v557_v9 }
  0x22   :  { %519 = vmatmul.mubr.bf16.vlgmr.msra.gmra.mxu0 %v560_v10  ;;  %527 = vmatmul.mubr.bf16.vlgmr.msra.gmra.mxu1 %v561_v11 }
  0x23   :  { %522 = vmatprep.mubr.bf16.mxu0 %v562_v12  ;;  %530 = vmatprep.mubr.bf16.mxu1 %v563_v13 }
  0x2a   :  { %523 = vmatmul.mubr.bf16.gmra.mxu0 %v564_v14  ;;  %531 = vmatmul.mubr.bf16.gmra.mxu1 %v565_v15 }
  0xe2   :  { %v520_v17 = vpop.f32.mrf.mxu0  ;;  %v528_v18 = vpop.f32.mrf.mxu1 }
  0xe3   :  { %v252_v19 = vmul.f32 %v520_v17, %v642_v16  ;;  %v260_v20 = vmul.f32 %v528_v18, %v642_v16 }
  0xe4   :  { %v180_v22 = vpop.f32.mrf.mxu0  ;;  %v212_v23 = vpop.f32.mrf.mxu1 }
  0xe5   :  { %v250_v24 = vmul.f32 %v642_v16, %v180_v22  ;;  %v258_v25 = vmul.f32 %v642_v16, %v212_v23  ;;  %v275_v28 = vadd.f32 %v406_v21, %v252_v19  ;;  %v283_v29 = vadd.f32 %v406_v21, %v260_v20 }
  0xe6   :  { %v521_v26 = vpop.f32.mrf.mxu0  ;;  %v529_v27 = vpop.f32.mrf.mxu1 }
  0xe7   :  { %v253_v30 = vmul.f32 %v521_v26, %v642_v16  ;;  %v261_v31 = vmul.f32 %v529_v27, %v642_v16  ;;  %v273_v34 = vadd.f32 %v406_v21, %v250_v24  ;;  %v281_v35 = vadd.f32 %v406_v21, %v258_v25 }
  0xe8   :  { %v183_v32 = vpop.f32.mrf.mxu0  ;;  %v215_v33 = vpop.f32.mrf.mxu1  ;;  %v291_v42 = vmax.f32 %v275_v28, 0.0  ;;  %v299_v43 = vmax.f32 %v283_v29, 0.0 }
  0xe9   :  { %v251_v36 = vmul.f32 %v642_v16, %v183_v32  ;;  %v259_v37 = vmul.f32 %v642_v16, %v215_v33  ;;  %v276_v38 = vadd.f32 %v406_v21, %v253_v30  ;;  %v284_v39 = vadd.f32 %v406_v21, %v261_v31 }
  0xea   :  { %v524_v40 = vpop.f32.mrf.mxu0  ;;  %v532_v41 = vpop.f32.mrf.mxu1  ;;  %v289_v52 = vmax.f32 %v273_v34, 0.0  ;;  %v297_v53 = vmax.f32 %v281_v35, 0.0 }
  0xeb   :  { %v274_v44 = vadd.f32 %v406_v21, %v251_v36  ;;  %v282_v45 = vadd.f32 %v406_v21, %v259_v37  ;;  %v292_v46 = vmax.f32 %v276_v38, 0.0  ;;  %v300_v47 = vmax.f32 %v284_v39, 0.0 }
  0xec   :  { %v256_v48 = vmul.f32 %v524_v40, %v642_v16  ;;  %v264_v49 = vmul.f32 %v532_v41, %v642_v16  ;;  %v196_v50 = vpop.f32.mrf.mxu0  ;;  %v228_v51 = vpop.f32.mrf.mxu1 }
  0xed   :  { %v290_v54 = vmax.f32 %v274_v44, 0.0  ;;  %v298_v55 = vmax.f32 %v282_v45, 0.0  ;;  %v447_v56 = vpack.c.bf16 %v292_v46, %v291_v42  ;;  %v467_v57 = vpack.c.bf16 %v300_v47, %v299_v43 }
  0xee   :  { %v254_v58 = vmul.f32 %v642_v16, %v196_v50  ;;  %v262_v59 = vmul.f32 %v642_v16, %v228_v51  ;;  %v525_v60 = vpop.f32.mrf.mxu0  ;;  %v533_v61 = vpop.f32.mrf.mxu1  ;;  %v279_v0 = vadd.f32 %v406_v21, %v256_v48  ;;  %v287_v1 = vadd.f32 %v406_v21, %v264_v49 }
  0xef   :  { %v442_v62 = vpack.c.bf16 %v290_v54, %v289_v52  ;;  %v462_v63 = vpack.c.bf16 %v298_v55, %v297_v53  ;;  %479 = vst [vmem:[%s691_s4 + $0x8] sm:$0xff] %v447_v56   ;;  %483 = vst [vmem:[%s691_s4 + $0x28] sm:$0xff] %v467_v57   ;;  %v257_v2 = vmul.f32 %v525_v60, %v642_v16 }
  0xf0   :  { %v265_v3 = vmul.f32 %v533_v61, %v642_v16  ;;  %v199_v4 = vpop.f32.mrf.mxu0  ;;  %v231_v5 = vpop.f32.mrf.mxu1  ;;  %v277_v6 = vadd.f32 %v406_v21, %v254_v58  ;;  %v285_v7 = vadd.f32 %v406_v21, %v262_v59  ;;  %v295_v14 = vmax.f32 %v279_v0, 0.0 }
  0xf1   :  { %443 = vst [vmem:[%s691_s4] sm:$0xff] %v442_v62   ;;  %482 = vst [vmem:[%s691_s4 + $0x20] sm:$0xff] %v462_v63   ;;  %v255_v8 = vmul.f32 %v642_v16, %v199_v4  ;;  %v263_v9 = vmul.f32 %v642_v16, %v231_v5  ;;  %v280_v10 = vadd.f32 %v406_v21, %v257_v2  ;;  %v303_v15 = vmax.f32 %v287_v1, 0.0 }
  0xf2   :  { %v288_v11 = vadd.f32 %v406_v21, %v265_v3  ;;  %v293_v19 = vmax.f32 %v277_v6, 0.0  ;;  %v301_v20 = vmax.f32 %v285_v7, 0.0 }
  0xf3   :  { %v278_v12 = vadd.f32 %v406_v21, %v255_v8  ;;  %v286_v13 = vadd.f32 %v406_v21, %v263_v9  ;;  %v296_v17 = vmax.f32 %v280_v10, 0.0 }
  0xf4   :  { %v304_v18 = vmax.f32 %v288_v11, 0.0 }
  0xf5   :  { %v294_v22 = vmax.f32 %v278_v12, 0.0  ;;  %v302_v23 = vmax.f32 %v286_v13, 0.0  ;;  %v457_v24 = vpack.c.bf16 %v296_v17, %v295_v14 }
  0xf6   :  { %v477_v25 = vpack.c.bf16 %v304_v18, %v303_v15 }
  0xf7   :  { %v452_v26 = vpack.c.bf16 %v294_v22, %v293_v19  ;;  %v472_v27 = vpack.c.bf16 %v302_v23, %v301_v20  ;;  %481 = vst [vmem:[%s691_s4 + $0x18] sm:$0xff] %v457_v24  }
  0xf8   :  { %485 = vst [vmem:[%s691_s4 + $0x38] sm:$0xff] %v477_v25  }
  0xf9   :  { %480 = vst [vmem:[%s691_s4 + $0x10] sm:$0xff] %v452_v26   ;;  %484 = vst [vmem:[%s691_s4 + $0x30] sm:$0xff] %v472_v27  }

// kernel: semantic_encoder_forward.8
= control target key start
LH: loop header
LB: loop body
LE: loop exit
PB: predicated region body
PF: predicated region fallthrough
CT: control target
= control target key end

     0   :  { %s957_s0 = inlined_call_operand.vmem [shape: bf16[9,128,128], index: 0, kind: input, shape index: {}]   ;;  %s958_s1 = inlined_call_operand.vmem [shape: bf16[128,128], index: 1, kind: output, shape index: {}]  }
   0x1   :  { %v8_v0 = vld [vmem:[%s957_s0] sm:$0xf]  ;;  %v9_v1 = vld [vmem:[%s957_s0 + $0x4] sm:$0xf]  ;;  %v10_v18 = vld [vmem:[%s957_s0 + $0x8] sm:$0xf] }
   0x2   :  { %v308_v2 = vld [vmem:[%s957_s0 + $0x40] sm:$0xf]  ;;  %v309_v3 = vld [vmem:[%s957_s0 + $0x44] sm:$0xf]  ;;  %v11_v19 = vld [vmem:[%s957_s0 + $0xc] sm:$0xf] }
   0x3   :  { %v41_v4 = vmax.bf16 %v308_v2, %v8_v0  ;;  %v324_v5 = vld [vmem:[%s957_s0 + $0x80] sm:$0xf]  ;;  %v325_v6 = vld [vmem:[%s957_s0 + $0x84] sm:$0xf]  ;;  %v42_v7 = vmax.bf16 %v309_v3, %v9_v1  ;;  %v310_v20 = vld [vmem:[%s957_s0 + $0x48] sm:$0xf] }
   0x4   :  { %v340_v8 = vld [vmem:[%s957_s0 + $0xc0] sm:$0xf]  ;;  %v341_v10 = vld [vmem:[%s957_s0 + $0xc4] sm:$0xf]  ;;  %v311_v22 = vld [vmem:[%s957_s0 + $0x4c] sm:$0xf]  ;;  %v43_v23 = vmax.bf16 %v310_v20, %v10_v18 }
   0x5   :  { %v74_v9 = vmax.bf16 %v324_v5, %v41_v4  ;;  %v75_v11 = vmax.bf16 %v325_v6, %v42_v7  ;;  %v356_v12 = vld [vmem:[%s957_s0 + $0x100] sm:$0xf]  ;;  %v357_v14 = vld [vmem:[%s957_s0 + $0x104] sm:$0xf]  ;;  %v326_v24 = vld [vmem:[%s957_s0 + $0x88] sm:$0xf]  ;;  %v44_v28 = vmax.bf16 %v311_v22, %v11_v19 }
   0x6   :  { %v372_v15 = vld [vmem:[%s957_s0 + $0x140] sm:$0xf]  ;;  %v373_v16 = vld [vmem:[%s957_s0 + $0x144] sm:$0xf]  ;;  %v327_v25 = vld [vmem:[%s957_s0 + $0x8c] sm:$0xf]  ;;  %v76_v33 = vmax.bf16 %v326_v24, %v43_v23 }
   0x7   :  { %v107_v13 = vmax.bf16 %v340_v8, %v74_v9  ;;  %v108_v17 = vmax.bf16 %v341_v10, %v75_v11  ;;  %v388_v27 = vld [vmem:[%s957_s0 + $0x180] sm:$0xf]  ;;  %v342_v29 = vld [vmem:[%s957_s0 + $0xc8] sm:$0xf]  ;;  %v389_v31 = vld [vmem:[%s957_s0 + $0x184] sm:$0xf]  ;;  %v77_v38 = vmax.bf16 %v327_v25, %v44_v28 }
   0x8   :  { %v404_v32 = vld [vmem:[%s957_s0 + $0x1c0] sm:$0xf]  ;;  %v343_v34 = vld [vmem:[%s957_s0 + $0xcc] sm:$0xf]  ;;  %v405_v36 = vld [vmem:[%s957_s0 + $0x1c4] sm:$0xf]  ;;  %v109_v42 = vmax.bf16 %v342_v29, %v76_v33 }
   0x9   :  { %v140_v21 = vmax.bf16 %v356_v12, %v107_v13  ;;  %v141_v26 = vmax.bf16 %v357_v14, %v108_v17  ;;  %v420_v37 = vld [vmem:[%s957_s0 + $0x200] sm:$0xf]  ;;  %v358_v39 = vld [vmem:[%s957_s0 + $0x108] sm:$0xf]  ;;  %v421_v41 = vld [vmem:[%s957_s0 + $0x204] sm:$0xf]  ;;  %v110_v47 = vmax.bf16 %v343_v34, %v77_v38 }
   0xa   :  { %v359_v43 = vld [vmem:[%s957_s0 + $0x10c] sm:$0xf]  ;;  %v374_v44 = vld [vmem:[%s957_s0 + $0x148] sm:$0xf]  ;;  %v12_v48 = vld [vmem:[%s957_s0 + $0x10] sm:$0xf]  ;;  %v142_v52 = vmax.bf16 %v358_v39, %v109_v42 }
   0xb   :  { %v173_v30 = vmax.bf16 %v372_v15, %v140_v21  ;;  %v174_v35 = vmax.bf16 %v373_v16, %v141_v26  ;;  %v375_v45 = vld [vmem:[%s957_s0 + $0x14c] sm:$0xf]  ;;  %v13_v49 = vld [vmem:[%s957_s0 + $0x14] sm:$0xf]  ;;  %v312_v50 = vld [vmem:[%s957_s0 + $0x50] sm:$0xf]  ;;  %v143_v58 = vmax.bf16 %v359_v43, %v110_v47 }
   0xc   :  { %v313_v53 = vld [vmem:[%s957_s0 + $0x54] sm:$0xf]  ;;  %v45_v54 = vmax.bf16 %v312_v50, %v12_v48  ;;  %v328_v55 = vld [vmem:[%s957_s0 + $0x90] sm:$0xf]  ;;  %v390_v59 = vld [vmem:[%s957_s0 + $0x188] sm:$0xf]  ;;  %v175_v63 = vmax.bf16 %v374_v44, %v142_v52 }
   0xd   :  { %v206_v40 = vmax.bf16 %v388_v27, %v173_v30  ;;  %v207_v46 = vmax.bf16 %v389_v31, %v174_v35  ;;  %v329_v56 = vld [vmem:[%s957_s0 + $0x94] sm:$0xf]  ;;  %v46_v60 = vmax.bf16 %v313_v53, %v13_v49  ;;  %v344_v61 = vld [vmem:[%s957_s0 + $0xd0] sm:$0xf]  ;;  %v391_v0 = vld [vmem:[%s957_s0 + $0x18c] sm:$0xf]  ;;  %v176_v5 = vmax.bf16 %v375_v45, %v143_v58 }
   0xe   :  { %v406_v1 = vld [vmem:[%s957_s0 + $0x1c8] sm:$0xf]  ;;  %v78_v2 = vmax.bf16 %v328_v55, %v45_v54  ;;  %v345_v3 = vld [vmem:[%s957_s0 + $0xd4] sm:$0xf]  ;;  %v407_v6 = vld [vmem:[%s957_s0 + $0x1cc] sm:$0xf]  ;;  %v208_v10 = vmax.bf16 %v390_v59, %v175_v63 }
   0xf   :  { %v239_v51 = vmax.bf16 %v404_v32, %v206_v40  ;;  %v240_v57 = vmax.bf16 %v405_v36, %v207_v46  ;;  %v422_v7 = vld [vmem:[%s957_s0 + $0x208] sm:$0xf]  ;;  %v79_v8 = vmax.bf16 %v329_v56, %v46_v60  ;;  %v360_v9 = vld [vmem:[%s957_s0 + $0x110] sm:$0xf]  ;;  %v423_v11 = vld [vmem:[%s957_s0 + $0x20c] sm:$0xf]  ;;  %v209_v17 = vmax.bf16 %v391_v0, %v176_v5 }
  0x10   :  { %v111_v12 = vmax.bf16 %v344_v61, %v78_v2  ;;  %v361_v13 = vld [vmem:[%s957_s0 + $0x114] sm:$0xf]  ;;  %v376_v14 = vld [vmem:[%s957_s0 + $0x150] sm:$0xf]  ;;  %v14_v19 = vld [vmem:[%s957_s0 + $0x18] sm:$0xf]  ;;  %v241_v22 = vmax.bf16 %v406_v1, %v208_v10 }
  0x11   :  { %v272_v62 = vmax.bf16 %v420_v37, %v239_v51  ;;  %v273_v4 = vmax.bf16 %v421_v41, %v240_v57  ;;  %v377_v15 = vld [vmem:[%s957_s0 + $0x154] sm:$0xf]  ;;  %v112_v18 = vmax.bf16 %v345_v3, %v79_v8  ;;  %v15_v20 = vld [vmem:[%s957_s0 + $0x1c] sm:$0xf]  ;;  %v314_v21 = vld [vmem:[%s957_s0 + $0x58] sm:$0xf]  ;;  %v242_v28 = vmax.bf16 %v407_v6, %v209_v17 }
  0x12   :  { %v144_v23 = vmax.bf16 %v360_v9, %v111_v12  ;;  %v315_v24 = vld [vmem:[%s957_s0 + $0x5c] sm:$0xf]  ;;  %v47_v25 = vmax.bf16 %v314_v21, %v14_v19  ;;  %v330_v26 = vld [vmem:[%s957_s0 + $0x98] sm:$0xf]  ;;  %v392_v30 = vld [vmem:[%s957_s0 + $0x190] sm:$0xf]  ;;  %v274_v33 = vmax.bf16 %v422_v7, %v241_v22 }
  0x13   :  { %v476_v16 = vcombine.low %v272_v62, %v273_v4  ;;  %v331_v27 = vld [vmem:[%s957_s0 + $0x9c] sm:$0xf]  ;;  %v145_v29 = vmax.bf16 %v361_v13, %v112_v18  ;;  %v48_v31 = vmax.bf16 %v315_v24, %v15_v20  ;;  %v346_v32 = vld [vmem:[%s957_s0 + $0xd8] sm:$0xf]  ;;  %v393_v35 = vld [vmem:[%s957_s0 + $0x194] sm:$0xf]  ;;  %v275_v39 = vmax.bf16 %v423_v11, %v242_v28 }
  0x14   :  { %v177_v34 = vmax.bf16 %v376_v14, %v144_v23  ;;  %v408_v36 = vld [vmem:[%s957_s0 + $0x1d0] sm:$0xf]  ;;  %v80_v37 = vmax.bf16 %v330_v26, %v47_v25  ;;  %v347_v38 = vld [vmem:[%s957_s0 + $0xdc] sm:$0xf]  ;;  %v409_v41 = vld [vmem:[%s957_s0 + $0x1d4] sm:$0xf] }
  0x15   :  { %440 = vst [vmem:[%s958_s1] sm:$0xff] %v476_v16   ;;  %v178_v40 = vmax.bf16 %v377_v15, %v145_v29  ;;  %v424_v42 = vld [vmem:[%s957_s0 + $0x210] sm:$0xf]  ;;  %v81_v43 = vmax.bf16 %v331_v27, %v48_v31  ;;  %v362_v44 = vld [vmem:[%s957_s0 + $0x118] sm:$0xf]  ;;  %v425_v46 = vld [vmem:[%s957_s0 + $0x214] sm:$0xf]  ;;  %v477_v51 = vcombine.low %v274_v33, %v275_v39 }
  0x16   :  { %v210_v45 = vmax.bf16 %v392_v30, %v177_v34  ;;  %v113_v47 = vmax.bf16 %v346_v32, %v80_v37  ;;  %v363_v48 = vld [vmem:[%s957_s0 + $0x11c] sm:$0xf]  ;;  %v378_v49 = vld [vmem:[%s957_s0 + $0x158] sm:$0xf]  ;;  %v16_v54 = vld [vmem:[%s957_s0 + $0x20] sm:$0xf] }
  0x17   :  { %v379_v50 = vld [vmem:[%s957_s0 + $0x15c] sm:$0xf]  ;;  %v211_v52 = vmax.bf16 %v393_v35, %v178_v40  ;;  %v114_v53 = vmax.bf16 %v347_v38, %v81_v43  ;;  %v17_v55 = vld [vmem:[%s957_s0 + $0x24] sm:$0xf]  ;;  %v316_v56 = vld [vmem:[%s957_s0 + $0x60] sm:$0xf] }
  0x18   :  { %v243_v57 = vmax.bf16 %v408_v36, %v210_v45  ;;  %v146_v58 = vmax.bf16 %v362_v44, %v113_v47  ;;  %v317_v59 = vld [vmem:[%s957_s0 + $0x64] sm:$0xf]  ;;  %v49_v60 = vmax.bf16 %v316_v56, %v16_v54  ;;  %v332_v61 = vld [vmem:[%s957_s0 + $0xa0] sm:$0xf]  ;;  %478 = vst [vmem:[%s958_s1 + $0x8] sm:$0xff] %v477_v51  }
  0x19   :  { %v333_v62 = vld [vmem:[%s957_s0 + $0xa4] sm:$0xf]  ;;  %v244_v63 = vmax.bf16 %v409_v41, %v211_v52  ;;  %v147_v0 = vmax.bf16 %v363_v48, %v114_v53  ;;  %v394_v1 = vld [vmem:[%s957_s0 + $0x198] sm:$0xf]  ;;  %v50_v2 = vmax.bf16 %v317_v59, %v17_v55  ;;  %v348_v3 = vld [vmem:[%s957_s0 + $0xe0] sm:$0xf] }
  0x1a   :  { %v276_v4 = vmax.bf16 %v424_v42, %v243_v57  ;;  %v179_v5 = vmax.bf16 %v378_v49, %v146_v58  ;;  %v395_v6 = vld [vmem:[%s957_s0 + $0x19c] sm:$0xf]  ;;  %v410_v7 = vld [vmem:[%s957_s0 + $0x1d8] sm:$0xf]  ;;  %v82_v8 = vmax.bf16 %v332_v61, %v49_v60  ;;  %v349_v9 = vld [vmem:[%s957_s0 + $0xe4] sm:$0xf] }
  0x1b   :  { %v277_v10 = vmax.bf16 %v425_v46, %v244_v63  ;;  %v180_v11 = vmax.bf16 %v379_v50, %v147_v0  ;;  %v411_v12 = vld [vmem:[%s957_s0 + $0x1dc] sm:$0xf]  ;;  %v426_v13 = vld [vmem:[%s957_s0 + $0x218] sm:$0xf]  ;;  %v83_v14 = vmax.bf16 %v333_v62, %v50_v2  ;;  %v364_v15 = vld [vmem:[%s957_s0 + $0x120] sm:$0xf] }
  0x1c   :  { %v212_v16 = vmax.bf16 %v394_v1, %v179_v5  ;;  %v427_v17 = vld [vmem:[%s957_s0 + $0x21c] sm:$0xf]  ;;  %v115_v18 = vmax.bf16 %v348_v3, %v82_v8  ;;  %v365_v19 = vld [vmem:[%s957_s0 + $0x124] sm:$0xf]  ;;  %v380_v20 = vld [vmem:[%s957_s0 + $0x160] sm:$0xf] }
  0x1d   :  { %v381_v21 = vld [vmem:[%s957_s0 + $0x164] sm:$0xf]  ;;  %v479_v22 = vcombine.low %v276_v4, %v277_v10  ;;  %v213_v23 = vmax.bf16 %v395_v6, %v180_v11  ;;  %v116_v24 = vmax.bf16 %v349_v9, %v83_v14  ;;  %v18_v25 = vld [vmem:[%s957_s0 + $0x28] sm:$0xf]  ;;  %v19_v26 = vld [vmem:[%s957_s0 + $0x2c] sm:$0xf] }
  0x1e   :  { %v318_v27 = vld [vmem:[%s957_s0 + $0x68] sm:$0xf]  ;;  %v245_v28 = vmax.bf16 %v410_v7, %v212_v16  ;;  %v148_v29 = vmax.bf16 %v364_v15, %v115_v18  ;;  %v319_v30 = vld [vmem:[%s957_s0 + $0x6c] sm:$0xf]  ;;  %v396_v36 = vld [vmem:[%s957_s0 + $0x1a0] sm:$0xf] }
  0x1f   :  { %v51_v31 = vmax.bf16 %v318_v27, %v18_v25  ;;  %v334_v32 = vld [vmem:[%s957_s0 + $0xa8] sm:$0xf]  ;;  %v335_v33 = vld [vmem:[%s957_s0 + $0xac] sm:$0xf]  ;;  %480 = vst [vmem:[%s958_s1 + $0x10] sm:$0xff] %v479_v22   ;;  %v246_v34 = vmax.bf16 %v411_v12, %v213_v23  ;;  %v149_v35 = vmax.bf16 %v365_v19, %v116_v24  ;;  %v52_v37 = vmax.bf16 %v319_v30, %v19_v26 }
  0x20   :  { %v350_v38 = vld [vmem:[%s957_s0 + $0xe8] sm:$0xf]  ;;  %v278_v39 = vmax.bf16 %v426_v13, %v245_v28  ;;  %v181_v40 = vmax.bf16 %v380_v20, %v148_v29  ;;  %v397_v41 = vld [vmem:[%s957_s0 + $0x1a4] sm:$0xf]  ;;  %v412_v42 = vld [vmem:[%s957_s0 + $0x1e0] sm:$0xf] }
  0x21   :  { %v84_v43 = vmax.bf16 %v334_v32, %v51_v31  ;;  %v351_v44 = vld [vmem:[%s957_s0 + $0xec] sm:$0xf]  ;;  %v279_v45 = vmax.bf16 %v427_v17, %v246_v34  ;;  %v182_v46 = vmax.bf16 %v381_v21, %v149_v35  ;;  %v413_v47 = vld [vmem:[%s957_s0 + $0x1e4] sm:$0xf]  ;;  %v428_v48 = vld [vmem:[%s957_s0 + $0x220] sm:$0xf]  ;;  %v85_v49 = vmax.bf16 %v335_v33, %v52_v37 }
  0x22   :  { %v366_v50 = vld [vmem:[%s957_s0 + $0x128] sm:$0xf]  ;;  %v214_v51 = vmax.bf16 %v396_v36, %v181_v40  ;;  %v429_v52 = vld [vmem:[%s957_s0 + $0x224] sm:$0xf]  ;;  %v367_v54 = vld [vmem:[%s957_s0 + $0x12c] sm:$0xf] }
  0x23   :  { %v117_v53 = vmax.bf16 %v350_v38, %v84_v43  ;;  %v382_v55 = vld [vmem:[%s957_s0 + $0x168] sm:$0xf]  ;;  %v383_v56 = vld [vmem:[%s957_s0 + $0x16c] sm:$0xf]  ;;  %v481_v57 = vcombine.low %v278_v39, %v279_v45  ;;  %v215_v58 = vmax.bf16 %v397_v41, %v182_v46  ;;  %v118_v59 = vmax.bf16 %v351_v44, %v85_v49  ;;  %v20_v60 = vld [vmem:[%s957_s0 + $0x30] sm:$0xf] }
  0x24   :  { %v21_v61 = vld [vmem:[%s957_s0 + $0x34] sm:$0xf]  ;;  %v320_v62 = vld [vmem:[%s957_s0 + $0x70] sm:$0xf]  ;;  %v247_v63 = vmax.bf16 %v412_v42, %v214_v51  ;;  %v398_v7 = vld [vmem:[%s957_s0 + $0x1a8] sm:$0xf] }
  0x25   :  { %v150_v0 = vmax.bf16 %v366_v50, %v117_v53  ;;  %v321_v1 = vld [vmem:[%s957_s0 + $0x74] sm:$0xf]  ;;  %v53_v2 = vmax.bf16 %v320_v62, %v20_v60  ;;  %v336_v3 = vld [vmem:[%s957_s0 + $0xb0] sm:$0xf]  ;;  %482 = vst [vmem:[%s958_s1 + $0x18] sm:$0xff] %v481_v57   ;;  %v248_v5 = vmax.bf16 %v413_v47, %v215_v58  ;;  %v151_v6 = vmax.bf16 %v367_v54, %v118_v59 }
  0x26   :  { %v337_v4 = vld [vmem:[%s957_s0 + $0xb4] sm:$0xf]  ;;  %v54_v8 = vmax.bf16 %v321_v1, %v21_v61  ;;  %v352_v9 = vld [vmem:[%s957_s0 + $0xf0] sm:$0xf]  ;;  %v280_v10 = vmax.bf16 %v428_v48, %v247_v63  ;;  %v399_v12 = vld [vmem:[%s957_s0 + $0x1ac] sm:$0xf] }
  0x27   :  { %v183_v11 = vmax.bf16 %v382_v55, %v150_v0  ;;  %v414_v13 = vld [vmem:[%s957_s0 + $0x1e8] sm:$0xf]  ;;  %v86_v14 = vmax.bf16 %v336_v3, %v53_v2  ;;  %v353_v15 = vld [vmem:[%s957_s0 + $0xf4] sm:$0xf]  ;;  %v281_v16 = vmax.bf16 %v429_v52, %v248_v5  ;;  %v184_v17 = vmax.bf16 %v383_v56, %v151_v6  ;;  %v415_v18 = vld [vmem:[%s957_s0 + $0x1ec] sm:$0xf] }
  0x28   :  { %v430_v19 = vld [vmem:[%s957_s0 + $0x228] sm:$0xf]  ;;  %v87_v20 = vmax.bf16 %v337_v4, %v54_v8  ;;  %v368_v21 = vld [vmem:[%s957_s0 + $0x130] sm:$0xf]  ;;  %v431_v23 = vld [vmem:[%s957_s0 + $0x22c] sm:$0xf] }
  0x29   :  { %v216_v22 = vmax.bf16 %v398_v7, %v183_v11  ;;  %v119_v24 = vmax.bf16 %v352_v9, %v86_v14  ;;  %v369_v25 = vld [vmem:[%s957_s0 + $0x134] sm:$0xf]  ;;  %v384_v26 = vld [vmem:[%s957_s0 + $0x170] sm:$0xf]  ;;  %v483_v28 = vcombine.low %v280_v10, %v281_v16  ;;  %v217_v29 = vmax.bf16 %v399_v12, %v184_v17  ;;  %v22_v31 = vld [vmem:[%s957_s0 + $0x38] sm:$0xf] }
  0x2a   :  { %v385_v27 = vld [vmem:[%s957_s0 + $0x174] sm:$0xf]  ;;  %v120_v30 = vmax.bf16 %v353_v15, %v87_v20  ;;  %v23_v32 = vld [vmem:[%s957_s0 + $0x3c] sm:$0xf]  ;;  %v322_v33 = vld [vmem:[%s957_s0 + $0x78] sm:$0xf] }
  0x2b   :  { %v249_v34 = vmax.bf16 %v414_v13, %v216_v22  ;;  %v152_v35 = vmax.bf16 %v368_v21, %v119_v24  ;;  %v323_v36 = vld [vmem:[%s957_s0 + $0x7c] sm:$0xf]  ;;  %v55_v37 = vmax.bf16 %v322_v33, %v22_v31  ;;  %v338_v38 = vld [vmem:[%s957_s0 + $0xb8] sm:$0xf]  ;;  %484 = vst [vmem:[%s958_s1 + $0x20] sm:$0xff] %v483_v28   ;;  %v250_v40 = vmax.bf16 %v415_v18, %v217_v29 }
  0x2c   :  { %v339_v39 = vld [vmem:[%s957_s0 + $0xbc] sm:$0xf]  ;;  %v153_v41 = vmax.bf16 %v369_v25, %v120_v30  ;;  %v400_v42 = vld [vmem:[%s957_s0 + $0x1b0] sm:$0xf]  ;;  %v56_v43 = vmax.bf16 %v323_v36, %v23_v32  ;;  %v354_v44 = vld [vmem:[%s957_s0 + $0xf8] sm:$0xf] }
  0x2d   :  { %v282_v45 = vmax.bf16 %v430_v19, %v249_v34  ;;  %v185_v46 = vmax.bf16 %v384_v26, %v152_v35  ;;  %v401_v47 = vld [vmem:[%s957_s0 + $0x1b4] sm:$0xf]  ;;  %v88_v48 = vmax.bf16 %v338_v38, %v55_v37  ;;  %v355_v49 = vld [vmem:[%s957_s0 + $0xfc] sm:$0xf]  ;;  %v283_v50 = vmax.bf16 %v431_v23, %v250_v40  ;;  %v416_v52 = vld [vmem:[%s957_s0 + $0x1f0] sm:$0xf] }
  0x2e   :  { %v186_v51 = vmax.bf16 %v385_v27, %v153_v41  ;;  %v89_v53 = vmax.bf16 %v339_v39, %v56_v43  ;;  %v370_v54 = vld [vmem:[%s957_s0 + $0x138] sm:$0xf]  ;;  %v417_v56 = vld [vmem:[%s957_s0 + $0x1f4] sm:$0xf]  ;;  %v371_v58 = vld [vmem:[%s957_s0 + $0x13c] sm:$0xf] }
  0x2f   :  { %v218_v55 = vmax.bf16 %v400_v42, %v185_v46  ;;  %v121_v57 = vmax.bf16 %v354_v44, %v88_v48  ;;  %v485_v59 = vcombine.low %v282_v45, %v283_v50  ;;  %v432_v61 = vld [vmem:[%s957_s0 + $0x230] sm:$0xf]  ;;  %v386_v63 = vld [vmem:[%s957_s0 + $0x178] sm:$0xf]  ;;  %v433_v1 = vld [vmem:[%s957_s0 + $0x234] sm:$0xf] }
  0x30   :  { %v219_v60 = vmax.bf16 %v401_v47, %v186_v51  ;;  %v122_v62 = vmax.bf16 %v355_v49, %v89_v53  ;;  %v387_v3 = vld [vmem:[%s957_s0 + $0x17c] sm:$0xf]  ;;  %v402_v6 = vld [vmem:[%s957_s0 + $0x1b8] sm:$0xf] }
  0x31   :  { %v251_v0 = vmax.bf16 %v416_v52, %v218_v55  ;;  %v154_v2 = vmax.bf16 %v370_v54, %v121_v57  ;;  %486 = vst [vmem:[%s958_s1 + $0x28] sm:$0xff] %v485_v59   ;;  %v403_v9 = vld [vmem:[%s957_s0 + $0x1bc] sm:$0xf]  ;;  %v418_v12 = vld [vmem:[%s957_s0 + $0x1f8] sm:$0xf] }
  0x32   :  { %v252_v4 = vmax.bf16 %v417_v56, %v219_v60  ;;  %v155_v5 = vmax.bf16 %v371_v58, %v122_v62  ;;  %v419_v14 = vld [vmem:[%s957_s0 + $0x1fc] sm:$0xf]  ;;  %v434_v17 = vld [vmem:[%s957_s0 + $0x238] sm:$0xf] }
  0x33   :  { %v284_v7 = vmax.bf16 %v432_v61, %v251_v0  ;;  %v187_v8 = vmax.bf16 %v386_v63, %v154_v2  ;;  %v435_v19 = vld [vmem:[%s957_s0 + $0x23c] sm:$0xf] }
  0x34   :  { %v285_v10 = vmax.bf16 %v433_v1, %v252_v4  ;;  %v188_v11 = vmax.bf16 %v387_v3, %v155_v5 }
  0x35   :  { %v220_v13 = vmax.bf16 %v402_v6, %v187_v8 }
  0x36   :  { %v487_v15 = vcombine.low %v284_v7, %v285_v10  ;;  %v221_v16 = vmax.bf16 %v403_v9, %v188_v11 }
  0x37   :  { %v253_v18 = vmax.bf16 %v418_v12, %v220_v13 }
  0x38   :  { %488 = vst [vmem:[%s958_s1 + $0x30] sm:$0xff] %v487_v15   ;;  %v254_v20 = vmax.bf16 %v419_v14, %v221_v16 }
  0x39   :  { %v286_v21 = vmax.bf16 %v434_v17, %v253_v18 }
  0x3a   :  { %v287_v22 = vmax.bf16 %v435_v19, %v254_v20 }
  0x3c   :  { %v489_v23 = vcombine.low %v286_v21, %v287_v22 }
  0x3e   :  { %490 = vst [vmem:[%s958_s1 + $0x38] sm:$0xff] %v489_v23  }

// kernel: semantic_encoder_forward.13
= control target key start
LH: loop header
LB: loop body
LE: loop exit
PB: predicated region body
PF: predicated region fallthrough
CT: control target
= control target key end

     0   :  { %v306_v1 = vmov 0.0   ;;  %vm307_vm0 = vmmov 0   ;;  %s424_s0 = inlined_call_operand.vmem [shape: bf16[2,64,128], index: 0, kind: input, shape index: {}]   ;;  %s425_s1 = inlined_call_operand.vmem [shape: f32[128,128], index: 1, kind: input, shape index: {}]   ;;  %s426_s2 = inlined_call_operand.vmem [shape: f32[1,128], index: 2, kind: input, shape index: {}]   ;;  %s427_s3 = inlined_call_operand.hbm [shape: f32[2,128], index: 3, kind: output, shape index: {}]  }
   0x1   :  { %v91_v0 = vld [vmem:[%s425_s1 + $0x78] sm:$0xff]  ;;  %246 = vmatprep.subr.mxu0 %v306_v1  ;;  %v90_v2 = vld [vmem:[%s425_s1 + $0x70] sm:$0xff]  ;;  %278 = vmatprep.mubr.msk.f32.mxu0 %vm307_vm0, %v306_v1  ;;  %v89_v3 = vld [vmem:[%s425_s1 + $0x68] sm:$0xff] }
   0x2   :  { %247 = vmatpush3.msra.mxu0 %v91_v0  ;;  %v88_v4 = vld [vmem:[%s425_s1 + $0x60] sm:$0xff]  ;;  %v222_v6 = vld [vmem:[%s424_s0 + $0x8] sm:$0xff]   ;;  %v87_v10 = vld [vmem:[%s425_s1 + $0x58] sm:$0xff] }
   0x3   :  { %248 = vmatprep.subr.mxu0 %v306_v1  ;;  %v191_v5 = vld [vmem:[%s424_s0] sm:$0xff]   ;;  %v226_v11 = vld [vmem:[%s424_s0 + $0x28] sm:$0xff]   ;;  %v196_v12 = vunpack.c.l.bf16 %v222_v6 }
   0x4   :  { %249 = vmatpush3.msra.mxu0 %v90_v2  ;;  %v192_v7 = vunpack.c.l.bf16 %v191_v5  ;;  %v193_v8 = vunpack.c.h.bf16 %v191_v5  ;;  %v225_v9 = vld [vmem:[%s424_s0 + $0x20] sm:$0xff]   ;;  %v212_v15 = vunpack.c.l.bf16 %v226_v11 }
   0x5   :  { %250 = vmatprep.subr.mxu0 %v306_v1  ;;  %v208_v13 = vunpack.c.l.bf16 %v225_v9  ;;  %v209_v14 = vunpack.c.h.bf16 %v225_v9 }
   0x6   :  { %251 = vmatpush3.msra.mxu0 %v89_v3 }
   0x7   :  { %252 = vmatprep.subr.mxu0 %v306_v1 }
   0x8   :  { %253 = vmatpush3.msra.mxu0 %v88_v4 }
   0x9   :  { %8 = vsyncpa [#allocation3], 0  ;;  %254 = vmatprep.subr.mxu0 %v306_v1  ;;  %v86_v16 = vld [vmem:[%s425_s1 + $0x50] sm:$0xff]  ;;  %v197_v19 = vunpack.c.h.bf16 %v222_v6  ;;  %v213_v20 = vunpack.c.h.bf16 %v226_v11  ;;  %v47_v21 = vadd.f32 %v193_v8, %v192_v7  ;;  %v60_v22 = vadd.f32 %v209_v14, %v208_v13  ;;  %v85_v23 = vld [vmem:[%s425_s1 + $0x48] sm:$0xff] }
   0xa   :  { %v223_v17 = vld [vmem:[%s424_s0 + $0x10] sm:$0xff]   ;;  %255 = vmatpush3.msra.mxu0 %v87_v10  ;;  %v84_v28 = vld [vmem:[%s425_s1 + $0x40] sm:$0xff]  ;;  %v224_v29 = vld [vmem:[%s424_s0 + $0x18] sm:$0xff]   ;;  %vm101_vm1 = vcmask 1041409  }
   0xb   :  { %v227_v18 = vld [vmem:[%s424_s0 + $0x30] sm:$0xff]   ;;  %256 = vmatprep.subr.mxu0 %v306_v1  ;;  %v200_v24 = vunpack.c.l.bf16 %v223_v17  ;;  %v48_v26 = vadd.f32 %v196_v12, %v47_v21  ;;  %v61_v27 = vadd.f32 %v212_v15, %v60_v22  ;;  %v228_v30 = vld [vmem:[%s424_s0 + $0x38] sm:$0xff]   ;;  %v201_v31 = vunpack.c.h.bf16 %v223_v17  ;;  %v81_v45 = vld [vmem:[%s425_s1 + $0x28] sm:$0xff] }
   0xc   :  { %257 = vmatpush3.msra.mxu0 %v86_v16  ;;  %v216_v25 = vunpack.c.l.bf16 %v227_v18  ;;  %v217_v32 = vunpack.c.h.bf16 %v227_v18  ;;  %v83_v35 = vld [vmem:[%s425_s1 + $0x38] sm:$0xff]  ;;  %v204_v36 = vunpack.c.l.bf16 %v224_v29  ;;  %v220_v37 = vunpack.c.l.bf16 %v228_v30  ;;  %v82_v40 = vld [vmem:[%s425_s1 + $0x30] sm:$0xff]  ;;  %v80_v48 = vld [vmem:[%s425_s1 + $0x20] sm:$0xff] }
   0xd   :  { %258 = vmatprep.subr.mxu0 %v306_v1  ;;  %v49_v33 = vadd.f32 %v197_v19, %v48_v26  ;;  %v62_v34 = vadd.f32 %v213_v20, %v61_v27  ;;  %v205_v41 = vunpack.c.h.bf16 %v224_v29  ;;  %v221_v42 = vunpack.c.h.bf16 %v228_v30  ;;  %v79_v51 = vld [vmem:[%s425_s1 + $0x18] sm:$0xff]  ;;  %v78_v54 = vld [vmem:[%s425_s1 + $0x10] sm:$0xff]  ;;  %v77_v57 = vld [vmem:[%s425_s1 + $0x8] sm:$0xff] }
   0xe   :  { %259 = vmatpush3.msra.mxu0 %v85_v23  ;;  %v76_v60 = vld [vmem:[%s425_s1] sm:$0xff]  ;;  %s308_s1 = smov [#allocation2]  }
   0xf   :  { %260 = vmatprep.subr.mxu0 %v306_v1  ;;  %v50_v38 = vadd.f32 %v200_v24, %v49_v33  ;;  %v63_v39 = vadd.f32 %v216_v25, %v62_v34  ;;  %v189_v7 = vld [vmem:[%s426_s2] ss:$0 sm:$0xff]  ;;  %s181_s7 = sshll.u32 %s308_s1, 4  ;;  %s182_s7 = int_to_ptr.vmem [resolvable:$true] %s181_s7 }
  0x10   :  { %261 = vmatpush3.msra.mxu0 %v84_v28  ;;  %s284_s8 = scalar_lea.vmem %s182_s7, 32  ;;  %p289_p1 = scmp.lt.s32.totalorder %s182_s7, %s182_s7 }
  0x11   :  { %262 = vmatprep.subr.mxu0 %v306_v1  ;;  %v51_v43 = vadd.f32 %v201_v31, %v50_v38  ;;  %v64_v44 = vadd.f32 %v217_v32, %v63_v39  ;;  %p285_p0 = scmp.ne.s32.totalorder %s182_s7, %s284_s8  ;;  %p290_p2 = scmp.lt.s32.totalorder %s284_s8, %s284_s8 }
  0x12   :  { %263 = vmatpush3.msra.mxu0 %v83_v35 }
  0x13   :  { %264 = vmatprep.subr.mxu0 %v306_v1  ;;  %v52_v46 = vadd.f32 %v204_v36, %v51_v43  ;;  %v65_v47 = vadd.f32 %v220_v37, %v64_v44  ;;  %p291_p3 = por %p290_p2, %p289_p1 }
  0x14   :  { %265 = vmatpush3.msra.mxu0 %v82_v40 }
  0x15   :  { %266 = vmatprep.subr.mxu0 %v306_v1  ;;  %v53_v49 = vadd.f32 %v205_v41, %v52_v46  ;;  %v66_v50 = vadd.f32 %v221_v42, %v65_v47  ;;  %p292_p4 = pnand %p291_p3, %p285_p0 }
  0x16   :  { %267 = vmatpush3.msra.mxu0 %v81_v45 }
  0x17   :  { %268 = vmatprep.subr.mxu0 %v306_v1  ;;  %v54_v52 = vrot.slane %v53_v49, 4  ;;  %v67_v53 = vrot.slane %v66_v50, 4 }
  0x18   :  { %269 = vmatpush3.msra.mxu0 %v80_v48 }
  0x19   :  { %270 = vmatprep.subr.mxu0 %v306_v1  ;;  %v55_v55 = vadd.f32 %v54_v52, %v53_v49  ;;  %v68_v56 = vadd.f32 %v67_v53, %v66_v50 }
  0x1a   :  { %271 = vmatpush3.msra.mxu0 %v79_v51 }
  0x1b   :  { %272 = vmatprep.subr.mxu0 %v306_v1  ;;  %v56_v58 = vrot.slane %v55_v55, 2  ;;  %v69_v59 = vrot.slane %v68_v56, 2 }
  0x1c   :  { %273 = vmatpush3.msra.mxu0 %v78_v54 }
  0x1d   :  { %274 = vmatprep.subr.mxu0 %v306_v1  ;;  %v57_v61 = vadd.f32 %v56_v58, %v55_v55  ;;  %v70_v62 = vadd.f32 %v69_v59, %v68_v56 }
  0x1e   :  { %275 = vmatpush3.msra.mxu0 %v77_v57 }
  0x1f   :  { %276 = vmatprep.subr.mxu0 %v306_v1  ;;  %v58_v63 = vrot.slane %v57_v61, 1  ;;  %v71_v0 = vrot.slane %v70_v62, 1 }
  0x20   :  { %277 = vmatpush3.msra.mxu0 %v76_v60 }
  0x21   :  { %v59_v2 = vadd.f32 %v58_v63, %v57_v61  ;;  %v72_v3 = vadd.f32 %v71_v0, %v70_v62 }
  0x23   :  { %v74_v4 = vmul.f32 0.015625, %v59_v2  ;;  %v75_v5 = vmul.f32 0.015625, %v72_v3 }
  0x25   :  { %v102_v6 = vsel %vm101_vm1, %v75_v5, %v74_v4 }
  0x26   :  { %279 = vmatmul.mubr.f32.vlgmr.msra.gmra.mxu0 %v102_v6 }
  0xe6   :  { %v170_v8 = vpop.f32.mrf.mxu0 }
  0xe7   :  { %v171_v9 = vadd.f32 %v189_v7, %v170_v8 }
  0xe8   :  { %v280_v1 = vpop.f32.mrf.mxu0 }
  0xe9   :  { %174 = vst [vmem:[#allocation2] sm:$0x3] %v171_v9 }
  0xea   :  { %295 = shalt.err (!%p292_p4)
}
  0xeb   :  { %184 = dma.vmem_to_hbm [thread:$0]  %s182_s7, 32, %s427_s3, [#allocation3]  }
  0xec   :  { %304 = dma.done.wait [#allocation3], 32  }
  0xed   :  { %305 = vsyncadd [#allocation3], 4294967264 }
  0xee   :  { %188 = vsyncpa [#allocation3], 1 }

// kernel: semantic_encoder_forward.9
= control target key start
LH: loop header
LB: loop body
LE: loop exit
PB: predicated region body
PF: predicated region fallthrough
CT: control target
= control target key end

     0   :  { %s653_s1 = inlined_call_operand.vmem [shape: bf16[128,128], index: 1, kind: input, shape index: {}]   ;;  %s654_s0 = inlined_call_operand.vmem [shape: bf16[128,128], index: 0, kind: input, shape index: {}]   ;;  %s655_s2 = inlined_call_operand.vmem [shape: f32[1,128], index: 2, kind: input, shape index: {}]   ;;  %s656_s3 = inlined_call_operand.vmem [shape: f32[1,128], index: 3, kind: input, shape index: {}]   ;;  %s657_s4 = inlined_call_operand.vmem [shape: bf16[128,128], index: 4, kind: output, shape index: {}]  }
   0x1   :  { %v534_v0 = vld [vmem:[%s653_s1 + $0x38] sm:$0xff]   ;;  %v535_v1 = vld [vmem:[%s653_s1 + $0x30] sm:$0xff]   ;;  %v536_v2 = vld [vmem:[%s653_s1 + $0x28] sm:$0xff]  }
   0x2   :  { %486 = vmatprep.subr.bf16.mxu0 %v534_v0  ;;  %518 = vmatprep.subr.bf16.mxu1 %v534_v0  ;;  %v537_v3 = vld [vmem:[%s653_s1 + $0x20] sm:$0xff]   ;;  %v538_v6 = vld [vmem:[%s653_s1 + $0x18] sm:$0xff]   ;;  %v539_v7 = vld [vmem:[%s653_s1 + $0x10] sm:$0xff]  }
   0x3   :  { %487 = vmatpush3.bf16.msra.mxu0 %v534_v0  ;;  %526 = vmatpush3.bf16.msra.mxu1 %v534_v0  ;;  %v542_v4 = vld [vmem:[%s654_s0] sm:$0xff]   ;;  %v540_v8 = vld [vmem:[%s653_s1 + $0x8] sm:$0xff]   ;;  %v546_v12 = vld [vmem:[%s654_s0 + $0x10] sm:$0xff]  }
   0x4   :  { %488 = vmatprep.subr.bf16.mxu0 %v535_v1  ;;  %519 = vmatprep.subr.bf16.mxu1 %v535_v1  ;;  %v543_v5 = vld [vmem:[%s654_s0 + $0x20] sm:$0xff]   ;;  %v544_v10 = vld [vmem:[%s654_s0 + $0x8] sm:$0xff]   ;;  %v547_v13 = vld [vmem:[%s654_s0 + $0x30] sm:$0xff]  }
   0x5   :  { %502 = vmatprep.mubr.bf16.mxu0 %v542_v4  ;;  %510 = vmatprep.mubr.bf16.mxu1 %v543_v5  ;;  %v541_v9 = vld [vmem:[%s653_s1] sm:$0xff]   ;;  %v545_v11 = vld [vmem:[%s654_s0 + $0x28] sm:$0xff]   ;;  %v548_v14 = vld [vmem:[%s654_s0 + $0x18] sm:$0xff]  }
   0x6   :  { %v549_v15 = vld [vmem:[%s654_s0 + $0x38] sm:$0xff]   ;;  %v389_v16 = vld [vmem:[%s655_s2] ss:$0 sm:$0xff] }
   0x7   :  { %489 = vmatpush3.bf16.msra.mxu0 %v535_v1  ;;  %527 = vmatpush3.bf16.msra.mxu1 %v535_v1  ;;  %v390_v23 = vld [vmem:[%s656_s3] ss:$0 sm:$0xff] }
   0x8   :  { %490 = vmatprep.subr.bf16.mxu0 %v536_v2  ;;  %520 = vmatprep.subr.bf16.mxu1 %v536_v2 }
   0xb   :  { %491 = vmatpush3.bf16.msra.mxu0 %v536_v2  ;;  %528 = vmatpush3.bf16.msra.mxu1 %v536_v2 }
   0xc   :  { %492 = vmatprep.subr.bf16.mxu0 %v537_v3  ;;  %521 = vmatprep.subr.bf16.mxu1 %v537_v3 }
   0xf   :  { %493 = vmatpush3.bf16.msra.mxu0 %v537_v3  ;;  %529 = vmatpush3.bf16.msra.mxu1 %v537_v3 }
  0x10   :  { %494 = vmatprep.subr.bf16.mxu0 %v538_v6  ;;  %522 = vmatprep.subr.bf16.mxu1 %v538_v6 }
  0x13   :  { %495 = vmatpush3.bf16.msra.mxu0 %v538_v6  ;;  %530 = vmatpush3.bf16.msra.mxu1 %v538_v6 }
  0x14   :  { %496 = vmatprep.subr.bf16.mxu0 %v539_v7  ;;  %523 = vmatprep.subr.bf16.mxu1 %v539_v7 }
  0x17   :  { %497 = vmatpush3.bf16.msra.mxu0 %v539_v7  ;;  %531 = vmatpush3.bf16.msra.mxu1 %v539_v7 }
  0x18   :  { %498 = vmatprep.subr.bf16.mxu0 %v540_v8  ;;  %524 = vmatprep.subr.bf16.mxu1 %v540_v8 }
  0x1b   :  { %499 = vmatpush3.bf16.msra.mxu0 %v540_v8  ;;  %532 = vmatpush3.bf16.msra.mxu1 %v540_v8 }
  0x1c   :  { %500 = vmatprep.subr.bf16.mxu0 %v541_v9  ;;  %525 = vmatprep.subr.bf16.mxu1 %v541_v9 }
  0x1f   :  { %501 = vmatpush3.bf16.msra.mxu0 %v541_v9  ;;  %533 = vmatpush3.bf16.msra.mxu1 %v541_v9 }
  0x22   :  { %503 = vmatmul.mubr.bf16.vlgmr.msra.gmra.mxu0 %v544_v10  ;;  %511 = vmatmul.mubr.bf16.vlgmr.msra.gmra.mxu1 %v545_v11 }
  0x23   :  { %506 = vmatprep.mubr.bf16.mxu0 %v546_v12  ;;  %514 = vmatprep.mubr.bf16.mxu1 %v547_v13 }
  0x2a   :  { %507 = vmatmul.mubr.bf16.gmra.mxu0 %v548_v14  ;;  %515 = vmatmul.mubr.bf16.gmra.mxu1 %v549_v15 }
  0xe2   :  { %v504_v17 = vpop.f32.mrf.mxu0  ;;  %v512_v18 = vpop.f32.mrf.mxu1 }
  0xe3   :  { %v252_v19 = vmul.f32 %v504_v17, %v389_v16  ;;  %v260_v20 = vmul.f32 %v512_v18, %v389_v16 }
  0xe4   :  { %v180_v21 = vpop.f32.mrf.mxu0  ;;  %v212_v22 = vpop.f32.mrf.mxu1 }
  0xe5   :  { %v250_v24 = vmul.f32 %v389_v16, %v180_v21  ;;  %v258_v25 = vmul.f32 %v389_v16, %v212_v22  ;;  %v275_v30 = vadd.f32 %v390_v23, %v252_v19  ;;  %v283_v31 = vadd.f32 %v390_v23, %v260_v20 }
  0xe6   :  { %v505_v26 = vpop.f32.mrf.mxu0  ;;  %v513_v27 = vpop.f32.mrf.mxu1 }
  0xe7   :  { %v253_v28 = vmul.f32 %v505_v26, %v389_v16  ;;  %v261_v29 = vmul.f32 %v513_v27, %v389_v16  ;;  %v273_v38 = vadd.f32 %v390_v23, %v250_v24  ;;  %v281_v39 = vadd.f32 %v390_v23, %v258_v25 }
  0xe8   :  { %v183_v32 = vpop.f32.mrf.mxu0  ;;  %v215_v33 = vpop.f32.mrf.mxu1 }
  0xe9   :  { %v276_v34 = vadd.f32 %v390_v23, %v253_v28  ;;  %v284_v35 = vadd.f32 %v390_v23, %v261_v29  ;;  %v251_v36 = vmul.f32 %v389_v16, %v183_v32  ;;  %v259_v37 = vmul.f32 %v389_v16, %v215_v33 }
  0xea   :  { %v508_v40 = vpop.f32.mrf.mxu0  ;;  %v516_v41 = vpop.f32.mrf.mxu1 }
  0xeb   :  { %v431_v42 = vpack.c.bf16 %v276_v34, %v275_v30  ;;  %v451_v43 = vpack.c.bf16 %v284_v35, %v283_v31  ;;  %v274_v44 = vadd.f32 %v390_v23, %v251_v36  ;;  %v282_v45 = vadd.f32 %v390_v23, %v259_v37 }
  0xec   :  { %v256_v46 = vmul.f32 %v508_v40, %v389_v16  ;;  %v264_v47 = vmul.f32 %v516_v41, %v389_v16  ;;  %v196_v48 = vpop.f32.mrf.mxu0  ;;  %v228_v49 = vpop.f32.mrf.mxu1 }
  0xed   :  { %463 = vst [vmem:[%s657_s4 + $0x8] sm:$0xff] %v431_v42   ;;  %467 = vst [vmem:[%s657_s4 + $0x28] sm:$0xff] %v451_v43   ;;  %v426_v50 = vpack.c.bf16 %v274_v44, %v273_v38  ;;  %v446_v51 = vpack.c.bf16 %v282_v45, %v281_v39  ;;  %v254_v52 = vmul.f32 %v389_v16, %v196_v48 }
  0xee   :  { %v262_v53 = vmul.f32 %v389_v16, %v228_v49  ;;  %v509_v54 = vpop.f32.mrf.mxu0  ;;  %v517_v55 = vpop.f32.mrf.mxu1  ;;  %v279_v58 = vadd.f32 %v390_v23, %v256_v46  ;;  %v287_v59 = vadd.f32 %v390_v23, %v264_v47 }
  0xef   :  { %427 = vst [vmem:[%s657_s4] sm:$0xff] %v426_v50   ;;  %466 = vst [vmem:[%s657_s4 + $0x20] sm:$0xff] %v446_v51   ;;  %v257_v56 = vmul.f32 %v509_v54, %v389_v16  ;;  %v265_v57 = vmul.f32 %v517_v55, %v389_v16  ;;  %v277_v2 = vadd.f32 %v390_v23, %v254_v52 }
  0xf0   :  { %v199_v60 = vpop.f32.mrf.mxu0  ;;  %v231_v61 = vpop.f32.mrf.mxu1  ;;  %v285_v3 = vadd.f32 %v390_v23, %v262_v53 }
  0xf1   :  { %v280_v62 = vadd.f32 %v390_v23, %v257_v56  ;;  %v288_v63 = vadd.f32 %v390_v23, %v265_v57  ;;  %v255_v0 = vmul.f32 %v389_v16, %v199_v60  ;;  %v263_v1 = vmul.f32 %v389_v16, %v231_v61 }
  0xf3   :  { %v441_v4 = vpack.c.bf16 %v280_v62, %v279_v58  ;;  %v461_v5 = vpack.c.bf16 %v288_v63, %v287_v59  ;;  %v278_v6 = vadd.f32 %v390_v23, %v255_v0  ;;  %v286_v7 = vadd.f32 %v390_v23, %v263_v1 }
  0xf5   :  { %465 = vst [vmem:[%s657_s4 + $0x18] sm:$0xff] %v441_v4   ;;  %469 = vst [vmem:[%s657_s4 + $0x38] sm:$0xff] %v461_v5   ;;  %v436_v8 = vpack.c.bf16 %v278_v6, %v277_v2  ;;  %v456_v9 = vpack.c.bf16 %v286_v7, %v285_v3 }
  0xf7   :  { %464 = vst [vmem:[%s657_s4 + $0x10] sm:$0xff] %v436_v8   ;;  %468 = vst [vmem:[%s657_s4 + $0x30] sm:$0xff] %v456_v9  }

// kernel: semantic_encoder_forward.12
= control target key start
LH: loop header
LB: loop body
LE: loop exit
PB: predicated region body
PF: predicated region fallthrough
CT: control target
= control target key end

     0   :  { %s840_s1 = inlined_call_operand.vmem [shape: bf16[128,128], index: 1, kind: input, shape index: {}]   ;;  %s841_s0 = inlined_call_operand.vmem [shape: bf16[128,128], index: 0, kind: input, shape index: {}]   ;;  %s842_s2 = inlined_call_operand.vmem [shape: f32[1,128], index: 2, kind: input, shape index: {}]   ;;  %s843_s4 = inlined_call_operand.vmem [shape: bf16[128,128], index: 4, kind: input, shape index: {}]   ;;  %s844_s3 = inlined_call_operand.vmem [shape: f32[1,128], index: 3, kind: input, shape index: {}]   ;;  %s845_s5 = inlined_call_operand.vmem [shape: bf16[128,128], index: 5, kind: output, shape index: {}]  }
   0x1   :  { %v640_v0 = vld [vmem:[%s840_s1 + $0x38] sm:$0xff]   ;;  %v641_v1 = vld [vmem:[%s840_s1 + $0x30] sm:$0xff]   ;;  %v642_v2 = vld [vmem:[%s840_s1 + $0x28] sm:$0xff]  }
   0x2   :  { %592 = vmatprep.subr.bf16.mxu0 %v640_v0  ;;  %624 = vmatprep.subr.bf16.mxu1 %v640_v0  ;;  %v643_v3 = vld [vmem:[%s840_s1 + $0x20] sm:$0xff]   ;;  %v644_v6 = vld [vmem:[%s840_s1 + $0x18] sm:$0xff]   ;;  %v645_v7 = vld [vmem:[%s840_s1 + $0x10] sm:$0xff]  }
   0x3   :  { %593 = vmatpush3.bf16.msra.mxu0 %v640_v0  ;;  %632 = vmatpush3.bf16.msra.mxu1 %v640_v0  ;;  %v648_v4 = vld [vmem:[%s841_s0] sm:$0xff]   ;;  %v646_v8 = vld [vmem:[%s840_s1 + $0x8] sm:$0xff]   ;;  %v652_v12 = vld [vmem:[%s841_s0 + $0x10] sm:$0xff]  }
   0x4   :  { %594 = vmatprep.subr.bf16.mxu0 %v641_v1  ;;  %625 = vmatprep.subr.bf16.mxu1 %v641_v1  ;;  %v649_v5 = vld [vmem:[%s841_s0 + $0x20] sm:$0xff]   ;;  %v650_v10 = vld [vmem:[%s841_s0 + $0x8] sm:$0xff]   ;;  %v653_v13 = vld [vmem:[%s841_s0 + $0x30] sm:$0xff]  }
   0x5   :  { %608 = vmatprep.mubr.bf16.mxu0 %v648_v4  ;;  %616 = vmatprep.mubr.bf16.mxu1 %v649_v5  ;;  %v647_v9 = vld [vmem:[%s840_s1] sm:$0xff]   ;;  %v651_v11 = vld [vmem:[%s841_s0 + $0x28] sm:$0xff]   ;;  %v654_v14 = vld [vmem:[%s841_s0 + $0x18] sm:$0xff]  }
   0x6   :  { %v655_v15 = vld [vmem:[%s841_s0 + $0x38] sm:$0xff]   ;;  %v737_v16 = vld [vmem:[%s842_s2] ss:$0 sm:$0xff]  ;;  %v562_v17 = vld [vmem:[%s843_s4 + $0x8] sm:$0xff]  }
   0x7   :  { %595 = vmatpush3.bf16.msra.mxu0 %v641_v1  ;;  %633 = vmatpush3.bf16.msra.mxu1 %v641_v1  ;;  %v566_v18 = vld [vmem:[%s843_s4 + $0x28] sm:$0xff]   ;;  %v748_v20 = vld [vmem:[%s844_s3] ss:$0 sm:$0xff]  ;;  %v496_v26 = vunpack.c.l.bf16 %v562_v17  ;;  %v765_v34 = vld [vmem:[%s843_s4 + $0x18] sm:$0xff]   ;;  %v497_v39 = vunpack.c.h.bf16 %v562_v17 }
   0x8   :  { %596 = vmatprep.subr.bf16.mxu0 %v642_v2  ;;  %626 = vmatprep.subr.bf16.mxu1 %v642_v2  ;;  %v491_v24 = vld [vmem:[%s843_s4] sm:$0xff]   ;;  %v512_v27 = vunpack.c.l.bf16 %v566_v18  ;;  %v770_v35 = vld [vmem:[%s843_s4 + $0x38] sm:$0xff]   ;;  %v513_v41 = vunpack.c.h.bf16 %v566_v18  ;;  %v775_v42 = vld [vmem:[%s843_s4 + $0x10] sm:$0xff]   ;;  %v504_v52 = vunpack.c.l.bf16 %v765_v34 }
   0x9   :  { %v565_v25 = vld [vmem:[%s843_s4 + $0x20] sm:$0xff]   ;;  %v492_v36 = vunpack.c.l.bf16 %v491_v24  ;;  %v780_v43 = vld [vmem:[%s843_s4 + $0x30] sm:$0xff]   ;;  %v493_v46 = vunpack.c.h.bf16 %v491_v24  ;;  %v520_v53 = vunpack.c.l.bf16 %v770_v35  ;;  %v500_v56 = vunpack.c.l.bf16 %v775_v42 }
   0xa   :  { %v508_v37 = vunpack.c.l.bf16 %v565_v25  ;;  %v509_v47 = vunpack.c.h.bf16 %v565_v25  ;;  %v516_v57 = vunpack.c.l.bf16 %v780_v43 }
   0xb   :  { %597 = vmatpush3.bf16.msra.mxu0 %v642_v2  ;;  %634 = vmatpush3.bf16.msra.mxu1 %v642_v2 }
   0xc   :  { %598 = vmatprep.subr.bf16.mxu0 %v643_v3  ;;  %627 = vmatprep.subr.bf16.mxu1 %v643_v3 }
   0xf   :  { %599 = vmatpush3.bf16.msra.mxu0 %v643_v3  ;;  %635 = vmatpush3.bf16.msra.mxu1 %v643_v3 }
  0x10   :  { %600 = vmatprep.subr.bf16.mxu0 %v644_v6  ;;  %628 = vmatprep.subr.bf16.mxu1 %v644_v6 }
  0x13   :  { %601 = vmatpush3.bf16.msra.mxu0 %v644_v6  ;;  %636 = vmatpush3.bf16.msra.mxu1 %v644_v6 }
  0x14   :  { %602 = vmatprep.subr.bf16.mxu0 %v645_v7  ;;  %629 = vmatprep.subr.bf16.mxu1 %v645_v7 }
  0x17   :  { %603 = vmatpush3.bf16.msra.mxu0 %v645_v7  ;;  %637 = vmatpush3.bf16.msra.mxu1 %v645_v7 }
  0x18   :  { %604 = vmatprep.subr.bf16.mxu0 %v646_v8  ;;  %630 = vmatprep.subr.bf16.mxu1 %v646_v8 }
  0x1b   :  { %605 = vmatpush3.bf16.msra.mxu0 %v646_v8  ;;  %638 = vmatpush3.bf16.msra.mxu1 %v646_v8 }
  0x1c   :  { %606 = vmatprep.subr.bf16.mxu0 %v647_v9  ;;  %631 = vmatprep.subr.bf16.mxu1 %v647_v9 }
  0x1f   :  { %607 = vmatpush3.bf16.msra.mxu0 %v647_v9  ;;  %639 = vmatpush3.bf16.msra.mxu1 %v647_v9 }
  0x22   :  { %609 = vmatmul.mubr.bf16.vlgmr.msra.gmra.mxu0 %v650_v10  ;;  %617 = vmatmul.mubr.bf16.vlgmr.msra.gmra.mxu1 %v651_v11 }
  0x23   :  { %612 = vmatprep.mubr.bf16.mxu0 %v652_v12  ;;  %620 = vmatprep.mubr.bf16.mxu1 %v653_v13 }
  0x2a   :  { %613 = vmatmul.mubr.bf16.gmra.mxu0 %v654_v14  ;;  %621 = vmatmul.mubr.bf16.gmra.mxu1 %v655_v15 }
  0xe2   :  { %v610_v19 = vpop.f32.mrf.mxu0  ;;  %v618_v21 = vpop.f32.mrf.mxu1 }
  0xe3   :  { %v255_v22 = vmul.f32 %v610_v19, %v737_v16  ;;  %v263_v23 = vmul.f32 %v618_v21, %v737_v16 }
  0xe4   :  { %v183_v28 = vpop.f32.mrf.mxu0  ;;  %v215_v29 = vpop.f32.mrf.mxu1 }
  0xe5   :  { %v278_v30 = vadd.f32 %v748_v20, %v255_v22  ;;  %v286_v31 = vadd.f32 %v748_v20, %v263_v23  ;;  %v253_v32 = vmul.f32 %v737_v16, %v183_v28  ;;  %v261_v33 = vmul.f32 %v737_v16, %v215_v29 }
  0xe6   :  { %v611_v38 = vpop.f32.mrf.mxu0  ;;  %v619_v40 = vpop.f32.mrf.mxu1 }
  0xe7   :  { %v276_v44 = vadd.f32 %v748_v20, %v253_v32  ;;  %v284_v45 = vadd.f32 %v748_v20, %v261_v33  ;;  %v256_v48 = vmul.f32 %v611_v38, %v737_v16  ;;  %v264_v49 = vmul.f32 %v619_v40, %v737_v16 }
  0xe8   :  { %v186_v50 = vpop.f32.mrf.mxu0  ;;  %v218_v51 = vpop.f32.mrf.mxu1  ;;  %v326_v54 = vadd.f32 %v496_v26, %v278_v30  ;;  %v334_v55 = vadd.f32 %v512_v27, %v286_v31 }
  0xe9   :  { %v279_v58 = vadd.f32 %v748_v20, %v256_v48  ;;  %v287_v59 = vadd.f32 %v748_v20, %v264_v49  ;;  %v254_v60 = vmul.f32 %v737_v16, %v186_v50  ;;  %v262_v61 = vmul.f32 %v737_v16, %v218_v51 }
  0xea   :  { %v614_v62 = vpop.f32.mrf.mxu0  ;;  %v622_v63 = vpop.f32.mrf.mxu1  ;;  %v324_v0 = vadd.f32 %v492_v36, %v276_v44  ;;  %v332_v1 = vadd.f32 %v508_v37, %v284_v45  ;;  %v342_v10 = vmax.f32 %v326_v54, 0.0  ;;  %v350_v11 = vmax.f32 %v334_v55, 0.0 }
  0xeb   :  { %v259_v2 = vmul.f32 %v614_v62, %v737_v16  ;;  %v267_v3 = vmul.f32 %v622_v63, %v737_v16  ;;  %v327_v4 = vadd.f32 %v497_v39, %v279_v58  ;;  %v335_v5 = vadd.f32 %v513_v41, %v287_v59 }
  0xec   :  { %v277_v6 = vadd.f32 %v748_v20, %v254_v60  ;;  %v285_v7 = vadd.f32 %v748_v20, %v262_v61  ;;  %v199_v8 = vpop.f32.mrf.mxu0  ;;  %v231_v9 = vpop.f32.mrf.mxu1  ;;  %v340_v22 = vmax.f32 %v324_v0, 0.0  ;;  %v348_v23 = vmax.f32 %v332_v1, 0.0 }
  0xed   :  { %v257_v12 = vmul.f32 %v737_v16, %v199_v8  ;;  %v265_v13 = vmul.f32 %v737_v16, %v231_v9  ;;  %v343_v14 = vmax.f32 %v327_v4, 0.0  ;;  %v351_v15 = vmax.f32 %v335_v5, 0.0 }
  0xee   :  { %v325_v17 = vadd.f32 %v493_v46, %v277_v6  ;;  %v333_v18 = vadd.f32 %v509_v47, %v285_v7  ;;  %v615_v19 = vpop.f32.mrf.mxu0  ;;  %v623_v21 = vpop.f32.mrf.mxu1  ;;  %v282_v24 = vadd.f32 %v748_v20, %v259_v2  ;;  %v290_v25 = vadd.f32 %v748_v20, %v267_v3 }
  0xef   :  { %v530_v26 = vpack.c.bf16 %v343_v14, %v342_v10  ;;  %v550_v27 = vpack.c.bf16 %v351_v15, %v350_v11  ;;  %v280_v32 = vadd.f32 %v748_v20, %v257_v12  ;;  %v288_v33 = vadd.f32 %v748_v20, %v265_v13 }
  0xf0   :  { %v341_v28 = vmax.f32 %v325_v17, 0.0  ;;  %v349_v29 = vmax.f32 %v333_v18, 0.0  ;;  %v202_v30 = vpop.f32.mrf.mxu0  ;;  %v234_v31 = vpop.f32.mrf.mxu1  ;;  %v505_v36 = vunpack.c.h.bf16 %v765_v34  ;;  %v521_v37 = vunpack.c.h.bf16 %v770_v35 }
  0xf1   :  { %569 = vst [vmem:[%s845_s5 + $0x8] sm:$0xff] %v530_v26   ;;  %573 = vst [vmem:[%s845_s5 + $0x28] sm:$0xff] %v550_v27   ;;  %v260_v40 = vmul.f32 %v615_v19, %v737_v16  ;;  %v268_v41 = vmul.f32 %v623_v21, %v737_v16  ;;  %v258_v44 = vmul.f32 %v737_v16, %v202_v30  ;;  %v501_v34 = vunpack.c.h.bf16 %v775_v42 }
  0xf2   :  { %v525_v38 = vpack.c.bf16 %v341_v28, %v340_v22  ;;  %v545_v39 = vpack.c.bf16 %v349_v29, %v348_v23  ;;  %v266_v35 = vmul.f32 %v737_v16, %v234_v31  ;;  %v517_v45 = vunpack.c.h.bf16 %v780_v43 }
  0xf3   :  { %v330_v46 = vadd.f32 %v504_v52, %v282_v24  ;;  %v338_v47 = vadd.f32 %v520_v53, %v290_v25  ;;  %v283_v48 = vadd.f32 %v748_v20, %v260_v40  ;;  %v291_v49 = vadd.f32 %v748_v20, %v268_v41 }
  0xf4   :  { %526 = vst [vmem:[%s845_s5] sm:$0xff] %v525_v38   ;;  %572 = vst [vmem:[%s845_s5 + $0x20] sm:$0xff] %v545_v39   ;;  %v328_v50 = vadd.f32 %v500_v56, %v280_v32  ;;  %v336_v42 = vadd.f32 %v516_v57, %v288_v33  ;;  %v281_v16 = vadd.f32 %v748_v20, %v258_v44 }
  0xf5   :  { %v289_v43 = vadd.f32 %v748_v20, %v266_v35  ;;  %v331_v51 = vadd.f32 %v505_v36, %v283_v48  ;;  %v339_v54 = vadd.f32 %v521_v37, %v291_v49  ;;  %v346_v59 = vmax.f32 %v330_v46, 0.0 }
  0xf6   :  { %v329_v55 = vadd.f32 %v501_v34, %v281_v16  ;;  %v354_v60 = vmax.f32 %v338_v47, 0.0  ;;  %v344_v52 = vmax.f32 %v328_v50, 0.0  ;;  %v352_v53 = vmax.f32 %v336_v42, 0.0 }
  0xf7   :  { %v337_v58 = vadd.f32 %v517_v45, %v289_v43  ;;  %v347_v61 = vmax.f32 %v331_v51, 0.0  ;;  %v355_v62 = vmax.f32 %v339_v54, 0.0 }
  0xf8   :  { %v345_v63 = vmax.f32 %v329_v55, 0.0 }
  0xf9   :  { %v353_v0 = vmax.f32 %v337_v58, 0.0  ;;  %v540_v1 = vpack.c.bf16 %v347_v61, %v346_v59  ;;  %v560_v2 = vpack.c.bf16 %v355_v62, %v354_v60 }
  0xfa   :  { %v535_v56 = vpack.c.bf16 %v345_v63, %v344_v52 }
  0xfb   :  { %v555_v57 = vpack.c.bf16 %v353_v0, %v352_v53  ;;  %571 = vst [vmem:[%s845_s5 + $0x18] sm:$0xff] %v540_v1   ;;  %575 = vst [vmem:[%s845_s5 + $0x38] sm:$0xff] %v560_v2  }
  0xfc   :  { %570 = vst [vmem:[%s845_s5 + $0x10] sm:$0xff] %v535_v56  }
  0xfd   :  { %574 = vst [vmem:[%s845_s5 + $0x30] sm:$0xff] %v555_v57  }

// kernel: semantic_encoder_forward.11
= control target key start
LH: loop header
LB: loop body
LE: loop exit
PB: predicated region body
PF: predicated region fallthrough
CT: control target
= control target key end

     0   :  { %s3007_s1 = inlined_call_operand.vmem [shape: bf16[1152,128], index: 1, kind: input, shape index: {}]   ;;  %s3008_s0 = inlined_call_operand.vmem [shape: bf16[128,1152], index: 0, kind: input, shape index: {}]   ;;  %s3009_s2 = inlined_call_operand.vmem [shape: f32[1,128], index: 2, kind: input, shape index: {}]   ;;  %s3010_s3 = inlined_call_operand.vmem [shape: f32[1,128], index: 3, kind: input, shape index: {}]   ;;  %s3011_s4 = inlined_call_operand.vmem [shape: bf16[128,128], index: 4, kind: output, shape index: {}]  }
   0x1   :  { %v2218_v0 = vld [vmem:[%s3007_s1 + $0x78] sm:$0xff]   ;;  %v2222_v4 = vld [vmem:[%s3007_s1 + $0x70] sm:$0xff]   ;;  %v2226_v8 = vld [vmem:[%s3007_s1 + $0x68] sm:$0xff]  }
   0x2   :  { %v2219_v1 = vld [vmem:[%s3007_s1 + $0xf8] sm:$0xff]   ;;  %1898 = vmatprep.subr.bf16.mxu0 %v2218_v0  ;;  %v2223_v5 = vld [vmem:[%s3007_s1 + $0xf0] sm:$0xff]   ;;  %v2227_v9 = vld [vmem:[%s3007_s1 + $0xe8] sm:$0xff]  }
   0x3   :  { %v2220_v2 = vld [vmem:[%s3007_s1 + $0x38] sm:$0xff]   ;;  %1962 = vmatprep.subr.bf16.mxu1 %v2219_v1  ;;  %v2224_v6 = vld [vmem:[%s3007_s1 + $0x30] sm:$0xff]   ;;  %v2228_v10 = vld [vmem:[%s3007_s1 + $0x28] sm:$0xff]  }
   0x4   :  { %v2221_v3 = vld [vmem:[%s3007_s1 + $0xb8] sm:$0xff]   ;;  %1899 = vmatpush3.bf16.msra.mxu0 %v2220_v2  ;;  %v2225_v7 = vld [vmem:[%s3007_s1 + $0xb0] sm:$0xff]   ;;  %v2229_v11 = vld [vmem:[%s3007_s1 + $0xa8] sm:$0xff]  }
   0x5   :  { %1963 = vmatpush3.bf16.msra.mxu1 %v2221_v3  ;;  %1900 = vmatprep.subr.bf16.mxu0 %v2222_v4  ;;  %v2230_v12 = vld [vmem:[%s3007_s1 + $0x60] sm:$0xff]   ;;  %v2234_v16 = vld [vmem:[%s3007_s1 + $0x58] sm:$0xff]   ;;  %v2238_v20 = vld [vmem:[%s3007_s1 + $0x50] sm:$0xff]  }
   0x6   :  { %1964 = vmatprep.subr.bf16.mxu1 %v2223_v5  ;;  %v2231_v13 = vld [vmem:[%s3007_s1 + $0xe0] sm:$0xff]   ;;  %v2235_v17 = vld [vmem:[%s3007_s1 + $0xd8] sm:$0xff]   ;;  %v2239_v21 = vld [vmem:[%s3007_s1 + $0xd0] sm:$0xff]  }
   0x7   :  { %v2232_v14 = vld [vmem:[%s3007_s1 + $0x20] sm:$0xff]   ;;  %v2236_v18 = vld [vmem:[%s3007_s1 + $0x18] sm:$0xff]   ;;  %v2240_v22 = vld [vmem:[%s3007_s1 + $0x10] sm:$0xff]  }
   0x8   :  { %1901 = vmatpush3.bf16.msra.mxu0 %v2224_v6  ;;  %v2233_v15 = vld [vmem:[%s3007_s1 + $0xa0] sm:$0xff]   ;;  %v2237_v19 = vld [vmem:[%s3007_s1 + $0x98] sm:$0xff]   ;;  %v2241_v23 = vld [vmem:[%s3007_s1 + $0x90] sm:$0xff]  }
   0x9   :  { %1965 = vmatpush3.bf16.msra.mxu1 %v2225_v7  ;;  %1902 = vmatprep.subr.bf16.mxu0 %v2226_v8  ;;  %v2242_v24 = vld [vmem:[%s3007_s1 + $0x48] sm:$0xff]   ;;  %v2246_v28 = vld [vmem:[%s3007_s1 + $0x40] sm:$0xff]   ;;  %v2256_v36 = vld [vmem:[%s3007_s1 + $0x178] sm:$0xff]  }
   0xa   :  { %1966 = vmatprep.subr.bf16.mxu1 %v2227_v9  ;;  %v2243_v25 = vld [vmem:[%s3007_s1 + $0xc8] sm:$0xff]   ;;  %v2247_v29 = vld [vmem:[%s3007_s1 + $0xc0] sm:$0xff]   ;;  %v2257_v37 = vld [vmem:[%s3007_s1 + $0x1f8] sm:$0xff]  }
   0xb   :  { %v2244_v26 = vld [vmem:[%s3007_s1 + $0x8] sm:$0xff]   ;;  %v2248_v30 = vld [vmem:[%s3007_s1] sm:$0xff]   ;;  %v2258_v38 = vld [vmem:[%s3007_s1 + $0x138] sm:$0xff]  }
   0xc   :  { %1903 = vmatpush3.bf16.msra.mxu0 %v2228_v10  ;;  %v2245_v27 = vld [vmem:[%s3007_s1 + $0x88] sm:$0xff]   ;;  %v2249_v31 = vld [vmem:[%s3007_s1 + $0x80] sm:$0xff]   ;;  %v2259_v39 = vld [vmem:[%s3007_s1 + $0x1b8] sm:$0xff]  }
   0xd   :  { %1967 = vmatpush3.bf16.msra.mxu1 %v2229_v11  ;;  %1904 = vmatprep.subr.bf16.mxu0 %v2230_v12  ;;  %v2250_v32 = vld [vmem:[%s3008_s0] ss:$36 sps:$4 sm:$0xff]   ;;  %v2253_v34 = vld [vmem:[%s3008_s0 + $0x8] ss:$36 sps:$4 sm:$0xff]   ;;  %v2262_v41 = vld [vmem:[%s3008_s0 + $0x54] ss:$36 sps:$4 sm:$0xff]  }
   0xe   :  { %1968 = vmatprep.subr.bf16.mxu1 %v2231_v13  ;;  %v2252_v33 = vld [vmem:[%s3008_s0 + $0x4] ss:$36 sps:$4 sm:$0xff]   ;;  %v2255_v35 = vld [vmem:[%s3008_s0 + $0xc] ss:$36 sps:$4 sm:$0xff]   ;;  %v2270_v48 = vld [vmem:[%s3008_s0 + $0x94] ss:$36 sps:$4 sm:$0xff]  }
   0xf   :  { %1074 = vmatprep.mubr.bf16.mxu0 %v2252_v33  ;;  %1171 = vmatprep.mubr.bf16.mxu1 %v2255_v35  ;;  %v2260_v40 = vld [vmem:[%s3008_s0 + $0x4c] ss:$36 sps:$4 sm:$0xff]   ;;  %v2272_v49 = vld [vmem:[%s3008_s0 + $0x9c] ss:$36 sps:$4 sm:$0xff]   ;;  %v2282_v57 = vld [vmem:[%s3008_s0 + $0xe4] ss:$36 sps:$4 sm:$0xff]  }
  0x10   :  { %1905 = vmatpush3.bf16.msra.mxu0 %v2232_v14  ;;  %v2264_v42 = vld [vmem:[%s3008_s0 + $0x48] ss:$36 sps:$4 sm:$0xff]   ;;  %v2265_v43 = vld [vmem:[%s3008_s0 + $0x50] ss:$36 sps:$4 sm:$0xff]   ;;  %v2275_v51 = vld [vmem:[%s3008_s0 + $0x98] ss:$36 sps:$4 sm:$0xff]  }
  0x11   :  { %1969 = vmatpush3.bf16.msra.mxu1 %v2233_v15  ;;  %1906 = vmatprep.subr.bf16.mxu0 %v2234_v16  ;;  %v2266_v44 = vld [vmem:[%s3007_s1 + $0x170] sm:$0xff]   ;;  %v2276_v52 = vld [vmem:[%s3007_s1 + $0x168] sm:$0xff]   ;;  %v2280_v56 = vld [vmem:[%s3008_s0 + $0xdc] ss:$36 sps:$4 sm:$0xff]  }
  0x12   :  { %1970 = vmatprep.subr.bf16.mxu1 %v2235_v17  ;;  %v2267_v45 = vld [vmem:[%s3007_s1 + $0x1f0] sm:$0xff]   ;;  %v2277_v53 = vld [vmem:[%s3007_s1 + $0x1e8] sm:$0xff]   ;;  %v2284_v58 = vld [vmem:[%s3008_s0 + $0xd8] ss:$36 sps:$4 sm:$0xff]  }
  0x13   :  { %v2268_v46 = vld [vmem:[%s3007_s1 + $0x130] sm:$0xff]   ;;  %v2278_v54 = vld [vmem:[%s3007_s1 + $0x128] sm:$0xff]   ;;  %v2285_v59 = vld [vmem:[%s3008_s0 + $0xe0] ss:$36 sps:$4 sm:$0xff]  }
  0x14   :  { %1907 = vmatpush3.bf16.msra.mxu0 %v2236_v18  ;;  %v2269_v47 = vld [vmem:[%s3007_s1 + $0x1b0] sm:$0xff]   ;;  %v2279_v55 = vld [vmem:[%s3007_s1 + $0x1a8] sm:$0xff]   ;;  %v2286_v60 = vld [vmem:[%s3007_s1 + $0x160] sm:$0xff]  }
  0x15   :  { %1971 = vmatpush3.bf16.msra.mxu1 %v2237_v19  ;;  %1908 = vmatprep.subr.bf16.mxu0 %v2238_v20  ;;  %v2274_v50 = vld [vmem:[%s3008_s0 + $0x90] ss:$36 sps:$4 sm:$0xff]   ;;  %v2287_v61 = vld [vmem:[%s3007_s1 + $0x1e0] sm:$0xff]   ;;  %v2296_v3 = vld [vmem:[%s3007_s1 + $0x158] sm:$0xff]  }
  0x16   :  { %1972 = vmatprep.subr.bf16.mxu1 %v2239_v21  ;;  %v2288_v62 = vld [vmem:[%s3007_s1 + $0x120] sm:$0xff]   ;;  %v2292_v1 = vld [vmem:[%s3008_s0 + $0x12c] ss:$36 sps:$4 sm:$0xff]   ;;  %v2297_v5 = vld [vmem:[%s3007_s1 + $0x1d8] sm:$0xff]  }
  0x17   :  { %v2289_v63 = vld [vmem:[%s3007_s1 + $0x1a0] sm:$0xff]   ;;  %v2295_v4 = vld [vmem:[%s3008_s0 + $0x128] ss:$36 sps:$4 sm:$0xff]   ;;  %v2298_v6 = vld [vmem:[%s3007_s1 + $0x118] sm:$0xff]  }
  0x18   :  { %1909 = vmatpush3.bf16.msra.mxu0 %v2240_v22  ;;  %v2290_v0 = vld [vmem:[%s3008_s0 + $0x124] ss:$36 sps:$4 sm:$0xff]   ;;  %v2299_v7 = vld [vmem:[%s3007_s1 + $0x198] sm:$0xff]   ;;  %v2300_v8 = vld [vmem:[%s3008_s0 + $0x16c] ss:$36 sps:$4 sm:$0xff]  }
  0x19   :  { %1973 = vmatpush3.bf16.msra.mxu1 %v2241_v23  ;;  %1910 = vmatprep.subr.bf16.mxu0 %v2242_v24  ;;  %v2294_v2 = vld [vmem:[%s3008_s0 + $0x120] ss:$36 sps:$4 sm:$0xff]   ;;  %v2302_v9 = vld [vmem:[%s3008_s0 + $0x174] ss:$36 sps:$4 sm:$0xff]   ;;  %v2304_v12 = vld [vmem:[%s3008_s0 + $0x168] ss:$36 sps:$4 sm:$0xff]  }
  0x1a   :  { %1974 = vmatprep.subr.bf16.mxu1 %v2243_v25  ;;  %v2306_v10 = vld [vmem:[%s3007_s1 + $0x150] sm:$0xff]   ;;  %v2312_v17 = vld [vmem:[%s3008_s0 + $0x1bc] ss:$36 sps:$4 sm:$0xff]   ;;  %v2316_v18 = vld [vmem:[%s3007_s1 + $0x148] sm:$0xff]  }
  0x1b   :  { %v2307_v11 = vld [vmem:[%s3007_s1 + $0x1d0] sm:$0xff]   ;;  %v2317_v19 = vld [vmem:[%s3007_s1 + $0x1c8] sm:$0xff]   ;;  %v2315_v23 = vld [vmem:[%s3008_s0 + $0x1b8] ss:$36 sps:$4 sm:$0xff]  }
  0x1c   :  { %1911 = vmatpush3.bf16.msra.mxu0 %v2244_v26  ;;  %v2308_v13 = vld [vmem:[%s3007_s1 + $0x110] sm:$0xff]   ;;  %v2318_v20 = vld [vmem:[%s3007_s1 + $0x108] sm:$0xff]   ;;  %v2320_v24 = vld [vmem:[%s3008_s0 + $0x1fc] ss:$36 sps:$4 sm:$0xff]  }
  0x1d   :  { %1975 = vmatpush3.bf16.msra.mxu1 %v2245_v27  ;;  %1912 = vmatprep.subr.bf16.mxu0 %v2246_v28  ;;  %v2309_v14 = vld [vmem:[%s3007_s1 + $0x190] sm:$0xff]   ;;  %v2319_v21 = vld [vmem:[%s3007_s1 + $0x188] sm:$0xff]   ;;  %v2326_v26 = vld [vmem:[%s3007_s1 + $0x140] sm:$0xff]  }
  0x1e   :  { %1976 = vmatprep.subr.bf16.mxu1 %v2247_v29  ;;  %v2305_v15 = vld [vmem:[%s3008_s0 + $0x170] ss:$36 sps:$4 sm:$0xff]   ;;  %v2322_v25 = vld [vmem:[%s3008_s0 + $0x204] ss:$36 sps:$4 sm:$0xff]  }
  0x1f   :  { %v2310_v16 = vld [vmem:[%s3008_s0 + $0x1b4] ss:$36 sps:$4 sm:$0xff]   ;;  %v2327_v27 = vld [vmem:[%s3007_s1 + $0x1c0] sm:$0xff]  }
  0x20   :  { %1913 = vmatpush3.bf16.msra.mxu0 %v2248_v30  ;;  %v2314_v22 = vld [vmem:[%s3008_s0 + $0x1b0] ss:$36 sps:$4 sm:$0xff]   ;;  %v2328_v28 = vld [vmem:[%s3007_s1 + $0x100] sm:$0xff]   ;;  %v2324_v30 = vld [vmem:[%s3008_s0 + $0x1f8] ss:$36 sps:$4 sm:$0xff]  }
  0x21   :  { %1977 = vmatpush3.bf16.msra.mxu1 %v2249_v31  ;;  %2026 = vmatprep.subr.bf16.mxu0 %v2256_v36  ;;  %v2329_v29 = vld [vmem:[%s3007_s1 + $0x180] sm:$0xff]   ;;  %v2332_v33 = vld [vmem:[%s3008_s0 + $0x14] ss:$36 sps:$4 sm:$0xff]  }
  0x22   :  { %2090 = vmatprep.subr.bf16.mxu1 %v2257_v37  ;;  %v2325_v31 = vld [vmem:[%s3008_s0 + $0x200] ss:$36 sps:$4 sm:$0xff]   ;;  %v2330_v35 = vld [vmem:[%s3008_s0 + $0x10] ss:$36 sps:$4 sm:$0xff]   ;;  %v2333_v36 = vld [vmem:[%s3008_s0 + $0x18] ss:$36 sps:$4 sm:$0xff]  }
  0x23   :  { %1075 = vmatmul.mubr.bf16.vlgmr.msra.gmra.mxu0 %v2250_v32  ;;  %v2336_v32 = vld [vmem:[%s3007_s1 + $0x238] sm:$0xff]  }
  0x24   :  { %1172 = vmatmul.mubr.bf16.vlgmr.msra.gmra.mxu1 %v2253_v34  ;;  %2027 = vmatpush3.bf16.msra.mxu0 %v2258_v38  ;;  %v2335_v34 = vld [vmem:[%s3008_s0 + $0x1c] ss:$36 sps:$4 sm:$0xff]   ;;  %v2339_v38 = vld [vmem:[%s3008_s0 + $0x64] ss:$36 sps:$4 sm:$0xff]  }
  0x25   :  { %2091 = vmatpush3.bf16.msra.mxu1 %v2259_v39  ;;  %1082 = vmatprep.mubr.bf16.mxu0 %v2260_v40  ;;  %v2337_v37 = vld [vmem:[%s3008_s0 + $0x5c] ss:$36 sps:$4 sm:$0xff]   ;;  %v2343_v39 = vld [vmem:[%s3007_s1 + $0x230] sm:$0xff]   ;;  %v2350_v40 = vld [vmem:[%s3007_s1 + $0x228] sm:$0xff]  }
  0x26   :  { %1179 = vmatprep.mubr.bf16.mxu1 %v2262_v41  ;;  %2028 = vmatprep.subr.bf16.mxu0 %v2266_v44  ;;  %v2341_v41 = vld [vmem:[%s3008_s0 + $0x58] ss:$36 sps:$4 sm:$0xff]   ;;  %v2346_v44 = vld [vmem:[%s3008_s0 + $0xac] ss:$36 sps:$4 sm:$0xff]  }
  0x27   :  { %2092 = vmatprep.subr.bf16.mxu1 %v2267_v45  ;;  %v2357_v45 = vld [vmem:[%s3007_s1 + $0x220] sm:$0xff]  }
  0x28   :  { %2029 = vmatpush3.bf16.msra.mxu0 %v2268_v46  ;;  %v2364_v46 = vld [vmem:[%s3007_s1 + $0x218] sm:$0xff]  }
  0x29   :  { %2093 = vmatpush3.bf16.msra.mxu1 %v2269_v47  ;;  %2030 = vmatprep.subr.bf16.mxu0 %v2276_v52  ;;  %v2348_v47 = vld [vmem:[%s3008_s0 + $0xa0] ss:$36 sps:$4 sm:$0xff]   ;;  %v2355_v52 = vld [vmem:[%s3008_s0 + $0xe8] ss:$36 sps:$4 sm:$0xff]  }
  0x2a   :  { %2094 = vmatprep.subr.bf16.mxu1 %v2277_v53  ;;  %v2378_v53 = vld [vmem:[%s3007_s1 + $0x208] sm:$0xff]  }
  0x2b   :  { %1083 = vmatmul.mubr.bf16.gmra.mxu0 %v2264_v42  ;;  %v2342_v42 = vld [vmem:[%s3008_s0 + $0x60] ss:$36 sps:$4 sm:$0xff]  }
  0x2c   :  { %1180 = vmatmul.mubr.bf16.gmra.mxu1 %v2265_v43  ;;  %1090 = vmatprep.mubr.bf16.mxu0 %v2270_v48  ;;  %v2344_v43 = vld [vmem:[%s3008_s0 + $0xa4] ss:$36 sps:$4 sm:$0xff]  }
  0x2d   :  { %1187 = vmatprep.mubr.bf16.mxu1 %v2272_v49  ;;  %2031 = vmatpush3.bf16.msra.mxu0 %v2278_v54  ;;  %v2349_v48 = vld [vmem:[%s3008_s0 + $0xa8] ss:$36 sps:$4 sm:$0xff]   ;;  %v2356_v54 = vld [vmem:[%s3008_s0 + $0xf0] ss:$36 sps:$4 sm:$0xff]  }
  0x2e   :  { %2095 = vmatpush3.bf16.msra.mxu1 %v2279_v55  ;;  %2032 = vmatprep.subr.bf16.mxu0 %v2286_v60  ;;  %v2351_v49 = vld [vmem:[%s3008_s0 + $0xec] ss:$36 sps:$4 sm:$0xff]   ;;  %v2358_v55 = vld [vmem:[%s3008_s0 + $0x134] ss:$36 sps:$4 sm:$0xff]   ;;  %v2365_v60 = vld [vmem:[%s3008_s0 + $0x17c] ss:$36 sps:$4 sm:$0xff]  }
  0x2f   :  { %2096 = vmatprep.subr.bf16.mxu1 %v2287_v61  ;;  %v2367_v61 = vld [vmem:[%s3008_s0 + $0x184] ss:$36 sps:$4 sm:$0xff]  }
  0x31   :  { %2033 = vmatpush3.bf16.msra.mxu0 %v2288_v62  ;;  %v2369_v62 = vld [vmem:[%s3008_s0 + $0x178] ss:$36 sps:$4 sm:$0xff]  }
  0x32   :  { %2097 = vmatpush3.bf16.msra.mxu1 %v2289_v63  ;;  %2034 = vmatprep.subr.bf16.mxu0 %v2296_v3  ;;  %v2370_v63 = vld [vmem:[%s3008_s0 + $0x180] ss:$36 sps:$4 sm:$0xff]   ;;  %v2377_v3 = vld [vmem:[%s3008_s0 + $0x1c8] ss:$36 sps:$4 sm:$0xff]  }
  0x33   :  { %1091 = vmatmul.mubr.bf16.gmra.mxu0 %v2274_v50  ;;  %2098 = vmatprep.subr.bf16.mxu1 %v2297_v5  ;;  %v2353_v50 = vld [vmem:[%s3008_s0 + $0xf4] ss:$36 sps:$4 sm:$0xff]  }
  0x34   :  { %1188 = vmatmul.mubr.bf16.gmra.mxu1 %v2275_v51  ;;  %1098 = vmatprep.mubr.bf16.mxu0 %v2280_v56  ;;  %v2371_v51 = vld [vmem:[%s3007_s1 + $0x210] sm:$0xff]   ;;  %v2360_v56 = vld [vmem:[%s3008_s0 + $0x13c] ss:$36 sps:$4 sm:$0xff]  }
  0x35   :  { %1195 = vmatprep.mubr.bf16.mxu1 %v2282_v57  ;;  %2035 = vmatpush3.bf16.msra.mxu0 %v2298_v6  ;;  %v2385_v57 = vld [vmem:[%s3007_s1 + $0x200] sm:$0xff]   ;;  %v2381_v5 = vld [vmem:[%s3008_s0 + $0x214] ss:$36 sps:$4 sm:$0xff]   ;;  %v2383_v6 = vld [vmem:[%s3008_s0 + $0x208] ss:$36 sps:$4 sm:$0xff]  }
  0x36   :  { %2099 = vmatpush3.bf16.msra.mxu1 %v2299_v7  ;;  %2036 = vmatprep.subr.bf16.mxu0 %v2306_v10  ;;  %v2384_v7 = vld [vmem:[%s3008_s0 + $0x210] ss:$36 sps:$4 sm:$0xff]   ;;  %v2388_v10 = vld [vmem:[%s3008_s0 + $0x68] ss:$36 sps:$4 sm:$0xff]  }
  0x37   :  { %2100 = vmatprep.subr.bf16.mxu1 %v2307_v11  ;;  %v2389_v11 = vld [vmem:[%s3008_s0 + $0x188] ss:$36 sps:$4 sm:$0xff]  }
  0x39   :  { %2037 = vmatpush3.bf16.msra.mxu0 %v2308_v13  ;;  %v2391_v13 = vld [vmem:[%s3008_s0 + $0x1d0] ss:$36 sps:$4 sm:$0xff]  }
  0x3a   :  { %2101 = vmatpush3.bf16.msra.mxu1 %v2309_v14  ;;  %2038 = vmatprep.subr.bf16.mxu0 %v2316_v18  ;;  %v2392_v14 = vld [vmem:[%s3008_s0 + $0xf8] ss:$36 sps:$4 sm:$0xff]  }
  0x3b   :  { %1099 = vmatmul.mubr.bf16.gmra.mxu0 %v2284_v58  ;;  %2102 = vmatprep.subr.bf16.mxu1 %v2317_v19  ;;  %v2362_v58 = vld [vmem:[%s3008_s0 + $0x130] ss:$36 sps:$4 sm:$0xff]  }
  0x3c   :  { %1196 = vmatmul.mubr.bf16.gmra.mxu1 %v2285_v59  ;;  %1106 = vmatprep.mubr.bf16.mxu0 %v2290_v0  ;;  %v2363_v59 = vld [vmem:[%s3008_s0 + $0x138] ss:$36 sps:$4 sm:$0xff]   ;;  %v2372_v0 = vld [vmem:[%s3008_s0 + $0x1c4] ss:$36 sps:$4 sm:$0xff]  }
  0x3d   :  { %1203 = vmatprep.mubr.bf16.mxu1 %v2292_v1  ;;  %2039 = vmatpush3.bf16.msra.mxu0 %v2318_v20  ;;  %v2374_v1 = vld [vmem:[%s3008_s0 + $0x1cc] ss:$36 sps:$4 sm:$0xff]  }
  0x3e   :  { %2103 = vmatpush3.bf16.msra.mxu1 %v2319_v21  ;;  %2040 = vmatprep.subr.bf16.mxu0 %v2326_v26 }
  0x3f   :  { %2104 = vmatprep.subr.bf16.mxu1 %v2327_v27 }
  0x41   :  { %2041 = vmatpush3.bf16.msra.mxu0 %v2328_v28 }
  0x42   :  { %2105 = vmatpush3.bf16.msra.mxu1 %v2329_v29  ;;  %2170 = vmatprep.subr.bf16.mxu0 %v2336_v32 }
  0x43   :  { %1107 = vmatmul.mubr.bf16.gmra.mxu0 %v2294_v2  ;;  %2202 = vmatprep.subr.bf16.mxu1 %v2336_v32  ;;  %v2376_v2 = vld [vmem:[%s3008_s0 + $0x1c0] ss:$36 sps:$4 sm:$0xff]  }
  0x44   :  { %1204 = vmatmul.mubr.bf16.gmra.mxu1 %v2295_v4  ;;  %1114 = vmatprep.mubr.bf16.mxu0 %v2300_v8  ;;  %v2379_v4 = vld [vmem:[%s3008_s0 + $0x20c] ss:$36 sps:$4 sm:$0xff]   ;;  %v2386_v8 = vld [vmem:[%s3008_s0 + $0x20] ss:$36 sps:$4 sm:$0xff]  }
  0x45   :  { %1211 = vmatprep.mubr.bf16.mxu1 %v2302_v9  ;;  %v2387_v9 = vld [vmem:[%s3008_s0 + $0x140] ss:$36 sps:$4 sm:$0xff]  }
  0x4b   :  { %1115 = vmatmul.mubr.bf16.gmra.mxu0 %v2304_v12  ;;  %v2390_v12 = vld [vmem:[%s3008_s0 + $0xb0] ss:$36 sps:$4 sm:$0xff]  }
  0x4c   :  { %1212 = vmatmul.mubr.bf16.gmra.mxu1 %v2305_v15  ;;  %1122 = vmatprep.mubr.bf16.mxu0 %v2310_v16  ;;  %v2393_v15 = vld [vmem:[%s3008_s0 + $0x218] ss:$36 sps:$4 sm:$0xff]  }
  0x4d   :  { %1219 = vmatprep.mubr.bf16.mxu1 %v2312_v17 }
  0x53   :  { %1123 = vmatmul.mubr.bf16.gmra.mxu0 %v2314_v22 }
  0x54   :  { %1220 = vmatmul.mubr.bf16.gmra.mxu1 %v2315_v23  ;;  %1130 = vmatprep.mubr.bf16.mxu0 %v2320_v24 }
  0x55   :  { %1227 = vmatprep.mubr.bf16.mxu1 %v2322_v25 }
  0x5b   :  { %1131 = vmatmul.mubr.bf16.gmra.mxu0 %v2324_v30 }
  0x5c   :  { %1228 = vmatmul.mubr.bf16.gmra.mxu1 %v2325_v31  ;;  %1268 = vmatprep.mubr.bf16.mxu0 %v2332_v33 }
  0x5d   :  { %1365 = vmatprep.mubr.bf16.mxu1 %v2335_v34 }
  0x63   :  { %1269 = vmatmul.mubr.bf16.vlgmr.msra.gmra.mxu0 %v2330_v35 }
  0x64   :  { %1366 = vmatmul.mubr.bf16.vlgmr.msra.gmra.mxu1 %v2333_v36  ;;  %2171 = vmatpush3.bf16.msra.mxu0 %v2336_v32 }
  0x65   :  { %2210 = vmatpush3.bf16.msra.mxu1 %v2336_v32  ;;  %1276 = vmatprep.mubr.bf16.mxu0 %v2337_v37 }
  0x66   :  { %1373 = vmatprep.mubr.bf16.mxu1 %v2339_v38  ;;  %2172 = vmatprep.subr.bf16.mxu0 %v2343_v39 }
  0x67   :  { %2203 = vmatprep.subr.bf16.mxu1 %v2343_v39 }
  0x68   :  { %2173 = vmatpush3.bf16.msra.mxu0 %v2343_v39 }
  0x69   :  { %2211 = vmatpush3.bf16.msra.mxu1 %v2343_v39  ;;  %2174 = vmatprep.subr.bf16.mxu0 %v2350_v40 }
  0x6a   :  { %2204 = vmatprep.subr.bf16.mxu1 %v2350_v40 }
  0x6b   :  { %1277 = vmatmul.mubr.bf16.gmra.mxu0 %v2341_v41 }
  0x6c   :  { %1374 = vmatmul.mubr.bf16.gmra.mxu1 %v2342_v42  ;;  %1284 = vmatprep.mubr.bf16.mxu0 %v2344_v43 }
  0x6d   :  { %1381 = vmatprep.mubr.bf16.mxu1 %v2346_v44  ;;  %2175 = vmatpush3.bf16.msra.mxu0 %v2350_v40 }
  0x6e   :  { %2212 = vmatpush3.bf16.msra.mxu1 %v2350_v40  ;;  %2176 = vmatprep.subr.bf16.mxu0 %v2357_v45 }
  0x6f   :  { %2205 = vmatprep.subr.bf16.mxu1 %v2357_v45 }
  0x71   :  { %2177 = vmatpush3.bf16.msra.mxu0 %v2357_v45 }
  0x72   :  { %2213 = vmatpush3.bf16.msra.mxu1 %v2357_v45  ;;  %2178 = vmatprep.subr.bf16.mxu0 %v2364_v46 }
  0x73   :  { %1285 = vmatmul.mubr.bf16.gmra.mxu0 %v2348_v47  ;;  %2206 = vmatprep.subr.bf16.mxu1 %v2364_v46 }
  0x74   :  { %1382 = vmatmul.mubr.bf16.gmra.mxu1 %v2349_v48  ;;  %1292 = vmatprep.mubr.bf16.mxu0 %v2351_v49 }
  0x75   :  { %1389 = vmatprep.mubr.bf16.mxu1 %v2353_v50  ;;  %2179 = vmatpush3.bf16.msra.mxu0 %v2364_v46 }
  0x76   :  { %2214 = vmatpush3.bf16.msra.mxu1 %v2364_v46  ;;  %2180 = vmatprep.subr.bf16.mxu0 %v2371_v51 }
  0x77   :  { %2207 = vmatprep.subr.bf16.mxu1 %v2371_v51 }
  0x79   :  { %2181 = vmatpush3.bf16.msra.mxu0 %v2371_v51 }
  0x7a   :  { %2215 = vmatpush3.bf16.msra.mxu1 %v2371_v51  ;;  %2182 = vmatprep.subr.bf16.mxu0 %v2378_v53 }
  0x7b   :  { %1293 = vmatmul.mubr.bf16.gmra.mxu0 %v2355_v52  ;;  %2208 = vmatprep.subr.bf16.mxu1 %v2378_v53 }
  0x7c   :  { %1390 = vmatmul.mubr.bf16.gmra.mxu1 %v2356_v54  ;;  %1300 = vmatprep.mubr.bf16.mxu0 %v2358_v55 }
  0x7d   :  { %1397 = vmatprep.mubr.bf16.mxu1 %v2360_v56  ;;  %2183 = vmatpush3.bf16.msra.mxu0 %v2378_v53 }
  0x7e   :  { %2216 = vmatpush3.bf16.msra.mxu1 %v2378_v53  ;;  %2184 = vmatprep.subr.bf16.mxu0 %v2385_v57 }
  0x7f   :  { %2209 = vmatprep.subr.bf16.mxu1 %v2385_v57 }
  0x81   :  { %2185 = vmatpush3.bf16.msra.mxu0 %v2385_v57 }
  0x82   :  { %2217 = vmatpush3.bf16.msra.mxu1 %v2385_v57 }
  0x83   :  { %1301 = vmatmul.mubr.bf16.gmra.mxu0 %v2362_v58 }
  0x84   :  { %1398 = vmatmul.mubr.bf16.gmra.mxu1 %v2363_v59  ;;  %1308 = vmatprep.mubr.bf16.mxu0 %v2365_v60 }
  0x85   :  { %1405 = vmatprep.mubr.bf16.mxu1 %v2367_v61 }
  0x8b   :  { %1309 = vmatmul.mubr.bf16.gmra.mxu0 %v2369_v62 }
  0x8c   :  { %1406 = vmatmul.mubr.bf16.gmra.mxu1 %v2370_v63  ;;  %1316 = vmatprep.mubr.bf16.mxu0 %v2372_v0 }
  0x8d   :  { %1413 = vmatprep.mubr.bf16.mxu1 %v2374_v1 }
  0x93   :  { %1317 = vmatmul.mubr.bf16.gmra.mxu0 %v2376_v2 }
  0x94   :  { %1414 = vmatmul.mubr.bf16.gmra.mxu1 %v2377_v3  ;;  %1324 = vmatprep.mubr.bf16.mxu0 %v2379_v4 }
  0x95   :  { %1421 = vmatprep.mubr.bf16.mxu1 %v2381_v5 }
  0x9b   :  { %1325 = vmatmul.mubr.bf16.gmra.mxu0 %v2383_v6 }
  0x9c   :  { %1422 = vmatmul.mubr.bf16.gmra.mxu1 %v2384_v7  ;;  %2186 = vmatprep.mubr.bf16.mxu0 %v2386_v8 }
  0x9d   :  { %2194 = vmatprep.mubr.bf16.mxu1 %v2387_v9 }
  0xa3   :  { %2187 = vmatmul.mubr.bf16.vlgmr.msra.gmra.mxu0 %v2388_v10 }
  0xa4   :  { %2195 = vmatmul.mubr.bf16.vlgmr.msra.gmra.mxu1 %v2389_v11  ;;  %2190 = vmatprep.mubr.bf16.mxu0 %v2390_v12 }
  0xa5   :  { %2198 = vmatprep.mubr.bf16.mxu1 %v2391_v13 }
  0xab   :  { %2191 = vmatmul.mubr.bf16.gmra.mxu0 %v2392_v14 }
  0xac   :  { %2199 = vmatmul.mubr.bf16.gmra.mxu1 %v2393_v15 }
  0xe3   :  { %v1914_v16 = vpop.f32.mrf.mxu0 }
  0xe4   :  { %v1978_v17 = vpop.f32.mrf.mxu1 }
  0xe5   :  { %v1915_v18 = vpop.f32.mrf.mxu0 }
  0xe6   :  { %v1916_v19 = vadd.f32 %v1915_v18, %v1914_v16  ;;  %v1979_v20 = vpop.f32.mrf.mxu1 }
  0xe7   :  { %v1980_v21 = vadd.f32 %v1979_v20, %v1978_v17  ;;  %v1917_v22 = vpop.f32.mrf.mxu0 }
  0xe8   :  { %v1981_v23 = vpop.f32.mrf.mxu1 }
  0xe9   :  { %v2851_v24 = vadd.f32 %v1980_v21, %v1916_v19  ;;  %v1918_v25 = vpop.f32.mrf.mxu0 }
  0xea   :  { %v1919_v26 = vadd.f32 %v1918_v25, %v1917_v22  ;;  %v1982_v27 = vpop.f32.mrf.mxu1 }
  0xeb   :  { %v1983_v28 = vadd.f32 %v1982_v27, %v1981_v23  ;;  %v1920_v29 = vpop.f32.mrf.mxu0 }
  0xec   :  { %v1984_v30 = vpop.f32.mrf.mxu1 }
  0xed   :  { %v2853_v31 = vadd.f32 %v1983_v28, %v1919_v26  ;;  %v1921_v32 = vpop.f32.mrf.mxu0 }
  0xee   :  { %v1922_v33 = vadd.f32 %v1921_v32, %v1920_v29  ;;  %v1985_v34 = vpop.f32.mrf.mxu1 }
  0xef   :  { %v1986_v35 = vadd.f32 %v1985_v34, %v1984_v30  ;;  %v1923_v36 = vpop.f32.mrf.mxu0 }
  0xf0   :  { %v1987_v37 = vpop.f32.mrf.mxu1 }
  0xf1   :  { %v2855_v38 = vadd.f32 %v1986_v35, %v1922_v33  ;;  %v1924_v39 = vpop.f32.mrf.mxu0 }
  0xf2   :  { %v1925_v40 = vadd.f32 %v1924_v39, %v1923_v36  ;;  %v1988_v41 = vpop.f32.mrf.mxu1 }
  0xf3   :  { %v1989_v42 = vadd.f32 %v1988_v41, %v1987_v37  ;;  %v1926_v43 = vpop.f32.mrf.mxu0 }
  0xf4   :  { %v1990_v44 = vpop.f32.mrf.mxu1 }
  0xf5   :  { %v2857_v45 = vadd.f32 %v1989_v42, %v1925_v40  ;;  %v1927_v46 = vpop.f32.mrf.mxu0 }
  0xf6   :  { %v1928_v47 = vadd.f32 %v1927_v46, %v1926_v43  ;;  %v1991_v48 = vpop.f32.mrf.mxu1 }
  0xf7   :  { %v1992_v49 = vadd.f32 %v1991_v48, %v1990_v44  ;;  %v1929_v50 = vpop.f32.mrf.mxu0 }
  0xf8   :  { %v1993_v51 = vpop.f32.mrf.mxu1 }
  0xf9   :  { %v2859_v52 = vadd.f32 %v1992_v49, %v1928_v47  ;;  %v1930_v53 = vpop.f32.mrf.mxu0 }
  0xfa   :  { %v1931_v54 = vadd.f32 %v1930_v53, %v1929_v50  ;;  %v1994_v55 = vpop.f32.mrf.mxu1 }
  0xfb   :  { %v1995_v56 = vadd.f32 %v1994_v55, %v1993_v51  ;;  %v1932_v57 = vpop.f32.mrf.mxu0 }
  0xfc   :  { %v1996_v58 = vpop.f32.mrf.mxu1 }
  0xfd   :  { %v2861_v59 = vadd.f32 %v1995_v56, %v1931_v54  ;;  %v1933_v60 = vpop.f32.mrf.mxu0 }
  0xfe   :  { %v1934_v61 = vadd.f32 %v1933_v60, %v1932_v57  ;;  %v1997_v62 = vpop.f32.mrf.mxu1 }
  0xff   :  { %v1998_v63 = vadd.f32 %v1997_v62, %v1996_v58  ;;  %v1935_v0 = vpop.f32.mrf.mxu0 }
 0x100   :  { %v1999_v1 = vpop.f32.mrf.mxu1 }
 0x101   :  { %v2863_v2 = vadd.f32 %v1998_v63, %v1934_v61  ;;  %v1936_v3 = vpop.f32.mrf.mxu0 }
 0x102   :  { %v1937_v4 = vadd.f32 %v1936_v3, %v1935_v0  ;;  %v2000_v5 = vpop.f32.mrf.mxu1 }
 0x103   :  { %v2001_v6 = vadd.f32 %v2000_v5, %v1999_v1  ;;  %v1938_v7 = vpop.f32.mrf.mxu0 }
 0x104   :  { %v2002_v8 = vpop.f32.mrf.mxu1 }
 0x105   :  { %v2865_v9 = vadd.f32 %v2001_v6, %v1937_v4  ;;  %v1939_v10 = vpop.f32.mrf.mxu0 }
 0x106   :  { %v1940_v11 = vadd.f32 %v1939_v10, %v1938_v7  ;;  %v2003_v12 = vpop.f32.mrf.mxu1 }
 0x107   :  { %v2004_v13 = vadd.f32 %v2003_v12, %v2002_v8  ;;  %v1941_v14 = vpop.f32.mrf.mxu0 }
 0x108   :  { %v2005_v15 = vpop.f32.mrf.mxu1 }
 0x109   :  { %v2867_v16 = vadd.f32 %v2004_v13, %v1940_v11  ;;  %v1942_v17 = vpop.f32.mrf.mxu0 }
 0x10a   :  { %v1943_v18 = vadd.f32 %v1942_v17, %v1941_v14  ;;  %v2006_v19 = vpop.f32.mrf.mxu1 }
 0x10b   :  { %v2007_v20 = vadd.f32 %v2006_v19, %v2005_v15  ;;  %v1944_v21 = vpop.f32.mrf.mxu0 }
 0x10c   :  { %v2008_v22 = vpop.f32.mrf.mxu1 }
 0x10d   :  { %v2869_v23 = vadd.f32 %v2007_v20, %v1943_v18  ;;  %v1945_v25 = vpop.f32.mrf.mxu0 }
 0x10e   :  { %v1946_v26 = vadd.f32 %v1945_v25, %v1944_v21  ;;  %v2009_v27 = vpop.f32.mrf.mxu1 }
 0x10f   :  { %3012 = vst [vmem:[#allocation2_spill] sm:$0xff] %v2869_v23  ;;  %v2010_v28 = vadd.f32 %v2009_v27, %v2008_v22  ;;  %v1947_v29 = vpop.f32.mrf.mxu0 }
 0x110   :  { %v2011_v30 = vpop.f32.mrf.mxu1 }
 0x111   :  { %v2871_v32 = vadd.f32 %v2010_v28, %v1946_v26  ;;  %v1948_v33 = vpop.f32.mrf.mxu0 }
 0x112   :  { %v1949_v34 = vadd.f32 %v1948_v33, %v1947_v29  ;;  %v2012_v35 = vpop.f32.mrf.mxu1 }
 0x113   :  { %v2013_v36 = vadd.f32 %v2012_v35, %v2011_v30  ;;  %v1950_v37 = vpop.f32.mrf.mxu0 }
 0x114   :  { %v2014_v39 = vpop.f32.mrf.mxu1 }
 0x115   :  { %v2873_v40 = vadd.f32 %v2013_v36, %v1949_v34  ;;  %v1951_v41 = vpop.f32.mrf.mxu0 }
 0x116   :  { %v1952_v42 = vadd.f32 %v1951_v41, %v1950_v37  ;;  %v2015_v43 = vpop.f32.mrf.mxu1 }
 0x117   :  { %3013 = vst [vmem:[#allocation3_spill] sm:$0xff] %v2873_v40  ;;  %v2016_v44 = vadd.f32 %v2015_v43, %v2014_v39  ;;  %v1953_v46 = vpop.f32.mrf.mxu0 }
 0x118   :  { %v2017_v47 = vpop.f32.mrf.mxu1 }
 0x119   :  { %v2875_v48 = vadd.f32 %v2016_v44, %v1952_v42  ;;  %v1954_v49 = vpop.f32.mrf.mxu0 }
 0x11a   :  { %v1955_v50 = vadd.f32 %v1954_v49, %v1953_v46  ;;  %v2018_v51 = vpop.f32.mrf.mxu1 }
 0x11b   :  { %3014 = vst [vmem:[#allocation4_spill] sm:$0xff] %v2875_v48  ;;  %v2019_v53 = vadd.f32 %v2018_v51, %v2017_v47  ;;  %v1956_v54 = vpop.f32.mrf.mxu0 }
 0x11c   :  { %v2020_v55 = vpop.f32.mrf.mxu1 }
 0x11d   :  { %v2877_v56 = vadd.f32 %v2019_v53, %v1955_v50  ;;  %v1957_v57 = vpop.f32.mrf.mxu0 }
 0x11e   :  { %v1958_v58 = vadd.f32 %v1957_v57, %v1956_v54  ;;  %v2021_v60 = vpop.f32.mrf.mxu1 }
 0x11f   :  { %3015 = vst [vmem:[#allocation5_spill] sm:$0xff] %v2877_v56  ;;  %v2022_v61 = vadd.f32 %v2021_v60, %v2020_v55  ;;  %v1959_v62 = vpop.f32.mrf.mxu0 }
 0x120   :  { %v2023_v63 = vpop.f32.mrf.mxu1 }
 0x121   :  { %v2879_v0 = vadd.f32 %v2022_v61, %v1958_v58  ;;  %v1960_v1 = vpop.f32.mrf.mxu0 }
 0x122   :  { %v1961_v3 = vadd.f32 %v1960_v1, %v1959_v62  ;;  %v2024_v4 = vpop.f32.mrf.mxu1 }
 0x123   :  { %3016 = vst [vmem:[#allocation6_spill] sm:$0xff] %v2879_v0  ;;  %v2025_v5 = vadd.f32 %v2024_v4, %v2023_v63  ;;  %v2042_v6 = vpop.f32.mrf.mxu0 }
 0x124   :  { %v2106_v7 = vpop.f32.mrf.mxu1 }
 0x125   :  { %v2881_v8 = vadd.f32 %v2025_v5, %v1961_v3  ;;  %v2043_v10 = vpop.f32.mrf.mxu0 }
 0x126   :  { %v2044_v11 = vadd.f32 %v2043_v10, %v2042_v6  ;;  %v2107_v12 = vpop.f32.mrf.mxu1 }
 0x127   :  { %3017 = vst [vmem:[#allocation7_spill] sm:$0xff] %v2881_v8  ;;  %v2045_v13 = vpop.f32.mrf.mxu0  ;;  %v2108_v15 = vadd.f32 %v2107_v12, %v2106_v7 }
 0x128   :  { %v1271_v14 = vadd.f32 %v2044_v11, %v2851_v24  ;;  %v2109_v17 = vpop.f32.mrf.mxu1 }
 0x129   :  { %v2046_v18 = vpop.f32.mrf.mxu0 }
 0x12a   :  { %v2110_v19 = vpop.f32.mrf.mxu1  ;;  %v2884_v20 = vadd.f32 %v2108_v15, %v1271_v14  ;;  %v2047_v15 = vadd.f32 %v2046_v18, %v2045_v13 }
 0x12b   :  { %v2048_v21 = vpop.f32.mrf.mxu0 }
 0x12c   :  { %3018 = vst [vmem:[#allocation8_spill] sm:$0xff] %v2884_v20  ;;  %v2112_v22 = vpop.f32.mrf.mxu1 }
 0x12d   :  { %v2049_v25 = vpop.f32.mrf.mxu0 }
 0x12e   :  { %v2113_v26 = vpop.f32.mrf.mxu1  ;;  %v2050_v8 = vadd.f32 %v2049_v25, %v2048_v21 }
 0x12f   :  { %v2051_v27 = vpop.f32.mrf.mxu0 }
 0x130   :  { %v2115_v28 = vpop.f32.mrf.mxu1  ;;  %v1279_v23 = vadd.f32 %v2050_v8, %v2855_v38 }
 0x131   :  { %v2052_v29 = vpop.f32.mrf.mxu0 }
 0x132   :  { %v2116_v30 = vpop.f32.mrf.mxu1  ;;  %v2053_v20 = vadd.f32 %v2052_v29, %v2051_v27 }
 0x133   :  { %v2054_v33 = vpop.f32.mrf.mxu0 }
 0x134   :  { %v2118_v34 = vpop.f32.mrf.mxu1  ;;  %v1282_v13 = vadd.f32 %v2053_v20, %v2857_v45 }
 0x135   :  { %v2055_v35 = vpop.f32.mrf.mxu0 }
 0x136   :  { %v2119_v36 = vpop.f32.mrf.mxu1 }
 0x137   :  { %v2057_v37 = vpop.f32.mrf.mxu0 }
 0x138   :  { %v2121_v24 = vpop.f32.mrf.mxu1 }
 0x139   :  { %v2058_v39 = vpop.f32.mrf.mxu0 }
 0x13a   :  { %v2122_v41 = vpop.f32.mrf.mxu1  ;;  %v2059_v48 = vadd.f32 %v2058_v39, %v2057_v37  ;;  %v2117_v37 = vadd.f32 %v2116_v30, %v2115_v28 }
 0x13b   :  { %v2060_v42 = vpop.f32.mrf.mxu0  ;;  %v2123_v38 = vadd.f32 %v2122_v41, %v2121_v24 }
 0x13c   :  { %v2124_v43 = vpop.f32.mrf.mxu1  ;;  %v1290_v27 = vadd.f32 %v2059_v48, %v2861_v59 }
 0x13d   :  { %v2061_v44 = vpop.f32.mrf.mxu0 }
 0x13e   :  { %v2125_v46 = vpop.f32.mrf.mxu1  ;;  %v2916_v30 = vadd.f32 %v2123_v38, %v1290_v27 }
 0x13f   :  { %v2063_v47 = vpop.f32.mrf.mxu0  ;;  %v2126_v8 = vadd.f32 %v2125_v46, %v2124_v43  ;;  %v3027_v43 = vld [vmem:[#allocation3_spill] sm:$0xff] }
 0x140   :  { %v2886_v49 = vpop.f32.mrf.mxu1 }
 0x141   :  { %3019 = vst [vmem:[#allocation9_spill] sm:$0xff] %v2886_v49  ;;  %v2064_v50 = vpop.f32.mrf.mxu0  ;;  %v2111_v49 = vadd.f32 %v2110_v19, %v2109_v17 }
 0x142   :  { %v2888_v51 = vpop.f32.mrf.mxu1 }
 0x143   :  { %3020 = vst [vmem:[#allocation10_spill] sm:$0xff] %v2888_v51  ;;  %v2066_v53 = vpop.f32.mrf.mxu0  ;;  %v1274_v51 = vadd.f32 %v2047_v15, %v2853_v31 }
 0x144   :  { %v2890_v54 = vpop.f32.mrf.mxu1 }
 0x145   :  { %3021 = vst [vmem:[#allocation11_spill] sm:$0xff] %v2890_v54  ;;  %v2067_v55 = vpop.f32.mrf.mxu0  ;;  %v1371_v59 = vadd.f32 %v2111_v49, %v1274_v51 }
 0x146   :  { %v2892_v57 = vpop.f32.mrf.mxu1  ;;  %v2068_v31 = vadd.f32 %v2067_v55, %v2066_v53  ;;  %v3032_v55 = vld [vmem:[#allocation4_spill] sm:$0xff] }
 0x147   :  { %3022 = vst [vmem:[#allocation12_spill] sm:$0xff] %v2892_v57  ;;  %v2069_v58 = vpop.f32.mrf.mxu0 }
 0x148   :  { %v2894_v60 = vpop.f32.mrf.mxu1 }
 0x149   :  { %3023 = vst [vmem:[#allocation13_spill] sm:$0xff] %v2894_v60  ;;  %v2070_v61 = vpop.f32.mrf.mxu0  ;;  %v2056_v60 = vadd.f32 %v2055_v35, %v2054_v33  ;;  %v2065_v33 = vadd.f32 %v2064_v50, %v2063_v47 }
 0x14a   :  { %v2896_v62 = vpop.f32.mrf.mxu1  ;;  %v2071_v17 = vadd.f32 %v2070_v61, %v2069_v58  ;;  %v3029_v50 = vld [vmem:[#allocation10_spill] sm:$0xff] }
 0x14b   :  { %3024 = vst [vmem:[#allocation14_spill] sm:$0xff] %v2896_v62  ;;  %v2072_v63 = vpop.f32.mrf.mxu0  ;;  %v2062_v62 = vadd.f32 %v2061_v44, %v2060_v42  ;;  %v1287_v25 = vadd.f32 %v2056_v60, %v2859_v52  ;;  %v2120_v42 = vadd.f32 %v2119_v36, %v2118_v34  ;;  %v1379_v44 = vadd.f32 %v2117_v37, %v1282_v13  ;;  %v3026_v36 = vld [vmem:[#allocation2_spill] sm:$0xff] }
 0x14c   :  { %v2136_v1 = vpop.f32.mrf.mxu1  ;;  %v1303_v34 = vadd.f32 %v2068_v31, %v2867_v16  ;;  %v1306_v24 = vadd.f32 %v2071_v17, %v3026_v36  ;;  %v3030_v51 = vld [vmem:[#allocation11_spill] sm:$0xff]  ;;  %v2941_v31 = vld [vmem:[%s3010_s3] ss:$0 sm:$0xff] }
 0x14d   :  { %v2073_v3 = vpop.f32.mrf.mxu0  ;;  %v1295_v29 = vadd.f32 %v2062_v62, %v2863_v2  ;;  %v1298_v2 = vadd.f32 %v2065_v33, %v2865_v9  ;;  %v2914_v28 = vadd.f32 %v2120_v42, %v1287_v25 }
 0x14e   :  { %v2137_v4 = vpop.f32.mrf.mxu1  ;;  %v2074_v18 = vadd.f32 %v2073_v3, %v2072_v63  ;;  %v3031_v9 = vld [vmem:[#allocation12_spill] sm:$0xff] }
 0x14f   :  { %v2075_v5 = vpop.f32.mrf.mxu0  ;;  %v2912_v47 = vadd.f32 %v2126_v8, %v1295_v29  ;;  %v2138_v41 = vadd.f32 %v2137_v4, %v2136_v1  ;;  %v2132_v53 = vadd.f32 %v3031_v9, %v3030_v51  ;;  %v2931_v1 = vld [vmem:[%s3009_s2] ss:$0 sm:$0xff] }
 0x150   :  { %v2139_v6 = vpop.f32.mrf.mxu1  ;;  %v1311_v20 = vadd.f32 %v2074_v18, %v2871_v32  ;;  %v3033_v62 = vld [vmem:[#allocation13_spill] sm:$0xff] }
 0x151   :  { %v2076_v7 = vpop.f32.mrf.mxu0  ;;  %v1400_v27 = vadd.f32 %v2132_v53, %v1303_v34 }
 0x152   :  { %v2140_v10 = vpop.f32.mrf.mxu1  ;;  %v2077_v19 = vadd.f32 %v2076_v7, %v2075_v5  ;;  %v3034_v63 = vld [vmem:[#allocation14_spill] sm:$0xff]  ;;  %v1408_v4 = vadd.f32 %v2138_v41, %v1311_v20  ;;  %v3039_v20 = vld [vmem:[#allocation5_spill] sm:$0xff] }
 0x153   :  { %v2078_v11 = vpop.f32.mrf.mxu0  ;;  %v2135_v3 = vadd.f32 %v3034_v63, %v3033_v62  ;;  %v2141_v16 = vadd.f32 %v2140_v10, %v2139_v6  ;;  %v3036_v10 = vld [vmem:[#allocation6_spill] sm:$0xff] }
 0x154   :  { %v2898_v12 = vpop.f32.mrf.mxu1  ;;  %v1314_v32 = vadd.f32 %v2077_v19, %v3027_v43 }
 0x155   :  { %3025 = vst [vmem:[#allocation15_spill] sm:$0xff] %v2898_v12  ;;  %v2079_v14 = vpop.f32.mrf.mxu0  ;;  %v2114_v12 = vadd.f32 %v2113_v26, %v2112_v22  ;;  %v1403_v6 = vadd.f32 %v2135_v3, %v1306_v24 }
 0x156   :  { %v2143_v56 = vpop.f32.mrf.mxu1  ;;  %v2080_v22 = vadd.f32 %v2079_v14, %v2078_v11  ;;  %v1411_v29 = vadd.f32 %v2141_v16, %v1314_v32 }
 0x157   :  { %v2081_v0 = vpop.f32.mrf.mxu0  ;;  %v1376_v52 = vadd.f32 %v2114_v12, %v1279_v23  ;;  %v3028_v23 = vld [vmem:[#allocation9_spill] sm:$0xff] }
 0x158   :  { %v2900_v57 = vpop.f32.mrf.mxu1  ;;  %v2129_v49 = vadd.f32 %v3029_v50, %v3028_v23  ;;  %v1319_v58 = vadd.f32 %v2080_v22, %v3032_v55 }
 0x159   :  { %v2082_v54 = vpop.f32.mrf.mxu0 }
 0x15a   :  { %v2903_v40 = vpop.f32.mrf.mxu1  ;;  %v2083_v14 = vadd.f32 %v2082_v54, %v2081_v0  ;;  %v2934_v18 = vadd.f32 %v2129_v49, %v1298_v2 }
 0x15b   :  { %v2084_v21 = vpop.f32.mrf.mxu0  ;;  %v2147_v19 = vadd.f32 %v2903_v40, %v2900_v57 }
 0x15c   :  { %v2148_v35 = vpop.f32.mrf.mxu1  ;;  %v3035_v11 = vld [vmem:[#allocation15_spill] sm:$0xff] }
 0x15d   :  { %v2085_v39 = vpop.f32.mrf.mxu0  ;;  %v2144_v12 = vadd.f32 %v2143_v56, %v3035_v11  ;;  %v3037_v56 = vld [vmem:[#allocation8_spill] sm:$0xff] }
 0x15e   :  { %v2149_v45 = vpop.f32.mrf.mxu1  ;;  %v2086_v60 = vadd.f32 %v2085_v39, %v2084_v21  ;;  %v3038_v39 = vld [vmem:[#allocation7_spill] sm:$0xff] }
 0x15f   :  { %v2087_v26 = vpop.f32.mrf.mxu0  ;;  %v1416_v17 = vadd.f32 %v2144_v12, %v1319_v58 }
 0x160   :  { %v2151_v48 = vpop.f32.mrf.mxu1  ;;  %v1327_v33 = vadd.f32 %v2086_v60, %v3036_v10 }
 0x161   :  { %v2088_v46 = vpop.f32.mrf.mxu0 }
 0x162   :  { %v2152_v61 = vpop.f32.mrf.mxu1  ;;  %v2089_v5 = vadd.f32 %v2088_v46, %v2087_v26  ;;  %v1322_v26 = vadd.f32 %v2083_v14, %v3039_v20 }
 0x163   :  { %v2188_v7 = vpop.f32.mrf.mxu0  ;;  %v2153_v24 = vadd.f32 %v2152_v61, %v2151_v48 }
 0x164   :  { %v1473_v15 = vadd.f32 %v2188_v7, %v1376_v52  ;;  %v2196_v13 = vpop.f32.mrf.mxu1  ;;  %v1330_v42 = vadd.f32 %v2089_v5, %v3038_v39  ;;  %v2150_v52 = vadd.f32 %v2149_v45, %v2148_v35  ;;  %v1419_v39 = vadd.f32 %v2147_v19, %v1322_v26 }
 0x165   :  { %v1505_v21 = vadd.f32 %v2196_v13, %v1408_v4  ;;  %v1464_v25 = vpop.f32.mrf.mxu0 }
 0x166   :  { %v1536_v37 = vmul.f32 %v2931_v1, %v1473_v15  ;;  %v1465_v0 = vadd.f32 %v1464_v25, %v3037_v56  ;;  %v1496_v54 = vpop.f32.mrf.mxu1  ;;  %v1424_v49 = vadd.f32 %v2150_v52, %v1327_v33  ;;  %v1427_v48 = vadd.f32 %v2153_v24, %v1330_v42 }
 0x167   :  { %v1544_v38 = vmul.f32 %v2931_v1, %v1505_v21  ;;  %v1497_v8 = vadd.f32 %v1496_v54, %v1400_v27  ;;  %v2189_v22 = vpop.f32.mrf.mxu0 }
 0x168   :  { %v1534_v2 = vmul.f32 %v2931_v1, %v1465_v0  ;;  %v1476_v34 = vadd.f32 %v2189_v22, %v1379_v44  ;;  %v2197_v36 = vpop.f32.mrf.mxu1  ;;  %v1559_v41 = vadd.f32 %v2941_v31, %v1536_v37 }
 0x169   :  { %v1542_v43 = vmul.f32 %v2931_v1, %v1497_v8  ;;  %v1508_v32 = vadd.f32 %v2197_v36, %v1411_v29  ;;  %v1467_v40 = vpop.f32.mrf.mxu0  ;;  %v1567_v57 = vadd.f32 %v2941_v31, %v1544_v38 }
 0x16a   :  { %v1537_v46 = vmul.f32 %v2931_v1, %v1476_v34  ;;  %v1468_v23 = vadd.f32 %v1467_v40, %v1371_v59  ;;  %v1499_v50 = vpop.f32.mrf.mxu1  ;;  %v1557_v35 = vadd.f32 %v2941_v31, %v1534_v2  ;;  %v1575_v61 = vmax.f32 %v1559_v41, 0.0 }
 0x16b   :  { %v1545_v45 = vmul.f32 %v2931_v1, %v1508_v32  ;;  %v1500_v44 = vadd.f32 %v1499_v50, %v1403_v6  ;;  %v2192_v51 = vpop.f32.mrf.mxu0  ;;  %v1565_v9 = vadd.f32 %v2941_v31, %v1542_v43  ;;  %v1583_v16 = vmax.f32 %v1567_v57, 0.0 }
 0x16c   :  { %v1560_v53 = vadd.f32 %v2941_v31, %v1537_v46  ;;  %v1535_v55 = vmul.f32 %v2931_v1, %v1468_v23  ;;  %v1489_v58 = vadd.f32 %v2192_v51, %v2912_v47  ;;  %v2200_v60 = vpop.f32.mrf.mxu1  ;;  %v1573_v12 = vmax.f32 %v1557_v35, 0.0 }
 0x16d   :  { %v1568_v59 = vadd.f32 %v2941_v31, %v1545_v45  ;;  %v1543_v62 = vmul.f32 %v2931_v1, %v1500_v44  ;;  %v1521_v63 = vadd.f32 %v2200_v60, %v1424_v49  ;;  %v1480_v3 = vpop.f32.mrf.mxu0  ;;  %v1581_v21 = vmax.f32 %v1565_v9, 0.0 }
 0x16e   :  { %v1576_v5 = vmax.f32 %v1560_v53, 0.0  ;;  %v1558_v7 = vadd.f32 %v2941_v31, %v1535_v55  ;;  %v1481_v4 = vadd.f32 %v1480_v3, %v2914_v28  ;;  %v1512_v11 = vpop.f32.mrf.mxu1  ;;  %v1540_v29 = vmul.f32 %v2931_v1, %v1489_v58 }
 0x16f   :  { %v1584_v14 = vmax.f32 %v1568_v59, 0.0  ;;  %v1566_v15 = vadd.f32 %v2941_v31, %v1543_v62  ;;  %v1513_v47 = vadd.f32 %v1512_v11, %v1416_v17  ;;  %v2193_v13 = vpop.f32.mrf.mxu0  ;;  %v1548_v37 = vmul.f32 %v2931_v1, %v1521_v63 }
 0x170   :  { %v1859_v25 = vpack.c.bf16 %v1576_v5, %v1575_v61  ;;  %v1574_v27 = vmax.f32 %v1558_v7, 0.0  ;;  %v2201_v6 = vpop.f32.mrf.mxu1  ;;  %v1538_v56 = vmul.f32 %v2931_v1, %v1481_v4  ;;  %v1492_v17 = vadd.f32 %v2193_v13, %v2934_v18 }
 0x171   :  { %v1879_v10 = vpack.c.bf16 %v1584_v14, %v1583_v16  ;;  %v1582_v33 = vmax.f32 %v1566_v15, 0.0  ;;  %v1483_v28 = vpop.f32.mrf.mxu0  ;;  %v1546_v54 = vmul.f32 %v2931_v1, %v1513_v47  ;;  %v1524_v8 = vadd.f32 %v2201_v6, %v1427_v48 }
 0x172   :  { %1891 = vst [vmem:[%s3011_s4 + $0x8] sm:$0xff] %v1859_v25   ;;  %v1854_v0 = vpack.c.bf16 %v1574_v27, %v1573_v12  ;;  %v1515_v42 = vpop.f32.mrf.mxu1  ;;  %v1563_v22 = vadd.f32 %v2941_v31, %v1540_v29  ;;  %v1541_v20 = vmul.f32 %v2931_v1, %v1492_v17  ;;  %v1484_v52 = vadd.f32 %v1483_v28, %v2916_v30 }
 0x173   :  { %1895 = vst [vmem:[%s3011_s4 + $0x28] sm:$0xff] %v1879_v10   ;;  %v1874_v38 = vpack.c.bf16 %v1582_v33, %v1581_v21  ;;  %v1516_v2 = vadd.f32 %v1515_v42, %v1419_v39  ;;  %v1571_v18 = vadd.f32 %v2941_v31, %v1548_v37  ;;  %v1561_v19 = vadd.f32 %v2941_v31, %v1538_v56 }
 0x174   :  { %1855 = vst [vmem:[%s3011_s4] sm:$0xff] %v1854_v0   ;;  %v1549_v26 = vmul.f32 %v2931_v1, %v1524_v8  ;;  %v1569_v34 = vadd.f32 %v2941_v31, %v1546_v54  ;;  %v1564_v36 = vadd.f32 %v2941_v31, %v1541_v20  ;;  %v1539_v24 = vmul.f32 %v2931_v1, %v1484_v52 }
 0x175   :  { %1894 = vst [vmem:[%s3011_s4 + $0x20] sm:$0xff] %v1874_v38   ;;  %v1547_v41 = vmul.f32 %v2931_v1, %v1516_v2  ;;  %v1579_v43 = vmax.f32 %v1563_v22, 0.0  ;;  %v1587_v46 = vmax.f32 %v1571_v18, 0.0  ;;  %v1577_v23 = vmax.f32 %v1561_v19, 0.0 }
 0x176   :  { %v1572_v30 = vadd.f32 %v2941_v31, %v1549_v26  ;;  %v1580_v32 = vmax.f32 %v1564_v36, 0.0  ;;  %v1562_v40 = vadd.f32 %v2941_v31, %v1539_v24  ;;  %v1585_v49 = vmax.f32 %v1569_v34, 0.0 }
 0x177   :  { %v1570_v57 = vadd.f32 %v2941_v31, %v1547_v41 }
 0x178   :  { %v1588_v50 = vmax.f32 %v1572_v30, 0.0  ;;  %v1869_v35 = vpack.c.bf16 %v1580_v32, %v1579_v43  ;;  %v1578_v45 = vmax.f32 %v1562_v40, 0.0 }
 0x179   :  { %v1586_v44 = vmax.f32 %v1570_v57, 0.0 }
 0x17a   :  { %v1889_v51 = vpack.c.bf16 %v1588_v50, %v1587_v46  ;;  %1893 = vst [vmem:[%s3011_s4 + $0x18] sm:$0xff] %v1869_v35   ;;  %v1864_v1 = vpack.c.bf16 %v1578_v45, %v1577_v23 }
 0x17b   :  { %v1884_v48 = vpack.c.bf16 %v1586_v44, %v1585_v49 }
 0x17c   :  { %1897 = vst [vmem:[%s3011_s4 + $0x38] sm:$0xff] %v1889_v51   ;;  %1892 = vst [vmem:[%s3011_s4 + $0x10] sm:$0xff] %v1864_v1  }
 0x17d   :  { %1896 = vst [vmem:[%s3011_s4 + $0x30] sm:$0xff] %v1884_v48  }

</bundles_post_ra>
